<compile_context>
chip_gen: v6e
topology: v6e:2x2x1
jax: 0.10.0
libtpu: 0.0.40
codegen_flags: <defaults>
</compile_context>

<pallas_src>
import functools

import jax
import jax.numpy as jnp
from jax import lax
from jax.experimental import pallas as pl
from jax.experimental.pallas import tpu as pltpu

K_DIRS = 4
_SCAN_VMEM_LIMIT = 32 * 1024 * 1024


def _silu(x):
    # sigmoid(x) = 0.5*(1 + tanh(x/2)) keeps the transcendental on the EUP slot.
    return x * (0.5 * jnp.tanh(0.5 * x) + 0.5)


def _row_tile(m, target=256):
    """Largest multiple-of-8 divisor of m that is <= target; prefers >= 2 tiles (megacore)."""
    cands = [t for t in range(8, min(target, m) + 1, 8) if m % t == 0]
    if not cands:
        return m
    sub = [t for t in cands if t < m]
    return max(sub) if sub else max(cands)


def _seq_tile(l, target=256):
    """Largest multiple-of-8 divisor of l that is <= target (L tiling of the scan)."""
    cands = [t for t in range(8, min(target, l) + 1, 8) if l % t == 0]
    return max(cands) if cands else l


# ----------------- fused LayerNorm + in_proj (bf16 MXU matmul) -----------------
def _ln_matmul_kernel(x_ref, w_ref, b_ref, wi_ref, o_ref):
    x = x_ref[...]
    mu = jnp.mean(x, axis=-1, keepdims=True)
    xc = x - mu
    var = jnp.mean(xc * xc, axis=-1, keepdims=True)
    ln = xc * lax.rsqrt(var + 1e-5) * w_ref[...] + b_ref[...]
    o_ref[...] = jnp.dot(ln.astype(jnp.bfloat16), wi_ref[...],
                         preferred_element_type=jnp.float32)


def ln_in_proj(x, w, b, wi_bf16):
    M, C = x.shape
    N = wi_bf16.shape[1]
    tm = _row_tile(M)
    return pl.pallas_call(
        _ln_matmul_kernel,
        out_shape=jax.ShapeDtypeStruct((M, N), jnp.float32),
        grid=(M // tm,),
        in_specs=[pl.BlockSpec((tm, C), lambda i: (i, 0)),
                  pl.BlockSpec((1, C), lambda i: (0, 0)),
                  pl.BlockSpec((1, C), lambda i: (0, 0)),
                  pl.BlockSpec((C, N), lambda i: (0, 0))],
        out_specs=pl.BlockSpec((tm, N), lambda i: (i, 0)),
        compiler_params=pltpu.CompilerParams(dimension_semantics=("parallel",)),
    )(x, w.reshape(1, C), b.reshape(1, C), wi_bf16)


# ----------------------------- plain bf16 matmul (M-tiled) -----------------------------
def _matmul_kernel(a_ref, b_ref, o_ref):
    o_ref[...] = jnp.dot(a_ref[...].astype(jnp.bfloat16), b_ref[...],
                         preferred_element_type=jnp.float32)


def matmul_bf16(a, b_bf16):
    M, K = a.shape
    N = b_bf16.shape[1]
    tm = _row_tile(M)
    return pl.pallas_call(
        _matmul_kernel,
        out_shape=jax.ShapeDtypeStruct((M, N), jnp.float32),
        grid=(M // tm,),
        in_specs=[pl.BlockSpec((tm, K), lambda i: (i, 0)),
                  pl.BlockSpec((K, N), lambda i: (0, 0))],
        out_specs=pl.BlockSpec((tm, N), lambda i: (i, 0)),
        compiler_params=pltpu.CompilerParams(dimension_semantics=("parallel",)),
    )(a, b_bf16)


# ------------------ depthwise 3x3 conv + bias + SiLU (batch-tiled) ------------------
def _dwconv_silu_kernel(x_ref, w_ref, b_ref, o_ref):
    H, W, C = o_ref.shape
    acc = jnp.broadcast_to(b_ref[...], (H, W, C))
    for dh in range(3):
        row = x_ref[dh:dh + H, :, :]                      # (H, W+2, C) leading-axis slice
        for dw in range(3):
            acc = acc + row[:, dw:dw + W, :] * w_ref[pl.ds(dh * 3 + dw, 1), :]
    o_ref[...] = _silu(acc)


def dwconv_silu(x, w, b):
    """x: (B, H, W, C) NHWC, w: (9, C), b: (1, C); 'same' padding depthwise conv + SiLU."""
    B, H, W, C = x.shape
    x_p = jnp.pad(x, ((0, 0), (1, 1), (1, 1), (0, 0)))
    return pl.pallas_call(
        _dwconv_silu_kernel,
        out_shape=jax.ShapeDtypeStruct((B, H, W, C), jnp.float32),
        grid=(B,),
        in_specs=[pl.BlockSpec((None, H + 2, W + 2, C), lambda b: (b, 0, 0, 0)),
                  pl.BlockSpec((9, C), lambda b: (0, 0)),
                  pl.BlockSpec((1, C), lambda b: (0, 0))],
        out_specs=pl.BlockSpec((None, H, W, C), lambda b: (b, 0, 0, 0)),
        compiler_params=pltpu.CompilerParams(dimension_semantics=("parallel",)),
    )(x_p, w, b)


# ------------------- selective scan: 4 directions folded into lanes -------------------
def _selective_scan_kernel(u_ref, dt_ref, A_ref, Bs_ref, Cs_ref, Ds_ref, bias_ref,
                           y_ref, h_ref, *, chunk, d_per_dir):
    # Blocks: u_ref, dt_ref, y_ref: (Lt, K*D); A_ref: (N, K*D); Bs_ref, Cs_ref: (Lt, N, K);
    # Ds_ref, bias_ref: (1, K*D).  h_ref is a (N, K*D) VMEM scratch carrying the recurrence
    # state across L tiles (grid axis 1, "arbitrary"); it is reset at the first L tile.
    Lt, KD = u_ref.shape
    N = A_ref.shape[0]
    K = Bs_ref.shape[2]
    D = d_per_dir

    @pl.when(pl.program_id(1) == 0)
    def _():
        h_ref[...] = jnp.zeros_like(h_ref)

    A = A_ref[...]
    Ds = Ds_ref[...]
    bias = bias_ref[...]

    def chunk_body(ci, h):                               # h: (N, K*D) state
        l0 = pl.multiple_of(ci * chunk, chunk)
        u = u_ref[pl.ds(l0, chunk), :]                   # (chunk, K*D)
        d = dt_ref[pl.ds(l0, chunk), :] + bias
        d = jnp.maximum(d, 0.0) + jnp.log1p(jnp.exp(-jnp.abs(d)))   # stable softplus
        du = d * u
        Bc = Bs_ref[pl.ds(l0, chunk), :, :]              # (chunk, N, K) -- unbroadcast
        Cc = Cs_ref[pl.ds(l0, chunk), :, :]
        # In-kernel lane-broadcast of each direction's (chunk, N) scalars over its D channels.
        B_exp = jnp.concatenate(
            [jnp.broadcast_to(Bc[:, :, k:k + 1], (chunk, N, D)) for k in range(K)], axis=-1)
        C_exp = jnp.concatenate(
            [jnp.broadcast_to(Cc[:, :, k:k + 1], (chunk, N, D)) for k in range(K)], axis=-1)
        ys = []
        for j in range(chunk):                           # unrolled sequential recurrence
            dA_j = jnp.exp(d[j:j + 1, :] * A)            # computed just-in-time (low vreg pressure)
            h = dA_j * h + du[j:j + 1, :] * B_exp[j]
            ys.append(jnp.sum(h * C_exp[j], axis=0, keepdims=True))
        y = jnp.concatenate(ys, axis=0) + Ds * u         # one aligned (chunk, K*D) store
        y_ref[pl.ds(l0, chunk), :] = y
        return h

    h_ref[...] = lax.fori_loop(0, Lt // chunk, chunk_body, h_ref[...])


def selective_scan(u, dts, A, Bs, Cs, Ds, bias, d_per_dir):
    """u, dts: (B, L, K*D); A: (N, K*D); Bs, Cs: (B, L, N, K); Ds, bias: (1, K*D)."""
    B, L, KD = u.shape
    N = A.shape[0]
    K = Bs.shape[-1]
    Lt = _seq_tile(L, target=256)
    chunk = next(c for c in (8, 4, 2, 1) if Lt % c == 0)
    kernel = functools.partial(_selective_scan_kernel, chunk=chunk, d_per_dir=d_per_dir)
    return pl.pallas_call(
        kernel,
        out_shape=jax.ShapeDtypeStruct((B, L, KD), jnp.float32),
        grid=(B, L // Lt),
        in_specs=[
            pl.BlockSpec((None, Lt, KD), lambda b, l: (b, l, 0)),
            pl.BlockSpec((None, Lt, KD), lambda b, l: (b, l, 0)),
            pl.BlockSpec((N, KD), lambda b, l: (0, 0)),
            pl.BlockSpec((None, Lt, N, K), lambda b, l: (b, l, 0, 0)),
            pl.BlockSpec((None, Lt, N, K), lambda b, l: (b, l, 0, 0)),
            pl.BlockSpec((1, KD), lambda b, l: (0, 0)),
            pl.BlockSpec((1, KD), lambda b, l: (0, 0)),
        ],
        out_specs=pl.BlockSpec((None, Lt, KD), lambda b, l: (b, l, 0)),
        scratch_shapes=[pltpu.VMEM((N, KD), jnp.float32)],
        compiler_params=pltpu.CompilerParams(
            dimension_semantics=("parallel", "arbitrary"),
            vmem_limit_bytes=_SCAN_VMEM_LIMIT),
    )(u, dts, A, Bs, Cs, Ds, bias)


# ------------- fused out_norm2 + SiLU gate + out_proj + residual (aliased) -------------
def _ln_gate_proj_kernel(y_ref, w_ref, b_ref, z_ref, wo_ref, res_ref, o_ref):
    y = y_ref[...]
    mu = jnp.mean(y, axis=-1, keepdims=True)
    yc = y - mu
    var = jnp.mean(yc * yc, axis=-1, keepdims=True)
    ln = yc * lax.rsqrt(var + 1e-5) * w_ref[...] + b_ref[...]
    gated = ln * _silu(z_ref[...])
    o_ref[...] = jnp.dot(gated.astype(jnp.bfloat16), wo_ref[...],
                         preferred_element_type=jnp.float32) + res_ref[...]


def ln_gate_out_proj(y, w, b, z, wo_bf16, res):
    M, C = y.shape
    N = wo_bf16.shape[1]
    tm = _row_tile(M)
    return pl.pallas_call(
        _ln_gate_proj_kernel,
        out_shape=jax.ShapeDtypeStruct((M, N), jnp.float32),
        grid=(M // tm,),
        in_specs=[pl.BlockSpec((tm, C), lambda i: (i, 0)),
                  pl.BlockSpec((1, C), lambda i: (0, 0)),
                  pl.BlockSpec((1, C), lambda i: (0, 0)),
                  pl.BlockSpec((tm, C), lambda i: (i, 0)),
                  pl.BlockSpec((C, N), lambda i: (0, 0)),
                  pl.BlockSpec((tm, N), lambda i: (i, 0))],
        out_specs=pl.BlockSpec((tm, N), lambda i: (i, 0)),
        input_output_aliases={5: 0},
        compiler_params=pltpu.CompilerParams(dimension_semantics=("parallel",)),
    )(y, w.reshape(1, C), b.reshape(1, C), z, wo_bf16, res)


# ----------------------------- parameter init -----------------------------
def init_params(key, d_model, d_state=16, d_conv=3, expand=2):
    d_inner = int(expand * d_model)
    dt_rank = -(-d_model // 16)          # ceil(d_model / 16)
    K = K_DIRS
    ks = jax.random.split(key, 8)

    in_proj_w = jax.random.normal(ks[0], (d_inner, d_model), jnp.float32) * (d_model ** -0.5)
    conv_w = jax.random.normal(ks[1], (d_conv * d_conv, d_inner), jnp.float32) * 0.2
    conv_b = jax.random.normal(ks[2], (1, d_inner), jnp.float32) * 0.1
    x_proj_w = jax.random.normal(ks[3], (K, dt_rank + 2 * d_state, d_inner), jnp.float32) \
        * (d_inner ** -0.5)
    dt_w = jax.random.uniform(ks[4], (K, d_inner, dt_rank), jnp.float32,
                              minval=-(dt_rank ** -0.5), maxval=dt_rank ** -0.5)
    out_proj_w = jax.random.normal(ks[5], (d_model, d_inner), jnp.float32) * (d_inner ** -0.5)

    # dt bias via the reference inverse-softplus construction
    dt = jnp.exp(jax.random.uniform(ks[6], (K, d_inner), jnp.float32)
                 * (jnp.log(0.1) - jnp.log(0.001)) + jnp.log(0.001))
    dt = jnp.maximum(dt, 1e-4)
    dt_bias = dt + jnp.log(-jnp.expm1(-dt))                                  # (K, d_inner)

    A_logs = jnp.log(jnp.tile(jnp.arange(1, d_state + 1, dtype=jnp.float32)[None, :],
                              (K * d_inner, 1)))                              # (K*D, N)
    Ds = jnp.ones((K * d_inner,), jnp.float32)

    # ---- prepared / fused weights (computed ONCE at init) ----
    # dt_proj folded into x_proj: (x @ Wx[:R].T) @ Wdt.T == x @ (Wdt @ Wx[:R]).T
    # Columns grouped as [dt: K*D | B: K*N | C: K*N] (k-major) so the matmul output needs
    # no per-direction interleaved relayout.
    dt_blocks = [(dt_w[k] @ x_proj_w[k][:dt_rank]).T for k in range(K)]       # each (D, D)
    b_blocks = [x_proj_w[k][dt_rank:dt_rank + d_state].T for k in range(K)]   # each (D, N)
    c_blocks = [x_proj_w[k][dt_rank + d_state:].T for k in range(K)]          # each (D, N)
    proj_wT = jnp.concatenate(dt_blocks + b_blocks + c_blocks, axis=1)        # (D, K*(D+2N))

    A = -jnp.exp(A_logs)                                                      # (K*D, N)
    A_fold = jnp.transpose(A.reshape(K, d_inner, d_state), (2, 0, 1)) \
        .reshape(d_state, K * d_inner)                                        # (N, K*D)

    return {
        "d_model": d_model, "d_state": d_state, "d_inner": d_inner, "dt_rank": dt_rank,
        "out_norm_w": jnp.ones((d_model,), jnp.float32),
        "out_norm_b": jnp.zeros((d_model,), jnp.float32),
        "out_norm2_w": jnp.ones((d_inner,), jnp.float32),
        "out_norm2_b": jnp.zeros((d_inner,), jnp.float32),
        "conv_w": conv_w, "conv_b": conv_b,
        "in_proj_wT": in_proj_w.T.astype(jnp.bfloat16),      # (d_model, D)
        "proj_wT": proj_wT.astype(jnp.bfloat16),             # (D, K*(D+2N)) grouped columns
        "out_proj_wT": out_proj_w.T.astype(jnp.bfloat16),    # (D, d_model)
        "A_fold": A_fold,                                    # (N, K*D)
        "Ds_fold": Ds.reshape(1, K * d_inner),
        "dt_bias_fold": dt_bias.reshape(1, K * d_inner),
    }


# ----------------------------- SS2D1 forward -----------------------------
def ss2d_forward(p, x):
    B, H, W, d_model = x.shape
    D, N = p["d_inner"], p["d_state"]
    K = K_DIRS
    L = H * W
    M = B * L

    x2d = x.reshape(M, d_model)
    # out_norm (LayerNorm over d_model) + in_proj, fused
    xz = ln_in_proj(x2d, p["out_norm_w"], p["out_norm_b"], p["in_proj_wT"])    # (M, D)
    # depthwise 3x3 conv + SiLU (NHWC, batch-tiled)
    xc = dwconv_silu(xz.reshape(B, H, W, D), p["conv_w"], p["conv_b"])         # (B, H, W, D)

    # x_proj (+ folded dt_proj) for all 4 directions in ONE matmul (pointwise per token)
    xdbl = matmul_bf16(xc.reshape(M, D), p["proj_wT"])                          # (M, K*(D+2N))
    KD, KN = K * D, K * N
    dts_sp = xdbl[:, :KD].reshape(B, H, W, K, D)
    Bs_sp = xdbl[:, KD:KD + KN].reshape(B, H, W, K, N)
    Cs_sp = xdbl[:, KD + KN:].reshape(B, H, W, K, N)

    def to_seq(a, k):                     # spatial (B,H,W,F) -> direction-k sequence (B,L,F)
        if k % 2 == 1:
            a = jnp.transpose(a, (0, 2, 1, 3))
        s = a.reshape(B, L, -1)
        return s[:, ::-1, :] if k >= 2 else s

    # fold the 4 directions into the channel (lane) axis: K*D lanes; Bs/Cs stay unbroadcast
    u_fold = jnp.concatenate([to_seq(xc, k) for k in range(K)], axis=-1)                 # (B,L,K*D)
    dt_fold = jnp.concatenate([to_seq(dts_sp[:, :, :, k, :], k) for k in range(K)], axis=-1)
    Bs_fold = jnp.stack([to_seq(Bs_sp[:, :, :, k, :], k) for k in range(K)], axis=-1)    # (B,L,N,K)
    Cs_fold = jnp.stack([to_seq(Cs_sp[:, :, :, k, :], k) for k in range(K)], axis=-1)    # (B,L,N,K)

    ys = selective_scan(u_fold, dt_fold, p["A_fold"], Bs_fold, Cs_fold,
                        p["Ds_fold"], p["dt_bias_fold"], D).reshape(B, L, K, D)

    def from_seq(yk, k):                  # direction-k sequence (B,L,D) -> spatial (B,H,W,D)
        if k >= 2:
            yk = yk[:, ::-1, :]
        if k % 2 == 1:
            return jnp.transpose(yk.reshape(B, W, H, D), (0, 2, 1, 3))
        return yk.reshape(B, H, W, D)

    # TODO(synk): the per-direction host-side relayout (to_seq/from_seq) could be folded into the
    # scan via reversed L index_maps on a direction-pair grid axis; kept on the host for clarity.
    y = sum(from_seq(ys[:, :, k, :], k) for k in range(K))                               # (B,H,W,D)

    # out_norm2 + y * SiLU(xz) + out_proj + residual, fused (residual aliased to output)
    out = ln_gate_out_proj(y.reshape(M, D), p["out_norm2_w"], p["out_norm2_b"],
                           xz, p["out_proj_wT"], x2d)
    return out.reshape(B, H, W, d_model)


# ----------------------------- VSS forward -----------------------------
def channel_shuffle(x, groups):
    B, H, W, C = x.shape
    x = x.reshape(B, H, W, groups, C // groups)
    x = jnp.swapaxes(x, 3, 4)
    return x.reshape(B, H, W, C)


def vss_forward(params, RGB, T):
    # drop_path(p=0) and dropout(p=0) are identities.
    # TODO(synk): VSS.ln_1 is defined in __init__ but never used in the reference forward; omitted.
    x = jnp.concatenate([RGB, T], axis=0)          # shared weights -> batch RGB+T through one pass
    out = ss2d_forward(params, x)
    rgb, t = jnp.split(out, 2, axis=0)
    return channel_shuffle(rgb, 2), channel_shuffle(t, 2)


if __name__ == "__main__":
    key = jax.random.PRNGKey(0)
    k1, k2, k3 = jax.random.split(key, 3)
    B, H, W, Ch = 2, 8, 8, 16   # hidden_dim = 16 -> d_inner = 32, d_state = 16, dt_rank = 1
    RGB = jax.random.normal(k1, (B, H, W, Ch), jnp.float32)
    T = jax.random.normal(k2, (B, H, W, Ch), jnp.float32)
    params = init_params(k3, d_model=Ch, d_state=16)

    fn = jax.jit(functools.partial(vss_forward, params))
    rgb_out, t_out = fn(RGB, T)
    jax.block_until_ready((rgb_out, t_out))

    assert rgb_out.shape == (B, H, W, Ch) and t_out.shape == (B, H, W, Ch)
    assert bool(jnp.all(jnp.isfinite(rgb_out))) and bool(jnp.all(jnp.isfinite(t_out)))
    print("KERNEL_OK")
</pallas_src>

<mosaic_0001>
module attributes {stable_mosaic.version = 11 : i64} {
  func.func @_ln_matmul_kernel(%arg0: i32, %arg1: memref<128x16xf32, #tpu.memory_space<vmem>>, %arg2: memref<1x16xf32, #tpu.memory_space<vmem>>, %arg3: memref<1x16xf32, #tpu.memory_space<vmem>>, %arg4: memref<16x32xbf16, #tpu.memory_space<vmem>>, %arg5: memref<128x32xf32, #tpu.memory_space<vmem>>) attributes {dimension_semantics = [#tpu.dimension_semantics<parallel>], iteration_bounds = array<i64: 2>, scalar_prefetch = 0 : i64, scratch_operands = 0 : i64, tpu.core_type = #tpu.core_type<tc>, window_params = [{transform_indices = @transform_0, window_bounds = array<i64: 128, 16>}, {pipeline_mode = #tpu.pipeline_mode<synchronous>, transform_indices = @transform_1, window_bounds = array<i64: 1, 16>}, {pipeline_mode = #tpu.pipeline_mode<synchronous>, transform_indices = @transform_2, window_bounds = array<i64: 1, 16>}, {pipeline_mode = #tpu.pipeline_mode<synchronous>, transform_indices = @transform_3, window_bounds = array<i64: 16, 32>}, {transform_indices = @transform_4, window_bounds = array<i64: 128, 32>}]} {
    %c0 = arith.constant 0 : index
    %c0_0 = arith.constant 0 : index
    %0 = vector.load %arg1[%c0, %c0_0] : memref<128x16xf32, #tpu.memory_space<vmem>>, vector<128x16xf32>
    %cst = arith.constant dense<0.000000e+00> : vector<128xf32>
    %1 = vector.multi_reduction <add>, %0, %cst [1] : vector<128x16xf32> to vector<128xf32>
    %2 = vector.shape_cast %1 : vector<128xf32> to vector<128x1xf32>
    %cst_1 = arith.constant 1.600000e+01 : f32
    %3 = vector.broadcast %cst_1 : f32 to vector<128x1xf32>
    %4 = arith.divf %2, %3 : vector<128x1xf32>
    %5 = vector.broadcast %4 : vector<128x1xf32> to vector<128x16xf32>
    %6 = arith.subf %0, %5 : vector<128x16xf32>
    %7 = arith.mulf %6, %6 : vector<128x16xf32>
    %cst_2 = arith.constant dense<0.000000e+00> : vector<128xf32>
    %8 = vector.multi_reduction <add>, %7, %cst_2 [1] : vector<128x16xf32> to vector<128xf32>
    %9 = vector.shape_cast %8 : vector<128xf32> to vector<128x1xf32>
    %cst_3 = arith.constant 1.600000e+01 : f32
    %10 = vector.broadcast %cst_3 : f32 to vector<128x1xf32>
    %11 = arith.divf %9, %10 : vector<128x1xf32>
    %cst_4 = arith.constant 9.99999974E-6 : f32
    %12 = vector.broadcast %cst_4 : f32 to vector<128x1xf32>
    %13 = arith.addf %11, %12 : vector<128x1xf32>
    %14 = math.rsqrt %13 : vector<128x1xf32>
    %15 = vector.broadcast %14 : vector<128x1xf32> to vector<128x16xf32>
    %16 = arith.mulf %6, %15 : vector<128x16xf32>
    %c0_5 = arith.constant 0 : index
    %c0_6 = arith.constant 0 : index
    %17 = vector.load %arg2[%c0_5, %c0_6] : memref<1x16xf32, #tpu.memory_space<vmem>>, vector<1x16xf32>
    %18 = vector.broadcast %17 : vector<1x16xf32> to vector<128x16xf32>
    %19 = arith.mulf %16, %18 : vector<128x16xf32>
    %c0_7 = arith.constant 0 : index
    %c0_8 = arith.constant 0 : index
    %20 = vector.load %arg3[%c0_7, %c0_8] : memref<1x16xf32, #tpu.memory_space<vmem>>, vector<1x16xf32>
    %21 = vector.broadcast %20 : vector<1x16xf32> to vector<128x16xf32>
    %22 = arith.addf %19, %21 : vector<128x16xf32>
    %23 = arith.truncf %22 : vector<128x16xf32> to vector<128x16xbf16>
    %c0_9 = arith.constant 0 : index
    %c0_10 = arith.constant 0 : index
    %24 = vector.load %arg4[%c0_9, %c0_10] : memref<16x32xbf16, #tpu.memory_space<vmem>>, vector<16x32xbf16>
    %cst_11 = arith.constant dense<0.000000e+00> : vector<128x32xf32>
    %25 = tpu.matmul %23, %24, %cst_11 {dimension_numbers = #tpu.dot_dimension_numbers<[1], [0], [0], [1], [0, 0, 1, 1], [], []>} : vector<128x16xbf16>, vector<16x32xbf16>, vector<128x32xf32> -> vector<128x32xf32>
    %c0_12 = arith.constant 0 : index
    %c0_13 = arith.constant 0 : index
    %26 = vector.load %arg5[%c0_12, %c0_13] : memref<128x32xf32, #tpu.memory_space<vmem>>, vector<128x32xf32>
    tpu.vector_store %arg5[%c0_12, %c0_13], %25 {strides = array<i32>} : memref<128x32xf32, #tpu.memory_space<vmem>>, vector<128x32xf32>,
    return
  }
  func.func @transform_0(%arg0: i32) -> (i32, i32) {
    %c0_i32 = arith.constant 0 : i32
    %c0_i32_0 = arith.constant 0 : i32
    return %arg0, %c0_i32 : i32, i32
  }
  func.func @transform_1(%arg0: i32) -> (i32, i32) {
    %c0_i32 = arith.constant 0 : i32
    %c0_i32_0 = arith.constant 0 : i32
    %c0_i32_1 = arith.constant 0 : i32
    return %c0_i32, %c0_i32_0 : i32, i32
  }
  func.func @transform_2(%arg0: i32) -> (i32, i32) {
    %c0_i32 = arith.constant 0 : i32
    %c0_i32_0 = arith.constant 0 : i32
    %c0_i32_1 = arith.constant 0 : i32
    return %c0_i32, %c0_i32_0 : i32, i32
  }
  func.func @transform_3(%arg0: i32) -> (i32, i32) {
    %c0_i32 = arith.constant 0 : i32
    %c0_i32_0 = arith.constant 0 : i32
    %c0_i32_1 = arith.constant 0 : i32
    return %c0_i32, %c0_i32_0 : i32, i32
  }
  func.func @transform_4(%arg0: i32) -> (i32, i32) {
    %c0_i32 = arith.constant 0 : i32
    %c0_i32_0 = arith.constant 0 : i32
    return %arg0, %c0_i32 : i32, i32
  }
}

module attributes {stable_mosaic.version = 11 : i64} {
  func.func @_dwconv_silu_kernel(%arg0: i32, %arg1: memref<1x10x10x32xf32, #tpu.memory_space<vmem>>, %arg2: memref<9x32xf32, #tpu.memory_space<vmem>>, %arg3: memref<1x32xf32, #tpu.memory_space<vmem>>, %arg4: memref<1x8x8x32xf32, #tpu.memory_space<vmem>>) attributes {dimension_semantics = [#tpu.dimension_semantics<parallel>], iteration_bounds = array<i64: 4>, scalar_prefetch = 0 : i64, scratch_operands = 0 : i64, tpu.core_type = #tpu.core_type<tc>, window_params = [{transform_indices = @transform_0, window_bounds = array<i64: 1, 10, 10, 32>}, {pipeline_mode = #tpu.pipeline_mode<synchronous>, transform_indices = @transform_1, window_bounds = array<i64: 9, 32>}, {pipeline_mode = #tpu.pipeline_mode<synchronous>, transform_indices = @transform_2, window_bounds = array<i64: 1, 32>}, {transform_indices = @transform_3, window_bounds = array<i64: 1, 8, 8, 32>}]} {
    %c0 = arith.constant 0 : index
    %c0_0 = arith.constant 0 : index
    %0 = vector.load %arg3[%c0, %c0_0] : memref<1x32xf32, #tpu.memory_space<vmem>>, vector<1x32xf32>
    %1 = vector.shape_cast %0 : vector<1x32xf32> to vector<1x1x32xf32>
    %2 = vector.broadcast %1 : vector<1x1x32xf32> to vector<8x8x32xf32>
    %c0_1 = arith.constant 0 : index
    %c0_2 = arith.constant 0 : index
    %c0_3 = arith.constant 0 : index
    %c0_4 = arith.constant 0 : index
    %3 = vector.load %arg1[%c0_1, %c0_2, %c0_3, %c0_4] : memref<1x10x10x32xf32, #tpu.memory_space<vmem>>, vector<1x8x10x32xf32>
    %4 = vector.shape_cast %3 : vector<1x8x10x32xf32> to vector<8x10x32xf32>
    %5 = vector.extract_strided_slice %4 {offsets = [0, 0, 0], sizes = [8, 8, 32], strides = [1, 1, 1]} : vector<8x10x32xf32> to vector<8x8x32xf32>
    %c0_5 = arith.constant 0 : index
    %c0_6 = arith.constant 0 : index
    %6 = vector.load %arg2[%c0_5, %c0_6] : memref<9x32xf32, #tpu.memory_space<vmem>>, vector<1x32xf32>
    %7 = vector.shape_cast %6 : vector<1x32xf32> to vector<1x1x32xf32>
    %8 = vector.broadcast %7 : vector<1x1x32xf32> to vector<8x8x32xf32>
    %9 = arith.mulf %5, %8 : vector<8x8x32xf32>
    %10 = arith.addf %2, %9 : vector<8x8x32xf32>
    %11 = vector.extract_strided_slice %4 {offsets = [0, 1, 0], sizes = [8, 8, 32], strides = [1, 1, 1]} : vector<8x10x32xf32> to vector<8x8x32xf32>
    %c1 = arith.constant 1 : index
    %c0_7 = arith.constant 0 : index
    %12 = vector.load %arg2[%c1, %c0_7] : memref<9x32xf32, #tpu.memory_space<vmem>>, vector<1x32xf32>
    %13 = vector.shape_cast %12 : vector<1x32xf32> to vector<1x1x32xf32>
    %14 = vector.broadcast %13 : vector<1x1x32xf32> to vector<8x8x32xf32>
    %15 = arith.mulf %11, %14 : vector<8x8x32xf32>
    %16 = arith.addf %10, %15 : vector<8x8x32xf32>
    %17 = vector.extract_strided_slice %4 {offsets = [0, 2, 0], sizes = [8, 8, 32], strides = [1, 1, 1]} : vector<8x10x32xf32> to vector<8x8x32xf32>
    %c2 = arith.constant 2 : index
    %c0_8 = arith.constant 0 : index
    %18 = vector.load %arg2[%c2, %c0_8] : memref<9x32xf32, #tpu.memory_space<vmem>>, vector<1x32xf32>
    %19 = vector.shape_cast %18 : vector<1x32xf32> to vector<1x1x32xf32>
    %20 = vector.broadcast %19 : vector<1x1x32xf32> to vector<8x8x32xf32>
    %21 = arith.mulf %17, %20 : vector<8x8x32xf32>
    %22 = arith.addf %16, %21 : vector<8x8x32xf32>
    %c0_9 = arith.constant 0 : index
    %c1_10 = arith.constant 1 : index
    %c0_11 = arith.constant 0 : index
    %c0_12 = arith.constant 0 : index
    %23 = vector.load %arg1[%c0_9, %c1_10, %c0_11, %c0_12] : memref<1x10x10x32xf32, #tpu.memory_space<vmem>>, vector<1x8x10x32xf32>
    %24 = vector.shape_cast %23 : vector<1x8x10x32xf32> to vector<8x10x32xf32>
    %25 = vector.extract_strided_slice %24 {offsets = [0, 0, 0], sizes = [8, 8, 32], strides = [1, 1, 1]} : vector<8x10x32xf32> to vector<8x8x32xf32>
    %c3 = arith.constant 3 : index
    %c0_13 = arith.constant 0 : index
    %26 = vector.load %arg2[%c3, %c0_13] : memref<9x32xf32, #tpu.memory_space<vmem>>, vector<1x32xf32>
    %27 = vector.shape_cast %26 : vector<1x32xf32> to vector<1x1x32xf32>
    %28 = vector.broadcast %27 : vector<1x1x32xf32> to vector<8x8x32xf32>
    %29 = arith.mulf %25, %28 : vector<8x8x32xf32>
    %30 = arith.addf %22, %29 : vector<8x8x32xf32>
    %31 = vector.extract_strided_slice %24 {offsets = [0, 1, 0], sizes = [8, 8, 32], strides = [1, 1, 1]} : vector<8x10x32xf32> to vector<8x8x32xf32>
    %c4 = arith.constant 4 : index
    %c0_14 = arith.constant 0 : index
    %32 = vector.load %arg2[%c4, %c0_14] : memref<9x32xf32, #tpu.memory_space<vmem>>, vector<1x32xf32>
    %33 = vector.shape_cast %32 : vector<1x32xf32> to vector<1x1x32xf32>
    %34 = vector.broadcast %33 : vector<1x1x32xf32> to vector<8x8x32xf32>
    %35 = arith.mulf %31, %34 : vector<8x8x32xf32>
    %36 = arith.addf %30, %35 : vector<8x8x32xf32>
    %37 = vector.extract_strided_slice %24 {offsets = [0, 2, 0], sizes = [8, 8, 32], strides = [1, 1, 1]} : vector<8x10x32xf32> to vector<8x8x32xf32>
    %c5 = arith.constant 5 : index
    %c0_15 = arith.constant 0 : index
    %38 = vector.load %arg2[%c5, %c0_15] : memref<9x32xf32, #tpu.memory_space<vmem>>, vector<1x32xf32>
    %39 = vector.shape_cast %38 : vector<1x32xf32> to vector<1x1x32xf32>
    %40 = vector.broadcast %39 : vector<1x1x32xf32> to vector<8x8x32xf32>
    %41 = arith.mulf %37, %40 : vector<8x8x32xf32>
    %42 = arith.addf %36, %41 : vector<8x8x32xf32>
    %c0_16 = arith.constant 0 : index
    %c2_17 = arith.constant 2 : index
    %c0_18 = arith.constant 0 : index
    %c0_19 = arith.constant 0 : index
    %43 = vector.load %arg1[%c0_16, %c2_17, %c0_18, %c0_19] : memref<1x10x10x32xf32, #tpu.memory_space<vmem>>, vector<1x8x10x32xf32>
    %44 = vector.shape_cast %43 : vector<1x8x10x32xf32> to vector<8x10x32xf32>
    %45 = vector.extract_strided_slice %44 {offsets = [0, 0, 0], sizes = [8, 8, 32], strides = [1, 1, 1]} : vector<8x10x32xf32> to vector<8x8x32xf32>
    %c6 = arith.constant 6 : index
    %c0_20 = arith.constant 0 : index
    %46 = vector.load %arg2[%c6, %c0_20] : memref<9x32xf32, #tpu.memory_space<vmem>>, vector<1x32xf32>
    %47 = vector.shape_cast %46 : vector<1x32xf32> to vector<1x1x32xf32>
    %48 = vector.broadcast %47 : vector<1x1x32xf32> to vector<8x8x32xf32>
    %49 = arith.mulf %45, %48 : vector<8x8x32xf32>
    %50 = arith.addf %42, %49 : vector<8x8x32xf32>
    %51 = vector.extract_strided_slice %44 {offsets = [0, 1, 0], sizes = [8, 8, 32], strides = [1, 1, 1]} : vector<8x10x32xf32> to vector<8x8x32xf32>
    %c7 = arith.constant 7 : index
    %c0_21 = arith.constant 0 : index
    %52 = vector.load %arg2[%c7, %c0_21] : memref<9x32xf32, #tpu.memory_space<vmem>>, vector<1x32xf32>
    %53 = vector.shape_cast %52 : vector<1x32xf32> to vector<1x1x32xf32>
    %54 = vector.broadcast %53 : vector<1x1x32xf32> to vector<8x8x32xf32>
    %55 = arith.mulf %51, %54 : vector<8x8x32xf32>
    %56 = arith.addf %50, %55 : vector<8x8x32xf32>
    %57 = vector.extract_strided_slice %44 {offsets = [0, 2, 0], sizes = [8, 8, 32], strides = [1, 1, 1]} : vector<8x10x32xf32> to vector<8x8x32xf32>
    %c8 = arith.constant 8 : index
    %c0_22 = arith.constant 0 : index
    %58 = vector.load %arg2[%c8, %c0_22] : memref<9x32xf32, #tpu.memory_space<vmem>>, vector<1x32xf32>
    %59 = vector.shape_cast %58 : vector<1x32xf32> to vector<1x1x32xf32>
    %60 = vector.broadcast %59 : vector<1x1x32xf32> to vector<8x8x32xf32>
    %61 = arith.mulf %57, %60 : vector<8x8x32xf32>
    %62 = arith.addf %56, %61 : vector<8x8x32xf32>
    %cst = arith.constant 5.000000e-01 : f32
    %63 = vector.broadcast %cst : f32 to vector<8x8x32xf32>
    %64 = arith.mulf %63, %62 : vector<8x8x32xf32>
    %65 = math.tanh %64 : vector<8x8x32xf32>
    %cst_23 = arith.constant 5.000000e-01 : f32
    %66 = vector.broadcast %cst_23 : f32 to vector<8x8x32xf32>
    %67 = arith.mulf %66, %65 : vector<8x8x32xf32>
    %cst_24 = arith.constant 5.000000e-01 : f32
    %68 = vector.broadcast %cst_24 : f32 to vector<8x8x32xf32>
    %69 = arith.addf %67, %68 : vector<8x8x32xf32>
    %70 = arith.mulf %62, %69 : vector<8x8x32xf32>
    %c0_25 = arith.constant 0 : index
    %c0_26 = arith.constant 0 : index
    %c0_27 = arith.constant 0 : index
    %c0_28 = arith.constant 0 : index
    %71 = vector.load %arg4[%c0_25, %c0_26, %c0_27, %c0_28] : memref<1x8x8x32xf32, #tpu.memory_space<vmem>>, vector<1x8x8x32xf32>
    %72 = vector.shape_cast %71 : vector<1x8x8x32xf32> to vector<8x8x32xf32>
    %73 = vector.shape_cast %70 : vector<8x8x32xf32> to vector<1x8x8x32xf32>
    tpu.vector_store %arg4[%c0_25, %c0_26, %c0_27, %c0_28], %73 {strides = array<i32>} : memref<1x8x8x32xf32, #tpu.memory_space<vmem>>, vector<1x8x8x32xf32>,
    return
  }
  func.func @transform_0(%arg0: i32) -> (i32, i32, i32, i32) {
    %c0_i32 = arith.constant 0 : i32
    %c0_i32_0 = arith.constant 0 : i32
    %c0_i32_1 = arith.constant 0 : i32
    %c0_i32_2 = arith.constant 0 : i32
    return %arg0, %c0_i32, %c0_i32_0, %c0_i32_1 : i32, i32, i32, i32
  }
  func.func @transform_1(%arg0: i32) -> (i32, i32) {
    %c0_i32 = arith.constant 0 : i32
    %c0_i32_0 = arith.constant 0 : i32
    %c0_i32_1 = arith.constant 0 : i32
    return %c0_i32, %c0_i32_0 : i32, i32
  }
  func.func @transform_2(%arg0: i32) -> (i32, i32) {
    %c0_i32 = arith.constant 0 : i32
    %c0_i32_0 = arith.constant 0 : i32
    %c0_i32_1 = arith.constant 0 : i32
    return %c0_i32, %c0_i32_0 : i32, i32
  }
  func.func @transform_3(%arg0: i32) -> (i32, i32, i32, i32) {
    %c0_i32 = arith.constant 0 : i32
    %c0_i32_0 = arith.constant 0 : i32
    %c0_i32_1 = arith.constant 0 : i32
    %c0_i32_2 = arith.constant 0 : i32
    return %arg0, %c0_i32, %c0_i32_0, %c0_i32_1 : i32, i32, i32, i32
  }
}

module attributes {stable_mosaic.version = 11 : i64} {
  func.func @_matmul_kernel(%arg0: i32, %arg1: memref<128x32xf32, #tpu.memory_space<vmem>>, %arg2: memref<32x256xbf16, #tpu.memory_space<vmem>>, %arg3: memref<128x256xf32, #tpu.memory_space<vmem>>) attributes {dimension_semantics = [#tpu.dimension_semantics<parallel>], iteration_bounds = array<i64: 2>, scalar_prefetch = 0 : i64, scratch_operands = 0 : i64, tpu.core_type = #tpu.core_type<tc>, window_params = [{transform_indices = @transform_0, window_bounds = array<i64: 128, 32>}, {pipeline_mode = #tpu.pipeline_mode<synchronous>, transform_indices = @transform_1, window_bounds = array<i64: 32, 256>}, {transform_indices = @transform_2, window_bounds = array<i64: 128, 256>}]} {
    %c0 = arith.constant 0 : index
    %c0_0 = arith.constant 0 : index
    %0 = vector.load %arg1[%c0, %c0_0] : memref<128x32xf32, #tpu.memory_space<vmem>>, vector<128x32xf32>
    %1 = arith.truncf %0 : vector<128x32xf32> to vector<128x32xbf16>
    %c0_1 = arith.constant 0 : index
    %c0_2 = arith.constant 0 : index
    %2 = vector.load %arg2[%c0_1, %c0_2] : memref<32x256xbf16, #tpu.memory_space<vmem>>, vector<32x256xbf16>
    %cst = arith.constant dense<0.000000e+00> : vector<128x256xf32>
    %3 = tpu.matmul %1, %2, %cst {dimension_numbers = #tpu.dot_dimension_numbers<[1], [0], [0], [1], [0, 0, 1, 1], [], []>} : vector<128x32xbf16>, vector<32x256xbf16>, vector<128x256xf32> -> vector<128x256xf32>
    %c0_3 = arith.constant 0 : index
    %c0_4 = arith.constant 0 : index
    %4 = vector.load %arg3[%c0_3, %c0_4] : memref<128x256xf32, #tpu.memory_space<vmem>>, vector<128x256xf32>
    tpu.vector_store %arg3[%c0_3, %c0_4], %3 {strides = array<i32>} : memref<128x256xf32, #tpu.memory_space<vmem>>, vector<128x256xf32>,
    return
  }
  func.func @transform_0(%arg0: i32) -> (i32, i32) {
    %c0_i32 = arith.constant 0 : i32
    %c0_i32_0 = arith.constant 0 : i32
    return %arg0, %c0_i32 : i32, i32
  }
  func.func @transform_1(%arg0: i32) -> (i32, i32) {
    %c0_i32 = arith.constant 0 : i32
    %c0_i32_0 = arith.constant 0 : i32
    %c0_i32_1 = arith.constant 0 : i32
    return %c0_i32, %c0_i32_0 : i32, i32
  }
  func.func @transform_2(%arg0: i32) -> (i32, i32) {
    %c0_i32 = arith.constant 0 : i32
    %c0_i32_0 = arith.constant 0 : i32
    return %arg0, %c0_i32 : i32, i32
  }
}

module attributes {stable_mosaic.version = 11 : i64} {
  func.func @_selective_scan_kernel(%arg0: i32, %arg1: i32, %arg2: memref<1x64x128xf32, #tpu.memory_space<vmem>>, %arg3: memref<1x64x128xf32, #tpu.memory_space<vmem>>, %arg4: memref<16x128xf32, #tpu.memory_space<vmem>>, %arg5: memref<1x64x16x4xf32, #tpu.memory_space<vmem>>, %arg6: memref<1x64x16x4xf32, #tpu.memory_space<vmem>>, %arg7: memref<1x128xf32, #tpu.memory_space<vmem>>, %arg8: memref<1x128xf32, #tpu.memory_space<vmem>>, %arg9: memref<1x64x128xf32, #tpu.memory_space<vmem>>, %arg10: memref<16x128xf32, #tpu.memory_space<vmem>>) attributes {dimension_semantics = [#tpu.dimension_semantics<parallel>, #tpu.dimension_semantics<arbitrary>], iteration_bounds = array<i64: 4, 1>, scalar_prefetch = 0 : i64, scratch_operands = 1 : i64, tpu.core_type = #tpu.core_type<tc>, window_params = [{transform_indices = @transform_0, window_bounds = array<i64: 1, 64, 128>}, {transform_indices = @transform_1, window_bounds = array<i64: 1, 64, 128>}, {pipeline_mode = #tpu.pipeline_mode<synchronous>, transform_indices = @transform_2, window_bounds = array<i64: 16, 128>}, {transform_indices = @transform_3, window_bounds = array<i64: 1, 64, 16, 4>}, {transform_indices = @transform_4, window_bounds = array<i64: 1, 64, 16, 4>}, {pipeline_mode = #tpu.pipeline_mode<synchronous>, transform_indices = @transform_5, window_bounds = array<i64: 1, 128>}, {pipeline_mode = #tpu.pipeline_mode<synchronous>, transform_indices = @transform_6, window_bounds = array<i64: 1, 128>}, {transform_indices = @transform_7, window_bounds = array<i64: 1, 64, 128>}]} {
    %c0_i32 = arith.constant 0 : i32
    %0 = arith.cmpi eq, %arg1, %c0_i32 : i32
    %1 = arith.extui %0 : i1 to i32
    %c0_i32_0 = arith.constant 0 : i32
    %2 = arith.cmpi ne, %1, %c0_i32_0 : i32
    scf.if %2 {
      %cst = arith.constant 0.000000e+00 : f32
      %10 = vector.broadcast %cst : f32 to vector<16x128xf32>
      %c0_12 = arith.constant 0 : index
      %c0_13 = arith.constant 0 : index
      %11 = vector.load %arg10[%c0_12, %c0_13] : memref<16x128xf32, #tpu.memory_space<vmem>>, vector<16x128xf32>
      tpu.vector_store %arg10[%c0_12, %c0_13], %10 {strides = array<i32>} : memref<16x128xf32, #tpu.memory_space<vmem>>, vector<16x128xf32>,
    } else {
    }
    %c0 = arith.constant 0 : index
    %c0_1 = arith.constant 0 : index
    %3 = vector.load %arg4[%c0, %c0_1] : memref<16x128xf32, #tpu.memory_space<vmem>>, vector<16x128xf32>
    %c0_2 = arith.constant 0 : index
    %c0_3 = arith.constant 0 : index
    %4 = vector.load %arg7[%c0_2, %c0_3] : memref<1x128xf32, #tpu.memory_space<vmem>>, vector<1x128xf32>
    %c0_4 = arith.constant 0 : index
    %c0_5 = arith.constant 0 : index
    %5 = vector.load %arg8[%c0_4, %c0_5] : memref<1x128xf32, #tpu.memory_space<vmem>>, vector<1x128xf32>
    %c0_6 = arith.constant 0 : index
    %c0_7 = arith.constant 0 : index
    %6 = vector.load %arg10[%c0_6, %c0_7] : memref<16x128xf32, #tpu.memory_space<vmem>>, vector<16x128xf32>
    %c0_i32_8 = arith.constant 0 : i32
    %c8_i32 = arith.constant 8 : i32
    %7 = arith.addi %c0_i32_8, %c8_i32 : i32
    %c1_i32 = arith.constant 1 : i32
    %8 = scf.for %arg11 = %c0_i32_8 to %7 step %c1_i32 iter_args(%arg12 = %6) -> (vector<16x128xf32>)  : i32 {
      %c8_i32_12 = arith.constant 8 : i32
      %10 = arith.muli %arg11, %c8_i32_12 : i32
      %11 = tpu.assume_multiple %10, 8 : i32
      %c0_13 = arith.constant 0 : index
      %12 = arith.index_cast %11 : i32 to index
      %c0_14 = arith.constant 0 : index
      %13 = vector.load %arg2[%c0_13, %12, %c0_14] : memref<1x64x128xf32, #tpu.memory_space<vmem>>, vector<1x8x128xf32>
      %14 = vector.shape_cast %13 : vector<1x8x128xf32> to vector<8x128xf32>
      %c0_15 = arith.constant 0 : index
      %15 = arith.index_cast %11 : i32 to index
      %c0_16 = arith.constant 0 : index
      %16 = vector.load %arg3[%c0_15, %15, %c0_16] : memref<1x64x128xf32, #tpu.memory_space<vmem>>, vector<1x8x128xf32>
      %17 = vector.shape_cast %16 : vector<1x8x128xf32> to vector<8x128xf32>
      %18 = vector.broadcast %5 : vector<1x128xf32> to vector<8x128xf32>
      %19 = arith.addf %17, %18 : vector<8x128xf32>
      %cst = arith.constant 0.000000e+00 : f32
      %20 = vector.broadcast %cst : f32 to vector<8x128xf32>
      %21 = arith.maximumf %19, %20 : vector<8x128xf32>
      %22 = math.absf %19 : vector<8x128xf32>
      %cst_17 = arith.constant 0.000000e+00 : f32
      %23 = vector.broadcast %cst_17 : f32 to vector<8x128xf32>
      %24 = arith.subf %23, %22 : vector<8x128xf32>
      %25 = math.exp %24 : vector<8x128xf32>
      %26 = math.log1p %25 : vector<8x128xf32>
      %27 = arith.addf %21, %26 : vector<8x128xf32>
      %28 = arith.mulf %27, %14 : vector<8x128xf32>
      %c0_18 = arith.constant 0 : index
      %29 = arith.index_cast %11 : i32 to index
      %c0_19 = arith.constant 0 : index
      %c0_20 = arith.constant 0 : index
      %30 = vector.load %arg5[%c0_18, %29, %c0_19, %c0_20] : memref<1x64x16x4xf32, #tpu.memory_space<vmem>>, vector<1x8x16x4xf32>
      %31 = vector.shape_cast %30 : vector<1x8x16x4xf32> to vector<8x16x4xf32>
      %c0_21 = arith.constant 0 : index
      %32 = arith.index_cast %11 : i32 to index
      %c0_22 = arith.constant 0 : index
      %c0_23 = arith.constant 0 : index
      %33 = vector.load %arg6[%c0_21, %32, %c0_22, %c0_23] : memref<1x64x16x4xf32, #tpu.memory_space<vmem>>, vector<1x8x16x4xf32>
      %34 = vector.shape_cast %33 : vector<1x8x16x4xf32> to vector<8x16x4xf32>
      %35 = vector.extract_strided_slice %31 {offsets = [0, 0, 0], sizes = [8, 16, 1], strides = [1, 1, 1]} : vector<8x16x4xf32> to vector<8x16x1xf32>
      %36 = vector.shape_cast %35 : vector<8x16x1xf32> to vector<8x16x1xf32>
      %37 = vector.broadcast %36 : vector<8x16x1xf32> to vector<8x16x32xf32>
      %38 = vector.extract_strided_slice %31 {offsets = [0, 0, 1], sizes = [8, 16, 1], strides = [1, 1, 1]} : vector<8x16x4xf32> to vector<8x16x1xf32>
      %39 = vector.shape_cast %38 : vector<8x16x1xf32> to vector<8x16x1xf32>
      %40 = vector.broadcast %39 : vector<8x16x1xf32> to vector<8x16x32xf32>
      %41 = vector.extract_strided_slice %31 {offsets = [0, 0, 2], sizes = [8, 16, 1], strides = [1, 1, 1]} : vector<8x16x4xf32> to vector<8x16x1xf32>
      %42 = vector.shape_cast %41 : vector<8x16x1xf32> to vector<8x16x1xf32>
      %43 = vector.broadcast %42 : vector<8x16x1xf32> to vector<8x16x32xf32>
      %44 = vector.extract_strided_slice %31 {offsets = [0, 0, 3], sizes = [8, 16, 1], strides = [1, 1, 1]} : vector<8x16x4xf32> to vector<8x16x1xf32>
      %45 = vector.shape_cast %44 : vector<8x16x1xf32> to vector<8x16x1xf32>
      %46 = vector.broadcast %45 : vector<8x16x1xf32> to vector<8x16x32xf32>
      %47 = tpu.concatenate %37, %40, %43, %46 in 2 : vector<8x16x32xf32>, vector<8x16x32xf32>, vector<8x16x32xf32>, vector<8x16x32xf32> -> vector<8x16x128xf32>
      %48 = vector.extract_strided_slice %34 {offsets = [0, 0, 0], sizes = [8, 16, 1], strides = [1, 1, 1]} : vector<8x16x4xf32> to vector<8x16x1xf32>
      %49 = vector.shape_cast %48 : vector<8x16x1xf32> to vector<8x16x1xf32>
      %50 = vector.broadcast %49 : vector<8x16x1xf32> to vector<8x16x32xf32>
      %51 = vector.extract_strided_slice %34 {offsets = [0, 0, 1], sizes = [8, 16, 1], strides = [1, 1, 1]} : vector<8x16x4xf32> to vector<8x16x1xf32>
      %52 = vector.shape_cast %51 : vector<8x16x1xf32> to vector<8x16x1xf32>
      %53 = vector.broadcast %52 : vector<8x16x1xf32> to vector<8x16x32xf32>
      %54 = vector.extract_strided_slice %34 {offsets = [0, 0, 2], sizes = [8, 16, 1], strides = [1, 1, 1]} : vector<8x16x4xf32> to vector<8x16x1xf32>
      %55 = vector.shape_cast %54 : vector<8x16x1xf32> to vector<8x16x1xf32>
      %56 = vector.broadcast %55 : vector<8x16x1xf32> to vector<8x16x32xf32>
      %57 = vector.extract_strided_slice %34 {offsets = [0, 0, 3], sizes = [8, 16, 1], strides = [1, 1, 1]} : vector<8x16x4xf32> to vector<8x16x1xf32>
      %58 = vector.shape_cast %57 : vector<8x16x1xf32> to vector<8x16x1xf32>
      %59 = vector.broadcast %58 : vector<8x16x1xf32> to vector<8x16x32xf32>
      %60 = tpu.concatenate %50, %53, %56, %59 in 2 : vector<8x16x32xf32>, vector<8x16x32xf32>, vector<8x16x32xf32>, vector<8x16x32xf32> -> vector<8x16x128xf32>
      %61 = vector.extract_strided_slice %27 {offsets = [0, 0], sizes = [1, 128], strides = [1, 1]} : vector<8x128xf32> to vector<1x128xf32>
      %62 = vector.broadcast %61 : vector<1x128xf32> to vector<16x128xf32>
      %63 = arith.mulf %62, %3 : vector<16x128xf32>
      %64 = math.exp %63 : vector<16x128xf32>
      %65 = arith.mulf %64, %arg12 : vector<16x128xf32>
      %66 = vector.extract_strided_slice %28 {offsets = [0, 0], sizes = [1, 128], strides = [1, 1]} : vector<8x128xf32> to vector<1x128xf32>
      %67 = vector.extract_strided_slice %47 {offsets = [0, 0, 0], sizes = [1, 16, 128], strides = [1, 1, 1]} : vector<8x16x128xf32> to vector<1x16x128xf32>
      %68 = vector.shape_cast %67 : vector<1x16x128xf32> to vector<16x128xf32>
      %69 = vector.broadcast %66 : vector<1x128xf32> to vector<16x128xf32>
      %70 = arith.mulf %69, %68 : vector<16x128xf32>
      %71 = arith.addf %65, %70 : vector<16x128xf32>
      %72 = vector.extract_strided_slice %60 {offsets = [0, 0, 0], sizes = [1, 16, 128], strides = [1, 1, 1]} : vector<8x16x128xf32> to vector<1x16x128xf32>
      %73 = vector.shape_cast %72 : vector<1x16x128xf32> to vector<16x128xf32>
      %74 = arith.mulf %71, %73 : vector<16x128xf32>
      %cst_24 = arith.constant dense<0.000000e+00> : vector<128xf32>
      %75 = vector.multi_reduction <add>, %74, %cst_24 [0] : vector<16x128xf32> to vector<128xf32>
      %76 = vector.shape_cast %75 : vector<128xf32> to vector<1x128xf32>
      %77 = vector.extract_strided_slice %27 {offsets = [1, 0], sizes = [1, 128], strides = [1, 1]} : vector<8x128xf32> to vector<1x128xf32>
      %78 = vector.broadcast %77 : vector<1x128xf32> to vector<16x128xf32>
      %79 = arith.mulf %78, %3 : vector<16x128xf32>
      %80 = math.exp %79 : vector<16x128xf32>
      %81 = arith.mulf %80, %71 : vector<16x128xf32>
      %82 = vector.extract_strided_slice %28 {offsets = [1, 0], sizes = [1, 128], strides = [1, 1]} : vector<8x128xf32> to vector<1x128xf32>
      %83 = vector.extract_strided_slice %47 {offsets = [1, 0, 0], sizes = [1, 16, 128], strides = [1, 1, 1]} : vector<8x16x128xf32> to vector<1x16x128xf32>
      %84 = vector.shape_cast %83 : vector<1x16x128xf32> to vector<16x128xf32>
      %85 = vector.broadcast %82 : vector<1x128xf32> to vector<16x128xf32>
      %86 = arith.mulf %85, %84 : vector<16x128xf32>
      %87 = arith.addf %81, %86 : vector<16x128xf32>
      %88 = vector.extract_strided_slice %60 {offsets = [1, 0, 0], sizes = [1, 16, 128], strides = [1, 1, 1]} : vector<8x16x128xf32> to vector<1x16x128xf32>
      %89 = vector.shape_cast %88 : vector<1x16x128xf32> to vector<16x128xf32>
      %90 = arith.mulf %87, %89 : vector<16x128xf32>
      %cst_25 = arith.constant dense<0.000000e+00> : vector<128xf32>
      %91 = vector.multi_reduction <add>, %90, %cst_25 [0] : vector<16x128xf32> to vector<128xf32>
      %92 = vector.shape_cast %91 : vector<128xf32> to vector<1x128xf32>
      %93 = vector.extract_strided_slice %27 {offsets = [2, 0], sizes = [1, 128], strides = [1, 1]} : vector<8x128xf32> to vector<1x128xf32>
      %94 = vector.broadcast %93 : vector<1x128xf32> to vector<16x128xf32>
      %95 = arith.mulf %94, %3 : vector<16x128xf32>
      %96 = math.exp %95 : vector<16x128xf32>
      %97 = arith.mulf %96, %87 : vector<16x128xf32>
      %98 = vector.extract_strided_slice %28 {offsets = [2, 0], sizes = [1, 128], strides = [1, 1]} : vector<8x128xf32> to vector<1x128xf32>
      %99 = vector.extract_strided_slice %47 {offsets = [2, 0, 0], sizes = [1, 16, 128], strides = [1, 1, 1]} : vector<8x16x128xf32> to vector<1x16x128xf32>
      %100 = vector.shape_cast %99 : vector<1x16x128xf32> to vector<16x128xf32>
      %101 = vector.broadcast %98 : vector<1x128xf32> to vector<16x128xf32>
      %102 = arith.mulf %101, %100 : vector<16x128xf32>
      %103 = arith.addf %97, %102 : vector<16x128xf32>
      %104 = vector.extract_strided_slice %60 {offsets = [2, 0, 0], sizes = [1, 16, 128], strides = [1, 1, 1]} : vector<8x16x128xf32> to vector<1x16x128xf32>
      %105 = vector.shape_cast %104 : vector<1x16x128xf32> to vector<16x128xf32>
      %106 = arith.mulf %103, %105 : vector<16x128xf32>
      %cst_26 = arith.constant dense<0.000000e+00> : vector<128xf32>
      %107 = vector.multi_reduction <add>, %106, %cst_26 [0] : vector<16x128xf32> to vector<128xf32>
      %108 = vector.shape_cast %107 : vector<128xf32> to vector<1x128xf32>
      %109 = vector.extract_strided_slice %27 {offsets = [3, 0], sizes = [1, 128], strides = [1, 1]} : vector<8x128xf32> to vector<1x128xf32>
      %110 = vector.broadcast %109 : vector<1x128xf32> to vector<16x128xf32>
      %111 = arith.mulf %110, %3 : vector<16x128xf32>
      %112 = math.exp %111 : vector<16x128xf32>
      %113 = arith.mulf %112, %103 : vector<16x128xf32>
      %114 = vector.extract_strided_slice %28 {offsets = [3, 0], sizes = [1, 128], strides = [1, 1]} : vector<8x128xf32> to vector<1x128xf32>
      %115 = vector.extract_strided_slice %47 {offsets = [3, 0, 0], sizes = [1, 16, 128], strides = [1, 1, 1]} : vector<8x16x128xf32> to vector<1x16x128xf32>
      %116 = vector.shape_cast %115 : vector<1x16x128xf32> to vector<16x128xf32>
      %117 = vector.broadcast %114 : vector<1x128xf32> to vector<16x128xf32>
      %118 = arith.mulf %117, %116 : vector<16x128xf32>
      %119 = arith.addf %113, %118 : vector<16x128xf32>
      %120 = vector.extract_strided_slice %60 {offsets = [3, 0, 0], sizes = [1, 16, 128], strides = [1, 1, 1]} : vector<8x16x128xf32> to vector<1x16x128xf32>
      %121 = vector.shape_cast %120 : vector<1x16x128xf32> to vector<16x128xf32>
      %122 = arith.mulf %119, %121 : vector<16x128xf32>
      %cst_27 = arith.constant dense<0.000000e+00> : vector<128xf32>
      %123 = vector.multi_reduction <add>, %122, %cst_27 [0] : vector<16x128xf32> to vector<128xf32>
      %124 = vector.shape_cast %123 : vector<128xf32> to vector<1x128xf32>
      %125 = vector.extract_strided_slice %27 {offsets = [4, 0], sizes = [1, 128], strides = [1, 1]} : vector<8x128xf32> to vector<1x128xf32>
      %126 = vector.broadcast %125 : vector<1x128xf32> to vector<16x128xf32>
      %127 = arith.mulf %126, %3 : vector<16x128xf32>
      %128 = math.exp %127 : vector<16x128xf32>
      %129 = arith.mulf %128, %119 : vector<16x128xf32>
      %130 = vector.extract_strided_slice %28 {offsets = [4, 0], sizes = [1, 128], strides = [1, 1]} : vector<8x128xf32> to vector<1x128xf32>
      %131 = vector.extract_strided_slice %47 {offsets = [4, 0, 0], sizes = [1, 16, 128], strides = [1, 1, 1]} : vector<8x16x128xf32> to vector<1x16x128xf32>
      %132 = vector.shape_cast %131 : vector<1x16x128xf32> to vector<16x128xf32>
      %133 = vector.broadcast %130 : vector<1x128xf32> to vector<16x128xf32>
      %134 = arith.mulf %133, %132 : vector<16x128xf32>
      %135 = arith.addf %129, %134 : vector<16x128xf32>
      %136 = vector.extract_strided_slice %60 {offsets = [4, 0, 0], sizes = [1, 16, 128], strides = [1, 1, 1]} : vector<8x16x128xf32> to vector<1x16x128xf32>
      %137 = vector.shape_cast %136 : vector<1x16x128xf32> to vector<16x128xf32>
      %138 = arith.mulf %135, %137 : vector<16x128xf32>
      %cst_28 = arith.constant dense<0.000000e+00> : vector<128xf32>
      %139 = vector.multi_reduction <add>, %138, %cst_28 [0] : vector<16x128xf32> to vector<128xf32>
      %140 = vector.shape_cast %139 : vector<128xf32> to vector<1x128xf32>
      %141 = vector.extract_strided_slice %27 {offsets = [5, 0], sizes = [1, 128], strides = [1, 1]} : vector<8x128xf32> to vector<1x128xf32>
      %142 = vector.broadcast %141 : vector<1x128xf32> to vector<16x128xf32>
      %143 = arith.mulf %142, %3 : vector<16x128xf32>
      %144 = math.exp %143 : vector<16x128xf32>
      %145 = arith.mulf %144, %135 : vector<16x128xf32>
      %146 = vector.extract_strided_slice %28 {offsets = [5, 0], sizes = [1, 128], strides = [1, 1]} : vector<8x128xf32> to vector<1x128xf32>
      %147 = vector.extract_strided_slice %47 {offsets = [5, 0, 0], sizes = [1, 16, 128], strides = [1, 1, 1]} : vector<8x16x128xf32> to vector<1x16x128xf32>
      %148 = vector.shape_cast %147 : vector<1x16x128xf32> to vector<16x128xf32>
      %149 = vector.broadcast %146 : vector<1x128xf32> to vector<16x128xf32>
      %150 = arith.mulf %149, %148 : vector<16x128xf32>
      %151 = arith.addf %145, %150 : vector<16x128xf32>
      %152 = vector.extract_strided_slice %60 {offsets = [5, 0, 0], sizes = [1, 16, 128], strides = [1, 1, 1]} : vector<8x16x128xf32> to vector<1x16x128xf32>
      %153 = vector.shape_cast %152 : vector<1x16x128xf32> to vector<16x128xf32>
      %154 = arith.mulf %151, %153 : vector<16x128xf32>
      %cst_29 = arith.constant dense<0.000000e+00> : vector<128xf32>
      %155 = vector.multi_reduction <add>, %154, %cst_29 [0] : vector<16x128xf32> to vector<128xf32>
      %156 = vector.shape_cast %155 : vector<128xf32> to vector<1x128xf32>
      %157 = vector.extract_strided_slice %27 {offsets = [6, 0], sizes = [1, 128], strides = [1, 1]} : vector<8x128xf32> to vector<1x128xf32>
      %158 = vector.broadcast %157 : vector<1x128xf32> to vector<16x128xf32>
      %159 = arith.mulf %158, %3 : vector<16x128xf32>
      %160 = math.exp %159 : vector<16x128xf32>
      %161 = arith.mulf %160, %151 : vector<16x128xf32>
      %162 = vector.extract_strided_slice %28 {offsets = [6, 0], sizes = [1, 128], strides = [1, 1]} : vector<8x128xf32> to vector<1x128xf32>
      %163 = vector.extract_strided_slice %47 {offsets = [6, 0, 0], sizes = [1, 16, 128], strides = [1, 1, 1]} : vector<8x16x128xf32> to vector<1x16x128xf32>
      %164 = vector.shape_cast %163 : vector<1x16x128xf32> to vector<16x128xf32>
      %165 = vector.broadcast %162 : vector<1x128xf32> to vector<16x128xf32>
      %166 = arith.mulf %165, %164 : vector<16x128xf32>
      %167 = arith.addf %161, %166 : vector<16x128xf32>
      %168 = vector.extract_strided_slice %60 {offsets = [6, 0, 0], sizes = [1, 16, 128], strides = [1, 1, 1]} : vector<8x16x128xf32> to vector<1x16x128xf32>
      %169 = vector.shape_cast %168 : vector<1x16x128xf32> to vector<16x128xf32>
      %170 = arith.mulf %167, %169 : vector<16x128xf32>
      %cst_30 = arith.constant dense<0.000000e+00> : vector<128xf32>
      %171 = vector.multi_reduction <add>, %170, %cst_30 [0] : vector<16x128xf32> to vector<128xf32>
      %172 = vector.shape_cast %171 : vector<128xf32> to vector<1x128xf32>
      %173 = vector.extract_strided_slice %27 {offsets = [7, 0], sizes = [1, 128], strides = [1, 1]} : vector<8x128xf32> to vector<1x128xf32>
      %174 = vector.broadcast %173 : vector<1x128xf32> to vector<16x128xf32>
      %175 = arith.mulf %174, %3 : vector<16x128xf32>
      %176 = math.exp %175 : vector<16x128xf32>
      %177 = arith.mulf %176, %167 : vector<16x128xf32>
      %178 = vector.extract_strided_slice %28 {offsets = [7, 0], sizes = [1, 128], strides = [1, 1]} : vector<8x128xf32> to vector<1x128xf32>
      %179 = vector.extract_strided_slice %47 {offsets = [7, 0, 0], sizes = [1, 16, 128], strides = [1, 1, 1]} : vector<8x16x128xf32> to vector<1x16x128xf32>
      %180 = vector.shape_cast %179 : vector<1x16x128xf32> to vector<16x128xf32>
      %181 = vector.broadcast %178 : vector<1x128xf32> to vector<16x128xf32>
      %182 = arith.mulf %181, %180 : vector<16x128xf32>
      %183 = arith.addf %177, %182 : vector<16x128xf32>
      %184 = vector.extract_strided_slice %60 {offsets = [7, 0, 0], sizes = [1, 16, 128], strides = [1, 1, 1]} : vector<8x16x128xf32> to vector<1x16x128xf32>
      %185 = vector.shape_cast %184 : vector<1x16x128xf32> to vector<16x128xf32>
      %186 = arith.mulf %183, %185 : vector<16x128xf32>
      %cst_31 = arith.constant dense<0.000000e+00> : vector<128xf32>
      %187 = vector.multi_reduction <add>, %186, %cst_31 [0] : vector<16x128xf32> to vector<128xf32>
      %188 = vector.shape_cast %187 : vector<128xf32> to vector<1x128xf32>
      %189 = tpu.concatenate %76, %92, %108, %124, %140, %156, %172, %188 in 0 : vector<1x128xf32>, vector<1x128xf32>, vector<1x128xf32>, vector<1x128xf32>, vector<1x128xf32>, vector<1x128xf32>, vector<1x128xf32>, vector<1x128xf32> -> vector<8x128xf32>
      %190 = vector.broadcast %4 : vector<1x128xf32> to vector<8x128xf32>
      %191 = arith.mulf %190, %14 : vector<8x128xf32>
      %192 = arith.addf %189, %191 : vector<8x128xf32>
      %c0_32 = arith.constant 0 : index
      %193 = arith.index_cast %11 : i32 to index
      %c0_33 = arith.constant 0 : index
      %194 = vector.load %arg9[%c0_32, %193, %c0_33] : memref<1x64x128xf32, #tpu.memory_space<vmem>>, vector<1x8x128xf32>
      %195 = vector.shape_cast %194 : vector<1x8x128xf32> to vector<8x128xf32>
      %196 = vector.shape_cast %192 : vector<8x128xf32> to vector<1x8x128xf32>
      tpu.vector_store %arg9[%c0_32, %193, %c0_33], %196 {strides = array<i32>} : memref<1x64x128xf32, #tpu.memory_space<vmem>>, vector<1x8x128xf32>,
      scf.yield %183 : vector<16x128xf32>
    }
    %c8_i32_9 = arith.constant 8 : i32
    %c0_10 = arith.constant 0 : index
    %c0_11 = arith.constant 0 : index
    %9 = vector.load %arg10[%c0_10, %c0_11] : memref<16x128xf32, #tpu.memory_space<vmem>>, vector<16x128xf32>
    tpu.vector_store %arg10[%c0_10, %c0_11], %8 {strides = array<i32>} : memref<16x128xf32, #tpu.memory_space<vmem>>, vector<16x128xf32>,
    return
  }
  func.func @transform_0(%arg0: i32, %arg1: i32) -> (i32, i32, i32) {
    %c0_i32 = arith.constant 0 : i32
    %c0_i32_0 = arith.constant 0 : i32
    return %arg0, %arg1, %c0_i32 : i32, i32, i32
  }
  func.func @transform_1(%arg0: i32, %arg1: i32) -> (i32, i32, i32) {
    %c0_i32 = arith.constant 0 : i32
    %c0_i32_0 = arith.constant 0 : i32
    return %arg0, %arg1, %c0_i32 : i32, i32, i32
  }
  func.func @transform_2(%arg0: i32, %arg1: i32) -> (i32, i32) {
    %c0_i32 = arith.constant 0 : i32
    %c0_i32_0 = arith.constant 0 : i32
    %c0_i32_1 = arith.constant 0 : i32
    return %c0_i32, %c0_i32_0 : i32, i32
  }
  func.func @transform_3(%arg0: i32, %arg1: i32) -> (i32, i32, i32, i32) {
    %c0_i32 = arith.constant 0 : i32
    %c0_i32_0 = arith.constant 0 : i32
    %c0_i32_1 = arith.constant 0 : i32
    return %arg0, %arg1, %c0_i32, %c0_i32_0 : i32, i32, i32, i32
  }
  func.func @transform_4(%arg0: i32, %arg1: i32) -> (i32, i32, i32, i32) {
    %c0_i32 = arith.constant 0 : i32
    %c0_i32_0 = arith.constant 0 : i32
    %c0_i32_1 = arith.constant 0 : i32
    return %arg0, %arg1, %c0_i32, %c0_i32_0 : i32, i32, i32, i32
  }
  func.func @transform_5(%arg0: i32, %arg1: i32) -> (i32, i32) {
    %c0_i32 = arith.constant 0 : i32
    %c0_i32_0 = arith.constant 0 : i32
    %c0_i32_1 = arith.constant 0 : i32
    return %c0_i32, %c0_i32_0 : i32, i32
  }
  func.func @transform_6(%arg0: i32, %arg1: i32) -> (i32, i32) {
    %c0_i32 = arith.constant 0 : i32
    %c0_i32_0 = arith.constant 0 : i32
    %c0_i32_1 = arith.constant 0 : i32
    return %c0_i32, %c0_i32_0 : i32, i32
  }
  func.func @transform_7(%arg0: i32, %arg1: i32) -> (i32, i32, i32) {
    %c0_i32 = arith.constant 0 : i32
    %c0_i32_0 = arith.constant 0 : i32
    return %arg0, %arg1, %c0_i32 : i32, i32, i32
  }
}

module attributes {stable_mosaic.version = 11 : i64} {
  func.func @_ln_gate_proj_kernel(%arg0: i32, %arg1: memref<128x32xf32, #tpu.memory_space<vmem>>, %arg2: memref<1x32xf32, #tpu.memory_space<vmem>>, %arg3: memref<1x32xf32, #tpu.memory_space<vmem>>, %arg4: memref<128x32xf32, #tpu.memory_space<vmem>>, %arg5: memref<32x16xbf16, #tpu.memory_space<vmem>>, %arg6: memref<128x16xf32, #tpu.memory_space<vmem>>, %arg7: memref<128x16xf32, #tpu.memory_space<vmem>>) attributes {dimension_semantics = [#tpu.dimension_semantics<parallel>], iteration_bounds = array<i64: 2>, scalar_prefetch = 0 : i64, scratch_operands = 0 : i64, tpu.core_type = #tpu.core_type<tc>, window_params = [{transform_indices = @transform_0, window_bounds = array<i64: 128, 32>}, {pipeline_mode = #tpu.pipeline_mode<synchronous>, transform_indices = @transform_1, window_bounds = array<i64: 1, 32>}, {pipeline_mode = #tpu.pipeline_mode<synchronous>, transform_indices = @transform_2, window_bounds = array<i64: 1, 32>}, {transform_indices = @transform_3, window_bounds = array<i64: 128, 32>}, {pipeline_mode = #tpu.pipeline_mode<synchronous>, transform_indices = @transform_4, window_bounds = array<i64: 32, 16>}, {transform_indices = @transform_5, window_bounds = array<i64: 128, 16>}, {transform_indices = @transform_6, window_bounds = array<i64: 128, 16>}]} {
    %c0 = arith.constant 0 : index
    %c0_0 = arith.constant 0 : index
    %0 = vector.load %arg1[%c0, %c0_0] : memref<128x32xf32, #tpu.memory_space<vmem>>, vector<128x32xf32>
    %cst = arith.constant dense<0.000000e+00> : vector<128xf32>
    %1 = vector.multi_reduction <add>, %0, %cst [1] : vector<128x32xf32> to vector<128xf32>
    %2 = vector.shape_cast %1 : vector<128xf32> to vector<128x1xf32>
    %cst_1 = arith.constant 3.200000e+01 : f32
    %3 = vector.broadcast %cst_1 : f32 to vector<128x1xf32>
    %4 = arith.divf %2, %3 : vector<128x1xf32>
    %5 = vector.broadcast %4 : vector<128x1xf32> to vector<128x32xf32>
    %6 = arith.subf %0, %5 : vector<128x32xf32>
    %7 = arith.mulf %6, %6 : vector<128x32xf32>
    %cst_2 = arith.constant dense<0.000000e+00> : vector<128xf32>
    %8 = vector.multi_reduction <add>, %7, %cst_2 [1] : vector<128x32xf32> to vector<128xf32>
    %9 = vector.shape_cast %8 : vector<128xf32> to vector<128x1xf32>
    %cst_3 = arith.constant 3.200000e+01 : f32
    %10 = vector.broadcast %cst_3 : f32 to vector<128x1xf32>
    %11 = arith.divf %9, %10 : vector<128x1xf32>
    %cst_4 = arith.constant 9.99999974E-6 : f32
    %12 = vector.broadcast %cst_4 : f32 to vector<128x1xf32>
    %13 = arith.addf %11, %12 : vector<128x1xf32>
    %14 = math.rsqrt %13 : vector<128x1xf32>
    %15 = vector.broadcast %14 : vector<128x1xf32> to vector<128x32xf32>
    %16 = arith.mulf %6, %15 : vector<128x32xf32>
    %c0_5 = arith.constant 0 : index
    %c0_6 = arith.constant 0 : index
    %17 = vector.load %arg2[%c0_5, %c0_6] : memref<1x32xf32, #tpu.memory_space<vmem>>, vector<1x32xf32>
    %18 = vector.broadcast %17 : vector<1x32xf32> to vector<128x32xf32>
    %19 = arith.mulf %16, %18 : vector<128x32xf32>
    %c0_7 = arith.constant 0 : index
    %c0_8 = arith.constant 0 : index
    %20 = vector.load %arg3[%c0_7, %c0_8] : memref<1x32xf32, #tpu.memory_space<vmem>>, vector<1x32xf32>
    %21 = vector.broadcast %20 : vector<1x32xf32> to vector<128x32xf32>
    %22 = arith.addf %19, %21 : vector<128x32xf32>
    %c0_9 = arith.constant 0 : index
    %c0_10 = arith.constant 0 : index
    %23 = vector.load %arg4[%c0_9, %c0_10] : memref<128x32xf32, #tpu.memory_space<vmem>>, vector<128x32xf32>
    %cst_11 = arith.constant 5.000000e-01 : f32
    %24 = vector.broadcast %cst_11 : f32 to vector<128x32xf32>
    %25 = arith.mulf %24, %23 : vector<128x32xf32>
    %26 = math.tanh %25 : vector<128x32xf32>
    %cst_12 = arith.constant 5.000000e-01 : f32
    %27 = vector.broadcast %cst_12 : f32 to vector<128x32xf32>
    %28 = arith.mulf %27, %26 : vector<128x32xf32>
    %cst_13 = arith.constant 5.000000e-01 : f32
    %29 = vector.broadcast %cst_13 : f32 to vector<128x32xf32>
    %30 = arith.addf %28, %29 : vector<128x32xf32>
    %31 = arith.mulf %23, %30 : vector<128x32xf32>
    %32 = arith.mulf %22, %31 : vector<128x32xf32>
    %33 = arith.truncf %32 : vector<128x32xf32> to vector<128x32xbf16>
    %c0_14 = arith.constant 0 : index
    %c0_15 = arith.constant 0 : index
    %34 = vector.load %arg5[%c0_14, %c0_15] : memref<32x16xbf16, #tpu.memory_space<vmem>>, vector<32x16xbf16>
    %cst_16 = arith.constant dense<0.000000e+00> : vector<128x16xf32>
    %35 = tpu.matmul %33, %34, %cst_16 {dimension_numbers = #tpu.dot_dimension_numbers<[1], [0], [0], [1], [0, 0, 1, 1], [], []>} : vector<128x32xbf16>, vector<32x16xbf16>, vector<128x16xf32> -> vector<128x16xf32>
    %c0_17 = arith.constant 0 : index
    %c0_18 = arith.constant 0 : index
    %36 = vector.load %arg6[%c0_17, %c0_18] : memref<128x16xf32, #tpu.memory_space<vmem>>, vector<128x16xf32>
    %37 = arith.addf %35, %36 : vector<128x16xf32>
    %c0_19 = arith.constant 0 : index
    %c0_20 = arith.constant 0 : index
    %38 = vector.load %arg7[%c0_19, %c0_20] : memref<128x16xf32, #tpu.memory_space<vmem>>, vector<128x16xf32>
    tpu.vector_store %arg7[%c0_19, %c0_20], %37 {strides = array<i32>} : memref<128x16xf32, #tpu.memory_space<vmem>>, vector<128x16xf32>,
    return
  }
  func.func @transform_0(%arg0: i32) -> (i32, i32) {
    %c0_i32 = arith.constant 0 : i32
    %c0_i32_0 = arith.constant 0 : i32
    return %arg0, %c0_i32 : i32, i32
  }
  func.func @transform_1(%arg0: i32) -> (i32, i32) {
    %c0_i32 = arith.constant 0 : i32
    %c0_i32_0 = arith.constant 0 : i32
    %c0_i32_1 = arith.constant 0 : i32
    return %c0_i32, %c0_i32_0 : i32, i32
  }
  func.func @transform_2(%arg0: i32) -> (i32, i32) {
    %c0_i32 = arith.constant 0 : i32
    %c0_i32_0 = arith.constant 0 : i32
    %c0_i32_1 = arith.constant 0 : i32
    return %c0_i32, %c0_i32_0 : i32, i32
  }
  func.func @transform_3(%arg0: i32) -> (i32, i32) {
    %c0_i32 = arith.constant 0 : i32
    %c0_i32_0 = arith.constant 0 : i32
    return %arg0, %c0_i32 : i32, i32
  }
  func.func @transform_4(%arg0: i32) -> (i32, i32) {
    %c0_i32 = arith.constant 0 : i32
    %c0_i32_0 = arith.constant 0 : i32
    %c0_i32_1 = arith.constant 0 : i32
    return %c0_i32, %c0_i32_0 : i32, i32
  }
  func.func @transform_5(%arg0: i32) -> (i32, i32) {
    %c0_i32 = arith.constant 0 : i32
    %c0_i32_0 = arith.constant 0 : i32
    return %arg0, %c0_i32 : i32, i32
  }
  func.func @transform_6(%arg0: i32) -> (i32, i32) {
    %c0_i32 = arith.constant 0 : i32
    %c0_i32_0 = arith.constant 0 : i32
    return %arg0, %c0_i32 : i32, i32
  }
}

</mosaic_0001>

<bundles_post_ra>
// kernel: vss_forward.5
= control target key start
LH: loop header
LB: loop body
LE: loop exit
PB: predicated region body
PF: predicated region fallthrough
CT: control target
= control target key end

     0   :  { %9 = vsyncpa [#allocation3], 0  ;;  %s884_s15 = smov 0   ;;  %s1183_s0 = inlined_call_operand.vmem [shape: f32[256,16], index: 0, kind: input, shape index: {}]   ;;  %s1184_s1 = inlined_call_operand.vmem [shape: f32[1,16], index: 1, kind: input, shape index: {}]   ;;  %s1185_s2 = inlined_call_operand.vmem [shape: f32[1,16], index: 2, kind: input, shape index: {}]   ;;  %s1186_s3 = inlined_call_operand.hbm [shape: bf16[16,32], index: 3, kind: input, shape index: {}]   ;;  %s1187_s4 = inlined_call_operand.vmem [shape: f32[256,32], index: 4, kind: output, shape index: {}]  }
   0x1 LB: > { %s711_s16 = sadd.s32 4294967295, %s854_s15   ;;  %p713_p0 = scmp.ge.s32.totalorder %s854_s15, 1  ;;  %s854_s15 = sphi %s884_s15, %s15_s15  }
   0x2   : > { %p135_p1 = scmp.lt.s32.totalorder %s854_s15, 3  ;;  %s856_s17 = smov [#allocation2]  }
   0x3   : > { %s153_s18 = sshll.u32 %s856_s17, 4  ;;  %p896_p3 = scmp.eq.s32.totalorder %s711_s16, 0  ;;  %s154_s18 = int_to_ptr.vmem [resolvable:$true] %s153_s18 }
   0x4   : > { %p892_p2 = pnand %p713_p0, %p135_p1  ;;  %s829_s21 = scalar_lea.vmem %s154_s18, 128 }
   0x5   : > { %p830_p7 = scmp.ne.s32.totalorder %s154_s18, %s829_s21  ;;  %p837_p10 = scmp.lt.s32.totalorder %s154_s18, %s154_s18 }
   0x6   : > { %p768_p4 = pneg %p892_p2  ;;  %p838_p11 = scmp.lt.s32.totalorder %s829_s21, %s829_s21 }
   0x8   : > { %p769_p5 = pnand %p896_p3, %p768_p4  ;;  %p839_p12 = por %p838_p11, %p837_p10 }
   0xa   : > { %p820_p6 = pneg %p769_p5 }
   0xc   : > { %p832_p8 = pnand %p830_p7, %p820_p6 }
   0xe   : > { %p833_p9 = pneg %p832_p8 }
  0x10   : > { %p840_p13 = pnand %p839_p12, %p833_p9 }
  0x12   : > { %843 = shalt.err (!%p840_p13)
}
  0x13   : > { %s857_s22 = smov 64   ;;  %s858_s23 = smov 4  }
  0x14   : > { %771 = dma.hbm_to_vmem [thread:$0]  (!%p769_p5), %s1186_s3, 128, %s154_s18, [#allocation3], %s857_s22, %s857_s22, %s858_s23  }
  0x15   : > { %178 = sbr.rel (%p892_p2) target bundleno = 576 (0x240), region = 36 }
  0x1a   : > { %849 = dma.done.wait (%p896_p3), [#allocation3], 128  }
  0x1b   : > { %851 = vsyncadd (%p896_p3), [#allocation3], 4294967168  ;;  %s718_s26 = sshll.u32 %s711_s16, 4  ;;  %vm233_vm0 = vcmask 130048   ;;  %vm626_vm1 = vcmask 261120  }
  0x1c   : > { %p205_p0 = scmp.lt.s32.totalorder %s718_s26, 31 }
  0x1e   : > { %s1191_s26 = smov (!%p205_p0, %s718_s26), 31 }
  0x1f   : > { %s719_s27 = sshll.u32 %s1191_s26, 3 }
  0x20   : > { %s921_s30 = scalar_lea.vmem %s1183_s0, %s719_s27  ;;  %s1146_s11 = scalar_lea.vmem %s1187_s4, %s719_s27 }
  0x21   : > { %v217_v0 = vld [vmem:[%s921_s30] sm:$0xff]  ;;  %v218_v2 = vld [vmem:[%s921_s30 + $0x8] sm:$0xff]  ;;  %v219_v8 = vld [vmem:[%s921_s30 + $0x10] sm:$0xff] }
  0x22   : > { %v225_v1 = vld [vmem:[%s921_s30 + $0x40] sm:$0xff]  ;;  %v234_v3 = vsel %vm233_vm0, %v217_v0, 0.0  ;;  %v226_v5 = vld [vmem:[%s921_s30 + $0x48] sm:$0xff]  ;;  %v237_v6 = vsel %vm233_vm0, %v218_v2, 0.0  ;;  %v220_v9 = vld [vmem:[%s921_s30 + $0x18] sm:$0xff]  ;;  %v240_v10 = vsel %vm233_vm0, %v219_v8, 0.0 }
  0x23   : > { %v258_v4 = vsel %vm233_vm0, %v225_v1, 0.0  ;;  %235 = vadd.xlane.f32.xlu0 %v234_v3  ;;  %v261_v7 = vsel %vm233_vm0, %v226_v5, 0.0  ;;  %v243_v11 = vsel %vm233_vm0, %v220_v9, 0.0  ;;  %v936_v12 = vld [vmem:[%s921_s30 + $0x50] sm:$0xff]  ;;  %v939_v13 = vld [vmem:[%s921_s30 + $0x58] sm:$0xff]  ;;  %v946_v16 = vld [vmem:[%s921_s30 + $0x20] sm:$0xff] }
  0x24   : > { %259 = vadd.xlane.f32.xlu1 %v258_v4  ;;  %v264_v14 = vsel %vm233_vm0, %v936_v12, 0.0  ;;  %v267_v15 = vsel %vm233_vm0, %v939_v13, 0.0  ;;  %v949_v17 = vld [vmem:[%s921_s30 + $0x28] sm:$0xff]  ;;  %v246_v18 = vsel %vm233_vm0, %v946_v16, 0.0  ;;  %v956_v20 = vld [vmem:[%s921_s30 + $0x60] sm:$0xff]  ;;  %v966_v24 = vld [vmem:[%s921_s30 + $0x30] sm:$0xff] }
  0x25   : > { %v249_v19 = vsel %vm233_vm0, %v949_v17, 0.0  ;;  %v959_v21 = vld [vmem:[%s921_s30 + $0x68] sm:$0xff]  ;;  %v270_v22 = vsel %vm233_vm0, %v956_v20, 0.0  ;;  %v969_v25 = vld [vmem:[%s921_s30 + $0x38] sm:$0xff]  ;;  %v252_v26 = vsel %vm233_vm0, %v966_v24, 0.0  ;;  %v976_v28 = vld [vmem:[%s921_s30 + $0x70] sm:$0xff] }
  0x26   : > { %v273_v23 = vsel %vm233_vm0, %v959_v21, 0.0  ;;  %v255_v27 = vsel %vm233_vm0, %v969_v25, 0.0  ;;  %v979_v29 = vld [vmem:[%s921_s30 + $0x78] sm:$0xff]  ;;  %v276_v30 = vsel %vm233_vm0, %v976_v28, 0.0 }
  0x27   : > { %238 = vadd.xlane.f32.xlu0 %v237_v6  ;;  %v279_v31 = vsel %vm233_vm0, %v979_v29, 0.0 }
  0x28   : > { %262 = vadd.xlane.f32.xlu1 %v261_v7 }
  0x2b   : > { %241 = vadd.xlane.f32.xlu0 %v240_v10 }
  0x2c   : > { %244 = vadd.xlane.f32.xlu1 %v243_v11 }
  0x2f   : > { %265 = vadd.xlane.f32.xlu0 %v264_v14 }
  0x30   : > { %268 = vadd.xlane.f32.xlu1 %v267_v15 }
  0x33   : > { %247 = vadd.xlane.f32.xlu0 %v246_v18 }
  0x34   : > { %250 = vadd.xlane.f32.xlu1 %v249_v19 }
  0x37   : > { %271 = vadd.xlane.f32.xlu0 %v270_v22 }
  0x38   : > { %274 = vadd.xlane.f32.xlu1 %v273_v23 }
  0x3b   : > { %253 = vadd.xlane.f32.xlu0 %v252_v26 }
  0x3c   : > { %256 = vadd.xlane.f32.xlu1 %v255_v27 }
  0x3f   : > { %277 = vadd.xlane.f32.xlu0 %v276_v30 }
  0x40   : > { %280 = vadd.xlane.f32.xlu1 %v279_v31 }
  0xac   : > { %v236_v32 = vpop.xlane.xlu0 %235 }
  0xad   : > { %v260_v33 = vpop.xlane.xlu1 %259  ;;  %v283_v34 = vmul.f32 0.0625, %v236_v32 }
  0xae   : > { %v291_v35 = vmul.f32 0.0625, %v260_v33 }
  0xaf   : > { %v985_v36 = vsub.f32 %v217_v0, %v283_v34 }
  0xb0   : > { %v987_v37 = vsub.f32 %v225_v1, %v291_v35  ;;  %v239_v38 = vpop.xlane.xlu0 %238 }
  0xb1   : > { %v263_v39 = vpop.xlane.xlu1 %262  ;;  %v284_v40 = vmul.f32 0.0625, %v239_v38  ;;  %v315_v42 = vmul.f32 %v985_v36, %v985_v36 }
  0xb2   : > { %v292_v41 = vmul.f32 0.0625, %v263_v39  ;;  %v323_v43 = vmul.f32 %v987_v37, %v987_v37 }
  0xb3   : > { %v993_v44 = vsub.f32 %v218_v2, %v284_v40  ;;  %v331_v46 = vsel %vm233_vm0, %v315_v42, 0.0 }
  0xb4   : > { %v995_v45 = vsub.f32 %v226_v5, %v292_v41  ;;  %332 = vadd.xlane.f32.xlu0 %v331_v46  ;;  %v242_v47 = vpop.xlane.xlu0 %241  ;;  %v355_v49 = vsel %vm233_vm0, %v323_v43, 0.0 }
  0xb5   : > { %v245_v48 = vpop.xlane.xlu1 %244  ;;  %v285_v50 = vmul.f32 0.0625, %v242_v47  ;;  %v316_v52 = vmul.f32 %v993_v44, %v993_v44 }
  0xb6   : > { %v286_v51 = vmul.f32 0.0625, %v245_v48  ;;  %v324_v53 = vmul.f32 %v995_v45, %v995_v45 }
  0xb7   : > { %v1003_v54 = vsub.f32 %v219_v8, %v285_v50  ;;  %v334_v56 = vsel %vm233_vm0, %v316_v52, 0.0 }
  0xb8   : > { %v1005_v55 = vsub.f32 %v220_v9, %v286_v51  ;;  %356 = vadd.xlane.f32.xlu0 %v355_v49  ;;  %335 = vadd.xlane.f32.xlu1 %v334_v56  ;;  %v266_v57 = vpop.xlane.xlu0 %265  ;;  %v358_v59 = vsel %vm233_vm0, %v324_v53, 0.0 }
  0xb9   : > { %v269_v58 = vpop.xlane.xlu1 %268  ;;  %v293_v60 = vmul.f32 0.0625, %v266_v57  ;;  %v317_v62 = vmul.f32 %v1003_v54, %v1003_v54 }
  0xba   : > { %v294_v61 = vmul.f32 0.0625, %v269_v58  ;;  %v318_v63 = vmul.f32 %v1005_v55, %v1005_v55 }
  0xbb   : > { %v1014_v0 = vsub.f32 %v936_v12, %v293_v60  ;;  %v337_v2 = vsel %vm233_vm0, %v317_v62, 0.0 }
  0xbc   : > { %v1017_v1 = vsub.f32 %v939_v13, %v294_v61  ;;  %359 = vadd.xlane.f32.xlu1 %v358_v59  ;;  %338 = vadd.xlane.f32.xlu0 %v337_v2  ;;  %v248_v3 = vpop.xlane.xlu0 %247  ;;  %v340_v5 = vsel %vm233_vm0, %v318_v63, 0.0 }
  0xbd   : > { %v251_v4 = vpop.xlane.xlu1 %250  ;;  %v287_v6 = vmul.f32 0.0625, %v248_v3  ;;  %v325_v8 = vmul.f32 %v1014_v0, %v1014_v0 }
  0xbe   : > { %v288_v7 = vmul.f32 0.0625, %v251_v4  ;;  %v326_v9 = vmul.f32 %v1017_v1, %v1017_v1 }
  0xbf   : > { %v1026_v10 = vsub.f32 %v946_v16, %v287_v6  ;;  %v361_v12 = vsel %vm233_vm0, %v325_v8, 0.0 }
  0xc0   : > { %v1029_v11 = vsub.f32 %v949_v17, %v288_v7  ;;  %341 = vadd.xlane.f32.xlu1 %v340_v5  ;;  %362 = vadd.xlane.f32.xlu0 %v361_v12  ;;  %v272_v13 = vpop.xlane.xlu0 %271  ;;  %v364_v15 = vsel %vm233_vm0, %v326_v9, 0.0 }
  0xc1   : > { %v275_v14 = vpop.xlane.xlu1 %274  ;;  %v295_v18 = vmul.f32 0.0625, %v272_v13  ;;  %v319_v22 = vmul.f32 %v1026_v10, %v1026_v10 }
  0xc2   : > { %v296_v19 = vmul.f32 0.0625, %v275_v14  ;;  %v320_v16 = vmul.f32 %v1029_v11, %v1029_v11 }
  0xc3   : > { %v1038_v23 = vsub.f32 %v956_v20, %v295_v18  ;;  %v343_v26 = vsel %vm233_vm0, %v319_v22, 0.0 }
  0xc4   : > { %v1041_v17 = vsub.f32 %v959_v21, %v296_v19  ;;  %365 = vadd.xlane.f32.xlu1 %v364_v15  ;;  %344 = vadd.xlane.f32.xlu0 %v343_v26  ;;  %v254_v27 = vpop.xlane.xlu0 %253  ;;  %v346_v31 = vsel %vm233_vm0, %v320_v16, 0.0 }
  0xc5   : > { %v257_v30 = vpop.xlane.xlu1 %256  ;;  %v289_v32 = vmul.f32 0.0625, %v254_v27  ;;  %v327_v34 = vmul.f32 %v1038_v23, %v1038_v23 }
  0xc6   : > { %v290_v33 = vmul.f32 0.0625, %v257_v30  ;;  %v328_v20 = vmul.f32 %v1041_v17, %v1041_v17 }
  0xc7   : > { %v1050_v35 = vsub.f32 %v966_v24, %v289_v32  ;;  %v367_v38 = vsel %vm233_vm0, %v327_v34, 0.0  ;;  %v1079_v32 = vld [vmem:[%s1184_s1] ss:$0 sm:$0xff] }
  0xc8   : > { %v1053_v21 = vsub.f32 %v969_v25, %v290_v33  ;;  %347 = vadd.xlane.f32.xlu1 %v346_v31  ;;  %368 = vadd.xlane.f32.xlu0 %v367_v38  ;;  %v278_v39 = vpop.xlane.xlu0 %277  ;;  %v370_v41 = vsel %vm233_vm0, %v328_v20, 0.0 }
  0xc9   : > { %v281_v40 = vpop.xlane.xlu1 %280  ;;  %v297_v42 = vmul.f32 0.0625, %v278_v39  ;;  %v321_v46 = vmul.f32 %v1050_v35, %v1050_v35 }
  0xca   : > { %v298_v43 = vmul.f32 0.0625, %v281_v40  ;;  %v322_v24 = vmul.f32 %v1053_v21, %v1053_v21 }
  0xcb   : > { %v1062_v47 = vsub.f32 %v976_v28, %v297_v42  ;;  %v349_v48 = vsel %vm233_vm0, %v321_v46, 0.0 }
  0xcc   : > { %v1065_v25 = vsub.f32 %v979_v29, %v298_v43  ;;  %371 = vadd.xlane.f32.xlu1 %v370_v41  ;;  %350 = vadd.xlane.f32.xlu0 %v349_v48  ;;  %v352_v49 = vsel %vm233_vm0, %v322_v24, 0.0  ;;  %v785_v29 = vld [vmem:[#allocation2] sm:$0xff]  }
  0xcd   : > { %v329_v50 = vmul.f32 %v1062_v47, %v1062_v47  ;;  %744 = vmatprep.subr.bf16.mxu0 %v785_v29  ;;  %762 = vmatprep.subr.bf16.mxu1 %v785_v29 }
  0xce   : > { %v330_v51 = vmul.f32 %v1065_v25, %v1065_v25  ;;  %745 = vmatpush3.bf16.msra.mxu0 %v785_v29  ;;  %763 = vmatpush3.bf16.msra.mxu1 %v785_v29 }
  0xcf   : > { %v373_v52 = vsel %vm233_vm0, %v329_v50, 0.0 }
  0xd0   : > { %353 = vadd.xlane.f32.xlu1 %v352_v49  ;;  %374 = vadd.xlane.f32.xlu0 %v373_v52  ;;  %v376_v28 = vsel %vm233_vm0, %v330_v51, 0.0 }
  0xd4   : > { %377 = vadd.xlane.f32.xlu1 %v376_v28 }
 0x13d   : > { %v333_v53 = vpop.xlane.xlu0 %332 }
 0x13e   : > { %v379_v56 = vmul.f32 0.0625, %v333_v53 }
 0x140   : > { %v395_v57 = vadd.f32 1e-05, %v379_v56 }
 0x141   : > { %v336_v58 = vpop.xlane.xlu1 %335  ;;  %v357_v59 = vpop.xlane.xlu0 %356 }
 0x142   : > { %786 = vrsqrt.f32 %v395_v57  ;;  %v380_v60 = vmul.f32 0.0625, %v336_v58  ;;  %v387_v61 = vmul.f32 0.0625, %v357_v59 }
 0x144   : > { %v396_v62 = vadd.f32 1e-05, %v380_v60  ;;  %v403_v63 = vadd.f32 1e-05, %v387_v61 }
 0x145   : > { %v360_v2 = vpop.xlane.xlu1 %359  ;;  %v339_v3 = vpop.xlane.xlu0 %338 }
 0x146   : > { %788 = vrsqrt.f32 %v396_v62  ;;  %v388_v4 = vmul.f32 0.0625, %v360_v2  ;;  %v381_v5 = vmul.f32 0.0625, %v339_v3 }
 0x147   : > { %790 = vrsqrt.f32 %v403_v63 }
 0x148   : > { %v404_v6 = vadd.f32 1e-05, %v388_v4  ;;  %v397_v7 = vadd.f32 1e-05, %v381_v5 }
 0x149   : > { %v342_v8 = vpop.xlane.xlu1 %341  ;;  %v363_v9 = vpop.xlane.xlu0 %362 }
 0x14a   : > { %792 = vrsqrt.f32 %v404_v6  ;;  %v382_v12 = vmul.f32 0.0625, %v342_v8  ;;  %v389_v13 = vmul.f32 0.0625, %v363_v9 }
 0x14b   : > { %794 = vrsqrt.f32 %v397_v7 }
 0x14c   : > { %v398_v14 = vadd.f32 1e-05, %v382_v12  ;;  %v405_v15 = vadd.f32 1e-05, %v389_v13 }
 0x14d   : > { %v366_v18 = vpop.xlane.xlu1 %365  ;;  %v345_v19 = vpop.xlane.xlu0 %344 }
 0x14e   : > { %796 = vrsqrt.f32 %v398_v14  ;;  %v390_v22 = vmul.f32 0.0625, %v366_v18  ;;  %v383_v16 = vmul.f32 0.0625, %v345_v19 }
 0x14f   : > { %v787_v26 = vpop.eup %786  ;;  %798 = vrsqrt.f32 %v405_v15 }
 0x150   : > { %v406_v27 = vadd.f32 1e-05, %v390_v22  ;;  %v399_v30 = vadd.f32 1e-05, %v383_v16  ;;  %v427_v31 = vmul.f32 %v787_v26, %v985_v36  ;;  %v1086_v36 = vld [vmem:[%s1185_s2] ss:$0 sm:$0xff] }
 0x151   : > { %v348_v33 = vpop.xlane.xlu1 %347  ;;  %v369_v34 = vpop.xlane.xlu0 %368 }
 0x152   : > { %800 = vrsqrt.f32 %v406_v27  ;;  %v384_v20 = vmul.f32 0.0625, %v348_v33  ;;  %v391_v38 = vmul.f32 0.0625, %v369_v34  ;;  %v450_v40 = vmul.f32 %v1079_v32, %v427_v31 }
 0x153   : > { %v789_v39 = vpop.eup %788  ;;  %802 = vrsqrt.f32 %v399_v30 }
 0x154   : > { %v791_v41 = vpop.eup %790  ;;  %v400_v42 = vadd.f32 1e-05, %v384_v20  ;;  %v407_v43 = vadd.f32 1e-05, %v391_v38  ;;  %v428_v46 = vmul.f32 %v789_v39, %v993_v44  ;;  %v473_v29 = vadd.f32 %v1086_v36, %v450_v40 }
 0x155   : > { %v372_v24 = vpop.xlane.xlu1 %371  ;;  %v351_v48 = vpop.xlane.xlu0 %350  ;;  %v435_v49 = vmul.f32 %v791_v41, %v987_v37 }
 0x156   : > { %804 = vrsqrt.f32 %v400_v42  ;;  %v392_v50 = vmul.f32 0.0625, %v372_v24  ;;  %v385_v51 = vmul.f32 0.0625, %v351_v48  ;;  %v451_v52 = vmul.f32 %v1079_v32, %v428_v46 }
 0x157   : > { %v793_v28 = vpop.eup %792  ;;  %806 = vrsqrt.f32 %v407_v43  ;;  %v458_v37 = vmul.f32 %v1079_v32, %v435_v49 }
 0x158   : > { %v795_v53 = vpop.eup %794  ;;  %v408_v44 = vadd.f32 1e-05, %v392_v50  ;;  %v401_v56 = vadd.f32 1e-05, %v385_v51  ;;  %v474_v57 = vadd.f32 %v1086_v36, %v451_v52  ;;  %v436_v58 = vmul.f32 %v793_v28, %v995_v45 }
 0x159   : > { %v354_v59 = vpop.xlane.xlu1 %353  ;;  %v375_v60 = vpop.xlane.xlu0 %374  ;;  %v429_v61 = vmul.f32 %v795_v53, %v1003_v54  ;;  %v481_v54 = vadd.f32 %v1086_v36, %v458_v37 }
 0x15a   : > { %808 = vrsqrt.f32 %v408_v44  ;;  %v386_v62 = vmul.f32 0.0625, %v354_v59  ;;  %v393_v63 = vmul.f32 0.0625, %v375_v60  ;;  %v489_v2 = vpack.c.bf16 %v474_v57, %v473_v29 }
 0x15b   : > { %v797_v3 = vpop.eup %796  ;;  %810 = vrsqrt.f32 %v401_v56  ;;  %v459_v4 = vmul.f32 %v1079_v32, %v436_v58  ;;  %v452_v5 = vmul.f32 %v1079_v32, %v429_v61 }
 0x15c   : > { %v799_v6 = vpop.eup %798  ;;  %v402_v7 = vadd.f32 1e-05, %v386_v62  ;;  %v409_v8 = vadd.f32 1e-05, %v393_v63  ;;  %746 = vmatprep.mubr.msk.bf16.mxu0 %vm233_vm0, %v489_v2  ;;  %v430_v45 = vmul.f32 %v797_v3, %v1005_v55 }
 0x15d   : > { %v378_v9 = vpop.xlane.xlu1 %377  ;;  %v482_v12 = vadd.f32 %v1086_v36, %v459_v4  ;;  %v437_v13 = vmul.f32 %v799_v6, %v1014_v0  ;;  %v475_v22 = vadd.f32 %v1086_v36, %v452_v5 }
 0x15e   : > { %812 = vrsqrt.f32 %v402_v7  ;;  %v394_v14 = vmul.f32 0.0625, %v378_v9  ;;  %v453_v15 = vmul.f32 %v1079_v32, %v430_v45 }
 0x15f   : > { %v801_v18 = vpop.eup %800  ;;  %814 = vrsqrt.f32 %v409_v8  ;;  %v493_v19 = vpack.c.bf16 %v482_v12, %v481_v54  ;;  %v460_v30 = vmul.f32 %v1079_v32, %v437_v13 }
 0x160   : > { %v803_v16 = vpop.eup %802  ;;  %v410_v26 = vadd.f32 1e-05, %v394_v14  ;;  %v476_v55 = vadd.f32 %v1086_v36, %v453_v15  ;;  %v438_v27 = vmul.f32 %v801_v18, %v1017_v1 }
 0x161   : > { %754 = vmatprep.mubr.msk.bf16.mxu1 %vm233_vm0, %v493_v19  ;;  %v431_v0 = vmul.f32 %v803_v16, %v1026_v10  ;;  %v483_v38 = vadd.f32 %v1086_v36, %v460_v30 }
 0x162   : > { %816 = vrsqrt.f32 %v410_v26  ;;  %v490_v31 = vpack.c.bf16 %v476_v55, %v475_v22  ;;  %v461_v33 = vmul.f32 %v1079_v32, %v438_v27 }
 0x163   : > { %v805_v34 = vpop.eup %804  ;;  %v454_v40 = vmul.f32 %v1079_v32, %v431_v0 }
 0x164   : > { %v807_v20 = vpop.eup %806  ;;  %747 = vmatmul.mubr.msk.bf16.vlgmr.msra.gmra.mxu0 %vm233_vm0, %v490_v31  ;;  %v484_v39 = vadd.f32 %v1086_v36, %v461_v33  ;;  %v432_v1 = vmul.f32 %v805_v34, %v1029_v11 }
 0x165   : > { %v439_v41 = vmul.f32 %v807_v20, %v1038_v23  ;;  %v477_v24 = vadd.f32 %v1086_v36, %v454_v40 }
 0x166   : > { %v494_v42 = vpack.c.bf16 %v484_v39, %v483_v38  ;;  %v455_v10 = vmul.f32 %v1079_v32, %v432_v1 }
 0x167   : > { %v809_v43 = vpop.eup %808  ;;  %v462_v50 = vmul.f32 %v1079_v32, %v439_v41 }
 0x168   : > { %v811_v46 = vpop.eup %810  ;;  %755 = vmatmul.mubr.msk.bf16.vlgmr.msra.gmra.mxu1 %vm233_vm0, %v494_v42  ;;  %v478_v48 = vadd.f32 %v1086_v36, %v455_v10  ;;  %v440_v49 = vmul.f32 %v809_v43, %v1041_v17 }
 0x169   : > { %v433_v11 = vmul.f32 %v811_v46, %v1050_v35  ;;  %v485_v29 = vadd.f32 %v1086_v36, %v462_v50 }
 0x16a   : > { %v491_v51 = vpack.c.bf16 %v478_v48, %v477_v24  ;;  %v463_v23 = vmul.f32 %v1079_v32, %v440_v49 }
 0x16b   : > { %v813_v52 = vpop.eup %812  ;;  %v456_v56 = vmul.f32 %v1079_v32, %v433_v11 }
 0x16c   : > { %v815_v28 = vpop.eup %814  ;;  %750 = vmatprep.mubr.msk.bf16.mxu0 %vm233_vm0, %v491_v51  ;;  %v486_v53 = vadd.f32 %v1086_v36, %v463_v23  ;;  %v434_v44 = vmul.f32 %v813_v52, %v1053_v21 }
 0x16d   : > { %v441_v17 = vmul.f32 %v815_v28, %v1062_v47  ;;  %v479_v59 = vadd.f32 %v1086_v36, %v456_v56 }
 0x16e   : > { %v495_v57 = vpack.c.bf16 %v486_v53, %v485_v29  ;;  %v457_v35 = vmul.f32 %v1079_v32, %v434_v44 }
 0x16f   : > { %v817_v58 = vpop.eup %816  ;;  %v464_v61 = vmul.f32 %v1079_v32, %v441_v17 }
 0x170   : > { %758 = vmatprep.mubr.msk.bf16.mxu1 %vm233_vm0, %v495_v57  ;;  %v480_v60 = vadd.f32 %v1086_v36, %v457_v35  ;;  %v442_v37 = vmul.f32 %v817_v58, %v1065_v25 }
 0x171   : > { %v487_v47 = vadd.f32 %v1086_v36, %v464_v61 }
 0x172   : > { %v492_v21 = vpack.c.bf16 %v480_v60, %v479_v59  ;;  %v465_v62 = vmul.f32 %v1079_v32, %v442_v37 }
 0x174   : > { %751 = vmatmul.mubr.msk.bf16.gmra.mxu0 %vm233_vm0, %v492_v21  ;;  %v488_v63 = vadd.f32 %v1086_v36, %v465_v62 }
 0x176   : > { %v496_v2 = vpack.c.bf16 %v488_v63, %v487_v47 }
 0x178   : > { %759 = vmatmul.mubr.msk.bf16.gmra.mxu1 %vm233_vm0, %v496_v2 }
 0x224   : > { %v748_v25 = vpop.f32.mrf.mxu0 }
 0x225   : > { %629 = vst.msk [vmem:[%s1146_s11 + $0x10] sm:$0xff] %vm626_vm1, %v748_v25 }
 0x226   : > { %v563_v32 = vpop.f32.mrf.mxu0 }
 0x227   : > { %627 = vst.msk [vmem:[%s1146_s11] sm:$0xff] %vm626_vm1, %v563_v32 }
 0x228   : > { %v749_v36 = vpop.f32.mrf.mxu0  ;;  %v756_v3 = vpop.f32.mrf.mxu1 }
 0x229   : > { %630 = vst.msk [vmem:[%s1146_s11 + $0x18] sm:$0xff] %vm626_vm1, %v749_v36  ;;  %637 = vst.msk [vmem:[%s1146_s11 + $0x50] sm:$0xff] %vm626_vm1, %v756_v3 }
 0x22a   : > { %v566_v4 = vpop.f32.mrf.mxu0  ;;  %v595_v5 = vpop.f32.mrf.mxu1 }
 0x22b   : > { %628 = vst.msk [vmem:[%s1146_s11 + $0x8] sm:$0xff] %vm626_vm1, %v566_v4  ;;  %635 = vst.msk [vmem:[%s1146_s11 + $0x40] sm:$0xff] %vm626_vm1, %v595_v5 }
 0x22c   : > { %v757_v6 = vpop.f32.mrf.mxu1 }
 0x22d   : > { %638 = vst.msk [vmem:[%s1146_s11 + $0x58] sm:$0xff] %vm626_vm1, %v757_v6 }
 0x22e   : > { %v598_v7 = vpop.f32.mrf.mxu1 }
 0x22f   : > { %636 = vst.msk [vmem:[%s1146_s11 + $0x48] sm:$0xff] %vm626_vm1, %v598_v7 }
 0x234   : > { %v752_v8 = vpop.f32.mrf.mxu0 }
 0x235   : > { %633 = vst.msk [vmem:[%s1146_s11 + $0x30] sm:$0xff] %vm626_vm1, %v752_v8 }
 0x236   : > { %v579_v45 = vpop.f32.mrf.mxu0 }
 0x237   : > { %631 = vst.msk [vmem:[%s1146_s11 + $0x20] sm:$0xff] %vm626_vm1, %v579_v45 }
 0x238   : > { %v753_v9 = vpop.f32.mrf.mxu0  ;;  %v760_v54 = vpop.f32.mrf.mxu1 }
 0x239   : > { %634 = vst.msk [vmem:[%s1146_s11 + $0x38] sm:$0xff] %vm626_vm1, %v753_v9  ;;  %641 = vst.msk [vmem:[%s1146_s11 + $0x70] sm:$0xff] %vm626_vm1, %v760_v54 }
 0x23a   : > { %v582_v12 = vpop.f32.mrf.mxu0  ;;  %v611_v13 = vpop.f32.mrf.mxu1 }
 0x23b   : > { %632 = vst.msk [vmem:[%s1146_s11 + $0x28] sm:$0xff] %vm626_vm1, %v582_v12  ;;  %639 = vst.msk [vmem:[%s1146_s11 + $0x60] sm:$0xff] %vm626_vm1, %v611_v13 }
 0x23c   : > { %v761_v14 = vpop.f32.mrf.mxu1 }
 0x23d   : > { %642 = vst.msk [vmem:[%s1146_s11 + $0x78] sm:$0xff] %vm626_vm1, %v761_v14 }
 0x23e   : > { %v614_v15 = vpop.f32.mrf.mxu1 }
 0x23f   : > { %640 = vst.msk [vmem:[%s1146_s11 + $0x68] sm:$0xff] %vm626_vm1, %v614_v15 }
 0x240 PF: > { %s15_s15 = sadd.s32 1, %s854_s15  }
 0x241   : > { %p12_p1 = scmp.ge.s32.totalorder %s15_s15, 4  }
 0x243   :  { %14 = sbr.rel (!%p12_p1) target bundleno = 1 (0x1), region = 71 }
 0x248   :  { %665 = vsyncpa [#allocation3], 1 }
 0x249   :  { %667 = vsyncpa [#allocation3 + $0x1], 1 }

// kernel: vss_forward.6
= control target key start
LH: loop header
LB: loop body
LE: loop exit
PB: predicated region body
PF: predicated region fallthrough
CT: control target
= control target key end

     0   :  { %8 = vsyncpa [#allocation3], 0  ;;  %s1512_s0 = inlined_call_operand.vmem [shape: f32[4,10,10,32], index: 0, kind: input, shape index: {}]   ;;  %s1513_s1 = inlined_call_operand.hbm [shape: f32[9,32], index: 1, kind: input, shape index: {}]   ;;  %s1514_s2 = inlined_call_operand.hbm [shape: f32[1,32], index: 2, kind: input, shape index: {}]   ;;  %s1515_s3 = inlined_call_operand.vmem [shape: f32[4,8,8,32], index: 3, kind: output, shape index: {}]  }
   0x1   :  { %9 = vsyncpa [#allocation5], 0  ;;  %s1106_s12 = smov 0  }
   0x2 LB: > { %s1112_s13 = sadd.s32 4294967295, %s1080_s12   ;;  %p911_p0 = scmp.ge.s32.totalorder %s1080_s12, 1  ;;  %s1080_s12 = sphi %s1106_s12, %s15_s12  }
   0x3   : > { %p114_p1 = scmp.lt.s32.totalorder %s1080_s12, 5  ;;  %s1082_s14 = smov [#allocation2]  }
   0x4   : > { %s126_s15 = sshll.u32 %s1082_s14, 4  ;;  %p982_p3 = scmp.eq.s32.totalorder %s1112_s13, 0  ;;  %s127_s15 = int_to_ptr.vmem [resolvable:$true] %s126_s15 }
   0x5   : > { %p1116_p2 = pnand %p911_p0, %p114_p1  ;;  %s1083_s17 = smov [#allocation4]  }
   0x6   : > { %s140_s18 = sshll.u32 %s1083_s17, 4  ;;  %s1025_s20 = scalar_lea.vmem %s127_s15, 256  ;;  %s141_s18 = int_to_ptr.vmem [resolvable:$true] %s140_s18 }
   0x7   : > { %p975_p4 = pneg %p1116_p2  ;;  %p1026_p7 = scmp.ne.s32.totalorder %s127_s15, %s1025_s20 }
   0x8   : > { %p1033_p10 = scmp.lt.s32.totalorder %s127_s15, %s127_s15  ;;  %p1034_p11 = scmp.lt.s32.totalorder %s1025_s20, %s1025_s20 }
   0x9   : > { %p1125_p5 = pnand %p982_p3, %p975_p4 }
   0xa   : > { %p1035_p12 = por %p1034_p11, %p1033_p10 }
   0xb   : > { %p1016_p6 = pneg %p1125_p5 }
   0xd   : > { %p1028_p8 = pnand %p1026_p7, %p1016_p6 }
   0xf   : > { %p1029_p9 = pneg %p1028_p8 }
  0x11   : > { %p1036_p13 = pnand %p1035_p12, %p1029_p9 }
  0x13   : > { %1039 = shalt.err (!%p1036_p13)
}
  0x14   : > { %s1084_s21 = smov 128   ;;  %s1085_s22 = smov 8  }
  0x15   : > { %978 = dma.hbm_to_vmem [thread:$0]  (!%p1125_p5), %s1513_s1, 256, %s127_s15, [#allocation3], %s1084_s21, %s1084_s21, %s1085_s22  }
  0x16   : > { %s1051_s25 = scalar_lea.vmem %s141_s18, 16  ;;  %s1058_s26 = scalar_lea.vmem %s141_s18, 32 }
  0x17   : > { %p1052_p0 = scmp.ne.s32.totalorder %s141_s18, %s1051_s25  ;;  %p1059_p7 = scmp.lt.s32.totalorder %s141_s18, %s141_s18 }
  0x18   : > { %p1060_p8 = scmp.lt.s32.totalorder %s1058_s26, %s1051_s25 }
  0x19   : > { %p1054_p1 = pnand %p1052_p0, %p1016_p6 }
  0x1a   : > { %p1061_p9 = por %p1060_p8, %p1059_p7 }
  0x1b   : > { %p1055_p4 = pneg %p1054_p1 }
  0x1d   : > { %p1062_p10 = pnand %p1061_p9, %p1055_p4 }
  0x1f   : > { %1065 = shalt.err (!%p1062_p10)
}
  0x20   : > { %981 = dma.hbm_to_vmem [thread:$0]  (!%p1125_p5), %s1514_s2, 16, %s141_s18, [#allocation5]  }
  0x21   : > { %161 = sbr.rel (%p1116_p2) target bundleno = 170 (0xaa), region = 32 }
  0x26   : > { %1071 = dma.done.wait (%p982_p3), [#allocation3], 256  }
  0x27   : > { %1073 = vsyncadd (%p982_p3), [#allocation3], 4294967040 }
  0x28   : > { %1075 = dma.done.wait (%p982_p3), [#allocation5], 16  }
  0x29   : > { %1077 = vsyncadd (%p982_p3), [#allocation5], 4294967280  ;;  %p189_p6 = scmp.lt.s32.totalorder %s1112_s13, 3  ;;  %vm280_vm0 = vcmask 1046528   ;;  %v1167_v0 = vld [vmem:[#allocation4] ss:$0 sm:$0xff] }
  0x2a   : > { %vm358_vm1 = vcmask 1045504   ;;  %v1171_v3 = vld [vmem:[#allocation2] ss:$0 sm:$0xff]  ;;  %v1173_v4 = vld [vmem:[#allocation2 + $0x1] ss:$0 sm:$0xff]  ;;  %vm823_vm2 = vcmask 261120  }
  0x2b   : > { %s1519_s13 = smov (!%p189_p6, %s1112_s13), 3  ;;  %v1175_v5 = vld [vmem:[#allocation2 + $0x2] ss:$0 sm:$0xff]  ;;  %v1183_v12 = vld [vmem:[#allocation2 + $0x3] ss:$0 sm:$0xff] }
  0x2c   : > { %s966_s29 = smul.u32 160, %s1519_s13  ;;  %v1187_v15 = vld [vmem:[#allocation2 + $0x4] ss:$0 sm:$0xff]  ;;  %v1189_v16 = vld [vmem:[#allocation2 + $0x5] ss:$0 sm:$0xff]  ;;  %s965_s6 = sshll.u32 %s1519_s13, 6 }
  0x2d   : > { %v1201_v29 = vld [vmem:[#allocation2 + $0x6] ss:$0 sm:$0xff]  ;;  %v1203_v30 = vld [vmem:[#allocation2 + $0x7] ss:$0 sm:$0xff]  ;;  %v1211_v35 = vld [vmem:[#allocation2 + $0x8] ss:$0 sm:$0xff]  ;;  %s1335_s9 = scalar_lea.vmem %s1515_s3, %s965_s6 }
  0x2e   : > { %s1165_s5 = scalar_lea.vmem %s1512_s0, %s966_s29 }
  0x2f   : > { %v206_v1 = vld [vmem:[%s1165_s5] sm:$0xff]  ;;  %v207_v2 = vld [vmem:[%s1165_s5 + $0x8] sm:$0x3]  ;;  %v925_v10 = vld [vmem:[%s1165_s5 + $0x10] sm:$0xff] }
  0x30   : > { %v227_v6 = vmul.f32 %v1171_v3, %v206_v1  ;;  %v248_v7 = vmul.f32 %v1173_v4, %v206_v1  ;;  %v249_v8 = vmul.f32 %v1173_v4, %v207_v2  ;;  %v326_v9 = vmul.f32 %v1175_v5, %v206_v1  ;;  %v926_v11 = vld [vmem:[%s1165_s5 + $0x18] sm:$0x3]  ;;  %v945_v23 = vld [vmem:[%s1165_s5 + $0x28] sm:$0x3]  ;;  %v1199_v28 = vld [vmem:[%s1165_s5 + $0x20] sm:$0xff] }
  0x31   : > { %v327_v13 = vmul.f32 %v1175_v5, %v207_v2  ;;  %v421_v14 = vmul.f32 %v1183_v12, %v925_v10  ;;  %v228_v17 = vmul.f32 %v925_v10, %v1171_v3  ;;  %v250_v18 = vmul.f32 %v925_v10, %v1173_v4  ;;  %v209_v40 = vld [vmem:[%s1165_s5 + $0x18] sm:$0x3]  ;;  %v928_v57 = vld [vmem:[%s1165_s5 + $0x28] sm:$0x3] }
  0x32   : > { %v235_v19 = vadd.f32 %v1167_v0, %v227_v6  ;;  %v281_v20 = vrot.slane %v248_v7, 1  ;;  %v282_v21 = vrot.slane %v249_v8, 1  ;;  %v359_v22 = vrot.slane %v326_v9, 2 }
  0x33   : > { %v360_v24 = vrot.slane %v327_v13, 2  ;;  %v442_v25 = vmul.f32 %v1187_v15, %v925_v10  ;;  %v443_v26 = vmul.f32 %v1187_v15, %v926_v11  ;;  %v519_v27 = vmul.f32 %v1189_v16, %v925_v10 }
  0x34   : > { %v283_v31 = vsel %vm280_vm0, %v281_v20, %v282_v21  ;;  %v520_v32 = vmul.f32 %v1189_v16, %v926_v11  ;;  %v613_v33 = vmul.f32 %v1201_v29, %v1199_v28  ;;  %v634_v34 = vmul.f32 %v1203_v30, %v1199_v28 }
  0x35   : > { %v313_v36 = vadd.f32 %v283_v31, %v235_v19  ;;  %v361_v37 = vsel %vm358_vm1, %v359_v22, %v360_v24  ;;  %v474_v38 = vrot.slane %v442_v25, 1  ;;  %v475_v39 = vrot.slane %v443_v26, 1 }
  0x36   : > { %v551_v41 = vrot.slane %v519_v27, 2  ;;  %v552_v42 = vrot.slane %v520_v32, 2  ;;  %v635_v43 = vmul.f32 %v1203_v30, %v945_v23  ;;  %v666_v44 = vrot.slane %v634_v34, 1 }
  0x37   : > { %v391_v45 = vadd.f32 %v361_v37, %v313_v36  ;;  %v476_v46 = vsel %vm280_vm0, %v474_v38, %v475_v39  ;;  %v711_v47 = vmul.f32 %v1211_v35, %v1199_v28  ;;  %v712_v48 = vmul.f32 %v1211_v35, %v945_v23 }
  0x38   : > { %v553_v49 = vsel %vm358_vm1, %v551_v41, %v552_v42  ;;  %v667_v50 = vrot.slane %v635_v43, 1  ;;  %v236_v51 = vadd.f32 %v1167_v0, %v228_v17  ;;  %v251_v52 = vmul.f32 %v1173_v4, %v209_v40  ;;  %v1237_v17 = vld [vmem:[%s1165_s5 + $0x30] sm:$0xff] }
  0x39   : > { %v429_v53 = vadd.f32 %v421_v14, %v391_v45  ;;  %v743_v54 = vrot.slane %v711_v47, 2  ;;  %v744_v55 = vrot.slane %v712_v48, 2  ;;  %v284_v56 = vrot.slane %v250_v18, 1  ;;  %v947_v18 = vld [vmem:[%s1165_s5 + $0x38] sm:$0x3] }
  0x3a   : > { %v668_v58 = vsel %vm280_vm0, %v666_v44, %v667_v50  ;;  %v285_v59 = vrot.slane %v251_v52, 1  ;;  %v328_v60 = vmul.f32 %v925_v10, %v1175_v5  ;;  %v329_v61 = vmul.f32 %v1175_v5, %v209_v40  ;;  %v930_v52 = vld [vmem:[%s1165_s5 + $0x38] sm:$0x3] }
  0x3b   : > { %v506_v62 = vadd.f32 %v476_v46, %v429_v53  ;;  %v745_v63 = vsel %vm358_vm1, %v743_v54, %v744_v55  ;;  %v422_v1 = vmul.f32 %v1199_v28, %v1183_v12  ;;  %v444_v2 = vmul.f32 %v1199_v28, %v1187_v15 }
  0x3c   : > { %v286_v6 = vsel %vm280_vm0, %v284_v56, %v285_v59  ;;  %v362_v7 = vrot.slane %v328_v60, 2  ;;  %v363_v8 = vrot.slane %v329_v61, 2  ;;  %v445_v9 = vmul.f32 %v1187_v15, %v928_v57 }
  0x3d   : > { %v583_v11 = vadd.f32 %v553_v49, %v506_v62  ;;  %v314_v13 = vadd.f32 %v286_v6, %v236_v51  ;;  %v477_v10 = vrot.slane %v444_v2, 1  ;;  %v521_v14 = vmul.f32 %v1199_v28, %v1189_v16 }
  0x3e   : > { %v364_v19 = vsel %vm358_vm1, %v362_v7, %v363_v8  ;;  %v478_v20 = vrot.slane %v445_v9, 1  ;;  %v522_v21 = vmul.f32 %v1189_v16, %v928_v57  ;;  %v614_v22 = vmul.f32 %v1201_v29, %v1237_v17 }
  0x3f   : > { %v621_v23 = vadd.f32 %v613_v33, %v583_v11  ;;  %v392_v24 = vadd.f32 %v364_v19, %v314_v13  ;;  %v554_v25 = vrot.slane %v521_v14, 2  ;;  %v636_v26 = vmul.f32 %v1203_v30, %v1237_v17  ;;  %v211_v33 = vld [vmem:[%s1165_s5 + $0x28] sm:$0x3]  ;;  %v1278_v13 = vld [vmem:[%s1165_s5 + $0x40] sm:$0xff] }
  0x40   : > { %v479_v27 = vsel %vm280_vm0, %v477_v10, %v478_v20  ;;  %v555_v31 = vrot.slane %v522_v21, 2  ;;  %v637_v32 = vmul.f32 %v1203_v30, %v947_v18  ;;  %v713_v34 = vmul.f32 %v1211_v35, %v1237_v17  ;;  %v949_v10 = vld [vmem:[%s1165_s5 + $0x48] sm:$0x3] }
  0x41   : > { %v698_v36 = vadd.f32 %v668_v58, %v621_v23  ;;  %v430_v37 = vadd.f32 %v422_v1, %v392_v24  ;;  %v669_v38 = vrot.slane %v636_v26, 1  ;;  %v714_v39 = vmul.f32 %v1211_v35, %v947_v18 }
  0x42   : > { %v556_v40 = vsel %vm358_vm1, %v554_v25, %v555_v31  ;;  %v670_v41 = vrot.slane %v637_v32, 1  ;;  %v746_v42 = vrot.slane %v713_v34, 2  ;;  %v229_v43 = vmul.f32 %v1199_v28, %v1171_v3  ;;  %v213_v32 = vld [vmem:[%s1165_s5 + $0x38] sm:$0x3] }
  0x43   : > { %v1255_v44 = vadd.f32 %v745_v63, %v698_v36  ;;  %v507_v45 = vadd.f32 %v479_v27, %v430_v37  ;;  %v747_v46 = vrot.slane %v714_v39, 2  ;;  %v252_v47 = vmul.f32 %v1199_v28, %v1173_v4 }
  0x44   : > { %v671_v48 = vsel %vm280_vm0, %v669_v38, %v670_v41  ;;  %v237_v49 = vadd.f32 %v1167_v0, %v229_v43  ;;  %v253_v50 = vmul.f32 %v1173_v4, %v211_v33  ;;  %v330_v51 = vmul.f32 %v1199_v28, %v1175_v5 }
  0x45   : > { %v783_v53 = vmul.f32 0.5, %v1255_v44  ;;  %v584_v54 = vadd.f32 %v556_v40, %v507_v45  ;;  %v748_v55 = vsel %vm358_vm1, %v746_v42, %v747_v46  ;;  %v287_v56 = vrot.slane %v252_v47, 1  ;;  %v932_v46 = vld [vmem:[%s1165_s5 + $0x48] sm:$0x3] }
  0x46   : > { %v288_v57 = vrot.slane %v253_v50, 1  ;;  %v331_v58 = vmul.f32 %v1175_v5, %v211_v33  ;;  %v365_v59 = vrot.slane %v330_v51, 2  ;;  %v423_v60 = vmul.f32 %v1237_v17, %v1183_v12 }
  0x47   : > { %998 = vtanh.f32 %v783_v53  ;;  %v622_v61 = vadd.f32 %v614_v22, %v584_v54  ;;  %v446_v28 = vmul.f32 %v1237_v17, %v1187_v15  ;;  %v447_v62 = vmul.f32 %v1187_v15, %v930_v52 }
  0x48   : > { %v289_v63 = vsel %vm280_vm0, %v287_v56, %v288_v57  ;;  %v366_v1 = vrot.slane %v331_v58, 2  ;;  %v523_v2 = vmul.f32 %v1237_v17, %v1189_v16  ;;  %v524_v6 = vmul.f32 %v1189_v16, %v930_v52 }
  0x49   : > { %v699_v7 = vadd.f32 %v671_v48, %v622_v61  ;;  %v315_v8 = vadd.f32 %v289_v63, %v237_v49  ;;  %v480_v9 = vrot.slane %v446_v28, 1  ;;  %v481_v11 = vrot.slane %v447_v62, 1 }
  0x4a   : > { %v367_v14 = vsel %vm358_vm1, %v365_v59, %v366_v1  ;;  %v557_v18 = vrot.slane %v523_v2, 2  ;;  %v558_v19 = vrot.slane %v524_v6, 2  ;;  %v615_v20 = vmul.f32 %v1201_v29, %v1278_v13  ;;  %v951_v6 = vld [vmem:[%s1165_s5 + $0x58] sm:$0x3] }
  0x4b   : > { %v1284_v21 = vadd.f32 %v748_v55, %v699_v7  ;;  %v393_v22 = vadd.f32 %v367_v14, %v315_v8  ;;  %v482_v23 = vsel %vm280_vm0, %v480_v9, %v481_v11  ;;  %v638_v24 = vmul.f32 %v1203_v30, %v1278_v13 }
  0x4c   : > { %v559_v25 = vsel %vm358_vm1, %v557_v18, %v558_v19  ;;  %v639_v26 = vmul.f32 %v1203_v30, %v949_v10  ;;  %v715_v27 = vmul.f32 %v1211_v35, %v1278_v13  ;;  %v716_v31 = vmul.f32 %v1211_v35, %v949_v10  ;;  %v1321_v10 = vld [vmem:[%s1165_s5 + $0x50] sm:$0xff] }
  0x4d   : > { %v784_v34 = vmul.f32 0.5, %v1284_v21  ;;  %v431_v36 = vadd.f32 %v423_v60, %v393_v22  ;;  %v672_v37 = vrot.slane %v638_v24, 1  ;;  %v230_v38 = vmul.f32 %v1237_v17, %v1171_v3 }
  0x4e   : > { %v673_v39 = vrot.slane %v639_v26, 1  ;;  %v749_v33 = vrot.slane %v715_v27, 2  ;;  %v750_v40 = vrot.slane %v716_v31, 2  ;;  %v254_v41 = vmul.f32 %v1237_v17, %v1173_v4 }
  0x4f   : > { %1000 = vtanh.f32 %v784_v34  ;;  %v508_v42 = vadd.f32 %v482_v23, %v431_v36  ;;  %v238_v43 = vadd.f32 %v1167_v0, %v230_v38  ;;  %v255_v45 = vmul.f32 %v1173_v4, %v213_v32  ;;  %v215_v34 = vld [vmem:[%s1165_s5 + $0x48] sm:$0x3] }
  0x50   : > { %v674_v47 = vsel %vm280_vm0, %v672_v37, %v673_v39  ;;  %v751_v48 = vsel %vm358_vm1, %v749_v33, %v750_v40  ;;  %v290_v49 = vrot.slane %v254_v41, 1  ;;  %v332_v50 = vmul.f32 %v1237_v17, %v1175_v5 }
  0x51   : > { %v585_v51 = vadd.f32 %v559_v25, %v508_v42  ;;  %v291_v52 = vrot.slane %v255_v45, 1  ;;  %v333_v53 = vmul.f32 %v1175_v5, %v213_v32  ;;  %v424_v54 = vmul.f32 %v1278_v13, %v1183_v12 }
  0x52   : > { %v368_v55 = vrot.slane %v332_v50, 2  ;;  %v448_v56 = vmul.f32 %v1278_v13, %v1187_v15  ;;  %v449_v57 = vmul.f32 %v1187_v15, %v932_v46  ;;  %v525_v58 = vmul.f32 %v1278_v13, %v1189_v16 }
  0x53   : > { %v623_v17 = vadd.f32 %v615_v20, %v585_v51  ;;  %v292_v59 = vsel %vm280_vm0, %v290_v49, %v291_v52  ;;  %v369_v60 = vrot.slane %v333_v53, 2  ;;  %v526_v61 = vmul.f32 %v1189_v16, %v932_v46  ;;  %v934_v46 = vld [vmem:[%s1165_s5 + $0x58] sm:$0x3] }
  0x54   : > { %v999_v28 = vpop.eup %998  ;;  %v316_v62 = vadd.f32 %v292_v59, %v238_v43  ;;  %v483_v63 = vrot.slane %v448_v56, 1  ;;  %v484_v1 = vrot.slane %v449_v57, 1  ;;  %v560_v2 = vrot.slane %v525_v58, 2 }
  0x55   : > { %v799_v7 = vmul.f32 0.5, %v999_v28  ;;  %v700_v8 = vadd.f32 %v674_v47, %v623_v17  ;;  %v370_v9 = vsel %vm358_vm1, %v368_v55, %v369_v60  ;;  %v561_v11 = vrot.slane %v526_v61, 2 }
  0x56   : > { %v394_v14 = vadd.f32 %v370_v9, %v316_v62  ;;  %v485_v18 = vsel %vm280_vm0, %v483_v63, %v484_v1  ;;  %v616_v19 = vmul.f32 %v1201_v29, %v1321_v10  ;;  %v640_v20 = vmul.f32 %v1203_v30, %v1321_v10 }
  0x57   : > { %v807_v22 = vadd.f32 0.5, %v799_v7  ;;  %v1328_v23 = vadd.f32 %v751_v48, %v700_v8  ;;  %v562_v24 = vsel %vm358_vm1, %v560_v2, %v561_v11  ;;  %v641_v25 = vmul.f32 %v1203_v30, %v951_v6  ;;  %v953_v2 = vld [vmem:[%s1165_s5 + $0x68] sm:$0x3]  ;;  %v1370_v11 = vld [vmem:[%s1165_s5 + $0x60] sm:$0xff] }
  0x58   : > { %v432_v26 = vadd.f32 %v424_v54, %v394_v14  ;;  %v675_v27 = vrot.slane %v640_v20, 1  ;;  %v717_v31 = vmul.f32 %v1211_v35, %v1321_v10  ;;  %v718_v32 = vmul.f32 %v1211_v35, %v951_v6 }
  0x59   : > { %v815_v36 = vmul.f32 %v807_v22, %v1255_v44  ;;  %v785_v37 = vmul.f32 0.5, %v1328_v23  ;;  %v676_v38 = vrot.slane %v641_v25, 1  ;;  %v231_v39 = vmul.f32 %v1278_v13, %v1171_v3 }
  0x5a   : > { %v509_v33 = vadd.f32 %v485_v18, %v432_v26  ;;  %v752_v40 = vrot.slane %v717_v31, 2  ;;  %v753_v41 = vrot.slane %v718_v32, 2  ;;  %v256_v42 = vmul.f32 %v1278_v13, %v1173_v4  ;;  %v217_v32 = vld [vmem:[%s1165_s5 + $0x58] sm:$0x3] }
  0x5b   : > { %824 = vst.msk [vmem:[%s1335_s9] sm:$0xff] %vm823_vm2, %v815_v36  ;;  %1002 = vtanh.f32 %v785_v37  ;;  %v677_v43 = vsel %vm280_vm0, %v675_v27, %v676_v38  ;;  %v239_v45 = vadd.f32 %v1167_v0, %v231_v39  ;;  %v257_v44 = vmul.f32 %v1173_v4, %v215_v34 }
  0x5c   : > { %v1001_v47 = vpop.eup %1000  ;;  %v586_v48 = vadd.f32 %v562_v24, %v509_v33  ;;  %v754_v49 = vsel %vm358_vm1, %v752_v40, %v753_v41  ;;  %v293_v50 = vrot.slane %v256_v42, 1  ;;  %v334_v51 = vmul.f32 %v1278_v13, %v1175_v5 }
  0x5d   : > { %v800_v52 = vmul.f32 0.5, %v1001_v47  ;;  %v294_v53 = vrot.slane %v257_v44, 1  ;;  %v335_v54 = vmul.f32 %v1175_v5, %v215_v34  ;;  %v425_v55 = vmul.f32 %v1321_v10, %v1183_v12 }
  0x5e   : > { %v624_v56 = vadd.f32 %v616_v19, %v586_v48  ;;  %v371_v57 = vrot.slane %v334_v51, 2  ;;  %v450_v58 = vmul.f32 %v1321_v10, %v1187_v15  ;;  %v451_v17 = vmul.f32 %v1187_v15, %v934_v46 }
  0x5f   : > { %v808_v59 = vadd.f32 0.5, %v800_v52  ;;  %v295_v60 = vsel %vm280_vm0, %v293_v50, %v294_v53  ;;  %v372_v13 = vrot.slane %v335_v54, 2  ;;  %v527_v61 = vmul.f32 %v1321_v10, %v1189_v16 }
  0x60   : > { %v701_v28 = vadd.f32 %v677_v43, %v624_v56  ;;  %v317_v62 = vadd.f32 %v295_v60, %v239_v45  ;;  %v486_v63 = vrot.slane %v450_v58, 1  ;;  %v487_v1 = vrot.slane %v451_v17, 1 }
  0x61   : > { %v816_v6 = vmul.f32 %v808_v59, %v1284_v21  ;;  %v373_v7 = vsel %vm358_vm1, %v371_v57, %v372_v13  ;;  %v528_v8 = vmul.f32 %v1189_v16, %v934_v46  ;;  %v563_v9 = vrot.slane %v527_v61, 2  ;;  %v936_v46 = vld [vmem:[%s1165_s5 + $0x68] sm:$0x3] }
  0x62   : > { %v1372_v14 = vadd.f32 %v754_v49, %v701_v28  ;;  %v395_v18 = vadd.f32 %v373_v7, %v317_v62  ;;  %v488_v19 = vsel %vm280_vm0, %v486_v63, %v487_v1  ;;  %v617_v20 = vmul.f32 %v1201_v29, %v1370_v11  ;;  %v955_v1 = vld [vmem:[%s1165_s5 + $0x78] sm:$0x3] }
  0x63   : > { %825 = vst.msk [vmem:[%s1335_s9 + $0x8] sm:$0xff] %vm823_vm2, %v816_v6  ;;  %v564_v22 = vrot.slane %v528_v8, 2  ;;  %v642_v21 = vmul.f32 %v1203_v30, %v1370_v11  ;;  %v643_v24 = vmul.f32 %v1203_v30, %v953_v2  ;;  %v719_v25 = vmul.f32 %v1211_v35, %v1370_v11 }
  0x64   : > { %v786_v26 = vmul.f32 0.5, %v1372_v14  ;;  %v433_v27 = vadd.f32 %v425_v55, %v395_v18  ;;  %v720_v31 = vmul.f32 %v1211_v35, %v953_v2  ;;  %v232_v34 = vmul.f32 %v1321_v10, %v1171_v3 }
  0x65   : > { %v565_v36 = vsel %vm358_vm1, %v563_v9, %v564_v22  ;;  %v678_v37 = vrot.slane %v642_v21, 1  ;;  %v679_v38 = vrot.slane %v643_v24, 1  ;;  %v755_v39 = vrot.slane %v719_v25, 2  ;;  %v1413_v9 = vld [vmem:[%s1165_s5 + $0x70] sm:$0xff] }
  0x66   : > { %1004 = vtanh.f32 %v786_v26  ;;  %v510_v33 = vadd.f32 %v488_v19, %v433_v27  ;;  %v756_v40 = vrot.slane %v720_v31, 2  ;;  %v240_v41 = vadd.f32 %v1167_v0, %v232_v34  ;;  %v219_v26 = vld [vmem:[%s1165_s5 + $0x68] sm:$0x3] }
  0x67   : > { %v680_v42 = vsel %vm280_vm0, %v678_v37, %v679_v38  ;;  %v258_v43 = vmul.f32 %v1321_v10, %v1173_v4  ;;  %v259_v45 = vmul.f32 %v1173_v4, %v217_v32  ;;  %v336_v44 = vmul.f32 %v1321_v10, %v1175_v5 }
  0x68   : > { %v1003_v47 = vpop.eup %1002  ;;  %v587_v48 = vadd.f32 %v565_v36, %v510_v33  ;;  %v757_v49 = vsel %vm358_vm1, %v755_v39, %v756_v40  ;;  %v337_v50 = vmul.f32 %v1175_v5, %v217_v32  ;;  %v426_v51 = vmul.f32 %v1370_v11, %v1183_v12 }
  0x69   : > { %v801_v52 = vmul.f32 0.5, %v1003_v47  ;;  %v296_v53 = vrot.slane %v258_v43, 1  ;;  %v297_v54 = vrot.slane %v259_v45, 1  ;;  %v374_v55 = vrot.slane %v336_v44, 2  ;;  %v938_v47 = vld [vmem:[%s1165_s5 + $0x78] sm:$0x3] }
  0x6a   : > { %v625_v56 = vadd.f32 %v617_v20, %v587_v48  ;;  %v375_v57 = vrot.slane %v337_v50, 2  ;;  %v452_v10 = vmul.f32 %v1370_v11, %v1187_v15  ;;  %v453_v58 = vmul.f32 %v1187_v15, %v936_v46 }
  0x6b   : > { %v809_v17 = vadd.f32 0.5, %v801_v52  ;;  %v298_v59 = vsel %vm280_vm0, %v296_v53, %v297_v54  ;;  %v529_v60 = vmul.f32 %v1370_v11, %v1189_v16  ;;  %v530_v13 = vmul.f32 %v1189_v16, %v936_v46 }
  0x6c   : > { %v702_v61 = vadd.f32 %v680_v42, %v625_v56  ;;  %v318_v28 = vadd.f32 %v298_v59, %v240_v41  ;;  %v376_v62 = vsel %vm358_vm1, %v374_v55, %v375_v57  ;;  %v489_v63 = vrot.slane %v452_v10, 1 }
  0x6d   : > { %v817_v2 = vmul.f32 %v809_v17, %v1328_v23  ;;  %v490_v6 = vrot.slane %v453_v58, 1  ;;  %v566_v7 = vrot.slane %v529_v60, 2  ;;  %v567_v8 = vrot.slane %v530_v13, 2 }
  0x6e   : > { %v1415_v18 = vadd.f32 %v757_v49, %v702_v61  ;;  %v396_v19 = vadd.f32 %v376_v62, %v318_v28  ;;  %v618_v20 = vmul.f32 %v1201_v29, %v1413_v9  ;;  %v644_v22 = vmul.f32 %v1203_v30, %v1413_v9 }
  0x6f   : > { %826 = vst.msk [vmem:[%s1335_s9 + $0x10] sm:$0xff] %vm823_vm2, %v817_v2  ;;  %v491_v21 = vsel %vm280_vm0, %v489_v63, %v490_v6  ;;  %v568_v23 = vsel %vm358_vm1, %v566_v7, %v567_v8  ;;  %v645_v24 = vmul.f32 %v1203_v30, %v955_v1  ;;  %v721_v25 = vmul.f32 %v1211_v35, %v1413_v9  ;;  %v956_v63 = vld [vmem:[%s1165_s5 + $0x80] sm:$0xff] }
  0x70   : > { %v787_v27 = vmul.f32 0.5, %v1415_v18  ;;  %v434_v31 = vadd.f32 %v426_v51, %v396_v19  ;;  %v681_v32 = vrot.slane %v644_v22, 1  ;;  %v722_v34 = vmul.f32 %v1211_v35, %v955_v1  ;;  %v957_v1 = vld [vmem:[%s1165_s5 + $0x88] sm:$0x3] }
  0x71   : > { %v682_v36 = vrot.slane %v645_v24, 1  ;;  %v758_v37 = vrot.slane %v721_v25, 2  ;;  %v233_v38 = vmul.f32 %v1370_v11, %v1171_v3  ;;  %v260_v39 = vmul.f32 %v1370_v11, %v1173_v4 }
  0x72   : > { %1006 = vtanh.f32 %v787_v27  ;;  %v511_v33 = vadd.f32 %v491_v21, %v434_v31  ;;  %v759_v40 = vrot.slane %v722_v34, 2  ;;  %v261_v41 = vmul.f32 %v1173_v4, %v219_v26 }
  0x73   : > { %v1005_v42 = vpop.eup %1004  ;;  %v683_v43 = vsel %vm280_vm0, %v681_v32, %v682_v36  ;;  %v241_v45 = vadd.f32 %v1167_v0, %v233_v38  ;;  %v299_v44 = vrot.slane %v260_v39, 1  ;;  %v338_v46 = vmul.f32 %v1370_v11, %v1175_v5 }
  0x74   : > { %v802_v48 = vmul.f32 0.5, %v1005_v42  ;;  %v588_v49 = vadd.f32 %v568_v23, %v511_v33  ;;  %v760_v50 = vsel %vm358_vm1, %v758_v37, %v759_v40  ;;  %v300_v51 = vrot.slane %v261_v41, 1  ;;  %v940_v42 = vld [vmem:[%s1165_s5 + $0x88] sm:$0x3] }
  0x75   : > { %v339_v52 = vmul.f32 %v1175_v5, %v219_v26  ;;  %v377_v53 = vrot.slane %v338_v46, 2  ;;  %v427_v54 = vmul.f32 %v1413_v9, %v1183_v12  ;;  %v454_v55 = vmul.f32 %v1413_v9, %v1187_v15  ;;  %v221_v26 = vld [vmem:[%s1165_s5 + $0x78] sm:$0x3] }
  0x76   : > { %v810_v56 = vadd.f32 0.5, %v802_v48  ;;  %v626_v57 = vadd.f32 %v618_v20, %v588_v49  ;;  %v301_v11 = vsel %vm280_vm0, %v299_v44, %v300_v51  ;;  %v455_v10 = vmul.f32 %v1187_v15, %v938_v47 }
  0x77   : > { %v319_v58 = vadd.f32 %v301_v11, %v241_v45  ;;  %v378_v17 = vrot.slane %v339_v52, 2  ;;  %v492_v59 = vrot.slane %v454_v55, 1  ;;  %v531_v60 = vmul.f32 %v1413_v9, %v1189_v16 }
  0x78   : > { %v818_v13 = vmul.f32 %v810_v56, %v1372_v14  ;;  %v703_v61 = vadd.f32 %v683_v43, %v626_v57  ;;  %v493_v28 = vrot.slane %v455_v10, 1  ;;  %v532_v62 = vmul.f32 %v1189_v16, %v938_v47 }
  0x79   : > { %v379_v2 = vsel %vm358_vm1, %v377_v53, %v378_v17  ;;  %v569_v6 = vrot.slane %v531_v60, 2  ;;  %v619_v7 = vmul.f32 %v1201_v29, %v956_v63  ;;  %v646_v8 = vmul.f32 %v1203_v30, %v956_v63 }
  0x7a   : > { %827 = vst.msk [vmem:[%s1335_s9 + $0x18] sm:$0xff] %vm823_vm2, %v818_v13  ;;  %v1460_v19 = vadd.f32 %v760_v50, %v703_v61  ;;  %v397_v20 = vadd.f32 %v379_v2, %v319_v58  ;;  %v494_v14 = vsel %vm280_vm0, %v492_v59, %v493_v28  ;;  %v570_v22 = vrot.slane %v532_v62, 2  ;;  %v958_v58 = vld [vmem:[%s1165_s5 + $0x90] sm:$0xff] }
  0x7b   : > { %v647_v21 = vmul.f32 %v1203_v30, %v957_v1  ;;  %v684_v23 = vrot.slane %v646_v8, 1  ;;  %v723_v24 = vmul.f32 %v1211_v35, %v956_v63  ;;  %v724_v25 = vmul.f32 %v1211_v35, %v957_v1 }
  0x7c   : > { %v788_v27 = vmul.f32 0.5, %v1460_v19  ;;  %v435_v31 = vadd.f32 %v427_v54, %v397_v20  ;;  %v571_v32 = vsel %vm358_vm1, %v569_v6, %v570_v22  ;;  %v234_v34 = vmul.f32 %v1413_v9, %v1171_v3 }
  0x7d   : > { %v685_v36 = vrot.slane %v647_v21, 1  ;;  %v761_v37 = vrot.slane %v723_v24, 2  ;;  %v762_v38 = vrot.slane %v724_v25, 2  ;;  %v262_v39 = vmul.f32 %v1413_v9, %v1173_v4 }
  0x7e   : > { %1008 = vtanh.f32 %v788_v27  ;;  %v512_v33 = vadd.f32 %v494_v14, %v435_v31  ;;  %v242_v40 = vadd.f32 %v1167_v0, %v234_v34  ;;  %v263_v41 = vmul.f32 %v1173_v4, %v221_v26 }
  0x7f   : > { %v1007_v43 = vpop.eup %1006  ;;  %v686_v45 = vsel %vm280_vm0, %v684_v23, %v685_v36  ;;  %v763_v44 = vsel %vm358_vm1, %v761_v37, %v762_v38  ;;  %v302_v46 = vrot.slane %v262_v39, 1  ;;  %v340_v3 = vmul.f32 %v1413_v9, %v1175_v5 }
  0x80   : > { %v803_v47 = vmul.f32 0.5, %v1007_v43  ;;  %v589_v48 = vadd.f32 %v571_v32, %v512_v33  ;;  %v303_v49 = vrot.slane %v263_v41, 1  ;;  %v341_v50 = vmul.f32 %v1175_v5, %v221_v26  ;;  %v959_v5 = vld [vmem:[%s1165_s5 + $0x98] sm:$0x3] }
  0x81   : > { %v380_v0 = vrot.slane %v340_v3, 2  ;;  %v428_v4 = vmul.f32 %v956_v63, %v1183_v12  ;;  %v456_v51 = vmul.f32 %v956_v63, %v1187_v15  ;;  %v457_v52 = vmul.f32 %v1187_v15, %v940_v42 }
  0x82   : > { %v811_v53 = vadd.f32 0.5, %v803_v47  ;;  %v627_v54 = vadd.f32 %v619_v7, %v589_v48  ;;  %v304_v55 = vsel %vm280_vm0, %v302_v46, %v303_v49  ;;  %v381_v9 = vrot.slane %v341_v50, 2 }
  0x83   : > { %v320_v56 = vadd.f32 %v304_v55, %v242_v40  ;;  %v495_v57 = vrot.slane %v456_v51, 1  ;;  %v496_v11 = vrot.slane %v457_v52, 1  ;;  %v533_v10 = vmul.f32 %v956_v63, %v1189_v16 }
  0x84   : > { %v819_v17 = vmul.f32 %v811_v53, %v1415_v18  ;;  %v704_v12 = vadd.f32 %v686_v45, %v627_v54  ;;  %v382_v59 = vsel %vm358_vm1, %v380_v0, %v381_v9  ;;  %v534_v15 = vmul.f32 %v1189_v16, %v940_v42 }
  0x85   : > { %v398_v60 = vadd.f32 %v382_v59, %v320_v56  ;;  %v497_v13 = vsel %vm280_vm0, %v495_v57, %v496_v11  ;;  %v572_v61 = vrot.slane %v533_v10, 2  ;;  %v648_v1 = vmul.f32 %v1203_v30, %v958_v58 }
  0x86   : > { %828 = vst.msk [vmem:[%s1335_s9 + $0x20] sm:$0xff] %vm823_vm2, %v819_v17  ;;  %v781_v28 = vadd.f32 %v763_v44, %v704_v12  ;;  %v573_v62 = vrot.slane %v534_v15, 2  ;;  %v649_v63 = vmul.f32 %v1203_v30, %v959_v5  ;;  %v725_v18 = vmul.f32 %v1211_v35, %v958_v58 }
  0x87   : > { %v436_v2 = vadd.f32 %v428_v4, %v398_v60  ;;  %v726_v6 = vmul.f32 %v1211_v35, %v959_v5  ;;  %v687_v8 = vrot.slane %v648_v1, 1  ;;  %v620_v22 = vmul.f32 %v1201_v29, %v958_v58 }
  0x88   : > { %v789_v7 = vmul.f32 0.5, %v781_v28  ;;  %v574_v16 = vsel %vm358_vm1, %v572_v61, %v573_v62  ;;  %v688_v20 = vrot.slane %v649_v63, 1  ;;  %v764_v21 = vrot.slane %v725_v18, 2 }
  0x89   : > { %v513_v14 = vadd.f32 %v497_v13, %v436_v2  ;;  %v765_v23 = vrot.slane %v726_v6, 2 }
  0x8a   : > { %1010 = vtanh.f32 %v789_v7  ;;  %v689_v26 = vsel %vm280_vm0, %v687_v8, %v688_v20 }
  0x8b   : > { %v1009_v24 = vpop.eup %1008  ;;  %v590_v25 = vadd.f32 %v574_v16, %v513_v14  ;;  %v766_v31 = vsel %vm358_vm1, %v764_v21, %v765_v23 }
  0x8c   : > { %v804_v30 = vmul.f32 0.5, %v1009_v24 }
  0x8d   : > { %v628_v27 = vadd.f32 %v620_v22, %v590_v25 }
  0x8e   : > { %v812_v35 = vadd.f32 0.5, %v804_v30 }
  0x8f   : > { %v705_v32 = vadd.f32 %v689_v26, %v628_v27 }
  0x90   : > { %v820_v34 = vmul.f32 %v812_v35, %v1460_v19 }
  0x91   : > { %v782_v36 = vadd.f32 %v766_v31, %v705_v32 }
  0x92   : > { %829 = vst.msk [vmem:[%s1335_s9 + $0x28] sm:$0xff] %vm823_vm2, %v820_v34 }
  0x93   : > { %v790_v29 = vmul.f32 0.5, %v782_v36 }
  0x95   : > { %1012 = vtanh.f32 %v790_v29 }
  0x97   : > { %v1011_v37 = vpop.eup %1010 }
  0x98   : > { %v805_v38 = vmul.f32 0.5, %v1011_v37 }
  0x9a   : > { %v813_v39 = vadd.f32 0.5, %v805_v38 }
  0x9c   : > { %v821_v33 = vmul.f32 %v813_v39, %v781_v28 }
  0x9e   : > { %830 = vst.msk [vmem:[%s1335_s9 + $0x30] sm:$0xff] %vm823_vm2, %v821_v33 }
  0xa2   : > { %v1013_v40 = vpop.eup %1012 }
  0xa3   : > { %v806_v41 = vmul.f32 0.5, %v1013_v40 }
  0xa5   : > { %v814_v42 = vadd.f32 0.5, %v806_v41 }
  0xa7   : > { %v822_v43 = vmul.f32 %v814_v42, %v782_v36 }
  0xa9   : > { %831 = vst.msk [vmem:[%s1335_s9 + $0x38] sm:$0xff] %vm823_vm2, %v822_v43 }
  0xaa PF: > { %s15_s12 = sadd.s32 1, %s1080_s12  }
  0xab   : > { %p12_p2 = scmp.ge.s32.totalorder %s15_s12, 6  }
  0xad   :  { %14 = sbr.rel (!%p12_p2) target bundleno = 2 (0x2), region = 73 }
  0xb2   :  { %853 = vsyncpa [#allocation3], 1 }
  0xb3   :  { %855 = vsyncpa [#allocation3 + $0x1], 1 }
  0xb4   :  { %856 = vsyncpa [#allocation5], 1 }

// kernel: vss_forward.7
= control target key start
LH: loop header
LB: loop body
LE: loop exit
PB: predicated region body
PF: predicated region fallthrough
CT: control target
= control target key end

     0   :  { %s494_s9 = smov 0   ;;  %s587_s0 = inlined_call_operand.vmem [shape: f32[256,32], index: 0, kind: input, shape index: {}]   ;;  %s588_s1 = inlined_call_operand.vmem [shape: bf16[32,256], index: 1, kind: input, shape index: {}]   ;;  %s589_s2 = inlined_call_operand.vmem [shape: f32[256,256], index: 2, kind: output, shape index: {}]  }
   0x1 LB: > { %s426_s10 = sadd.s32 4294967295, %s476_s9   ;;  %p430_p0 = scmp.ge.s32.totalorder %s476_s9, 1  ;;  %s476_s9 = sphi %s494_s9, %s12_s9  }
   0x2   : > { %p113_p1 = scmp.lt.s32.totalorder %s476_s9, 3 }
   0x4   : > { %p114_p2 = pnand %p430_p0, %p113_p1 }
   0x5   : > { %s431_s13 = sshll.u32 (!%p114_p2), %s426_s10, 4 }
   0x6   : > { %117 = sbr.rel (%p114_p2) target bundleno = 245 (0xf5), region = 28  ;;  %p137_p3 = scmp.lt.s32.totalorder (!%p114_p2), %s431_s13, 31 }
   0xb   : > { %v464_v0 = vld [vmem:[%s588_s1 + $0x14] ss:$8 sps:$4 sm:$0xff]   ;;  %v466_v1 = vld [vmem:[%s588_s1 + $0x10] ss:$8 sps:$4 sm:$0xff]   ;;  %v478_v2 = vmov 0   ;;  %s591_s13 = smov (!%p137_p3, %s431_s13), 31 }
   0xc   : > { %255 = vmatprep.mubr.bf16.mxu0 %v478_v2  ;;  %295 = vmatprep.mubr.bf16.mxu1 %v478_v2  ;;  %v467_v3 = vld [vmem:[%s588_s1 + $0x4] ss:$8 sps:$4 sm:$0xff]   ;;  %v469_v4 = vld [vmem:[%s588_s1] ss:$8 sps:$4 sm:$0xff]   ;;  %s432_s20 = sshll.u32 %s591_s13, 3  ;;  %vm198_vm0 = vcmask 261120  }
   0xd   : > { %235 = vmatprep.subr.bf16.mxu0 %v464_v0  ;;  %451 = vmatprep.subr.bf16.mxu1 %v464_v0  ;;  %s520_s23 = scalar_lea.vmem %s587_s0, %s432_s20  ;;  %s450_s24 = sshll.u32 %s591_s13, 4 }
   0xe   : > { %236 = vmatpush1.bf16.msra.mxu0 %v466_v1  ;;  %453 = vmatpush1.bf16.msra.mxu1 %v466_v1  ;;  %v150_v5 = vld [vmem:[%s520_s23] sm:$0xff]  ;;  %v151_v6 = vld [vmem:[%s520_s23 + $0x8] sm:$0xff]  ;;  %v152_v11 = vld [vmem:[%s520_s23 + $0x10] sm:$0xff]  ;;  %s550_s27 = scalar_lea.vmem %s589_s2, %s450_s24 }
   0xf   : > { %237 = vmatprep.subr.bf16.mxu0 %v467_v3  ;;  %452 = vmatprep.subr.bf16.mxu1 %v467_v3  ;;  %v158_v7 = vld [vmem:[%s520_s23 + $0x40] sm:$0xff]  ;;  %v166_v8 = vpack.c.bf16 %v151_v6, %v150_v5  ;;  %v159_v9 = vld [vmem:[%s520_s23 + $0x48] sm:$0xff]  ;;  %v153_v12 = vld [vmem:[%s520_s23 + $0x18] sm:$0xff] }
  0x10   : > { %v170_v10 = vpack.c.bf16 %v159_v9, %v158_v7  ;;  %v160_v13 = vld [vmem:[%s520_s23 + $0x50] sm:$0xff]  ;;  %v161_v14 = vld [vmem:[%s520_s23 + $0x58] sm:$0xff]  ;;  %v167_v15 = vpack.c.bf16 %v153_v12, %v152_v11  ;;  %v154_v17 = vld [vmem:[%s520_s23 + $0x20] sm:$0xff] }
  0x11   : > { %v171_v16 = vpack.c.bf16 %v161_v14, %v160_v13  ;;  %v155_v18 = vld [vmem:[%s520_s23 + $0x28] sm:$0xff]  ;;  %v162_v19 = vld [vmem:[%s520_s23 + $0x60] sm:$0xff]  ;;  %v156_v23 = vld [vmem:[%s520_s23 + $0x30] sm:$0xff] }
  0x12   : > { %238 = vmatpush1.bf16.msra.mxu0 %v469_v4  ;;  %454 = vmatpush1.bf16.msra.mxu1 %v469_v4  ;;  %v163_v20 = vld [vmem:[%s520_s23 + $0x68] sm:$0xff]  ;;  %v168_v21 = vpack.c.bf16 %v155_v18, %v154_v17  ;;  %v157_v24 = vld [vmem:[%s520_s23 + $0x38] sm:$0xff]  ;;  %v164_v25 = vld [vmem:[%s520_s23 + $0x70] sm:$0xff] }
  0x13   : > { %v172_v22 = vpack.c.bf16 %v163_v20, %v162_v19  ;;  %v165_v26 = vld [vmem:[%s520_s23 + $0x78] sm:$0xff]  ;;  %v169_v27 = vpack.c.bf16 %v157_v24, %v156_v23 }
  0x14   : > { %v173_v28 = vpack.c.bf16 %v165_v26, %v164_v25 }
  0x15   : > { %440 = vmatmul.mubr.msk.bf16.vlgmr.msra.gmra.mxu0 %vm198_vm0, %v166_v8  ;;  %444 = vmatmul.mubr.msk.bf16.vlgmr.msra.gmra.mxu1 %vm198_vm0, %v170_v10 }
  0x16   : > { %265 = vmatprep.mubr.bf16.mxu0 %v478_v2  ;;  %305 = vmatprep.mubr.bf16.mxu1 %v478_v2 }
  0x1d   : > { %441 = vmatmul.mubr.msk.bf16.gmra.mxu0 %vm198_vm0, %v167_v15  ;;  %445 = vmatmul.mubr.msk.bf16.gmra.mxu1 %vm198_vm0, %v171_v16 }
  0x1e   : > { %275 = vmatprep.mubr.bf16.mxu0 %v478_v2  ;;  %315 = vmatprep.mubr.bf16.mxu1 %v478_v2 }
  0x25   : > { %442 = vmatmul.mubr.msk.bf16.gmra.mxu0 %vm198_vm0, %v168_v21  ;;  %446 = vmatmul.mubr.msk.bf16.gmra.mxu1 %vm198_vm0, %v172_v22 }
  0x26   : > { %285 = vmatprep.mubr.bf16.mxu0 %v478_v2  ;;  %325 = vmatprep.mubr.bf16.mxu1 %v478_v2 }
  0x2d   : > { %443 = vmatmul.mubr.msk.bf16.gmra.mxu0 %vm198_vm0, %v169_v27  ;;  %447 = vmatmul.mubr.msk.bf16.gmra.mxu1 %vm198_vm0, %v173_v28 }
  0xd5   : > { %v257_v29 = vpop.f32.mrf.mxu0  ;;  %v297_v30 = vpop.f32.mrf.mxu1 }
  0xd6   : > { %336 = vst [vmem:[%s550_s27] sm:$0xff] %v257_v29  ;;  %352 = vst [vmem:[%s550_s27 + $0x80] sm:$0xff] %v297_v30 }
  0xd7   : > { %v259_v31 = vpop.f32.mrf.mxu0  ;;  %v299_v32 = vpop.f32.mrf.mxu1 }
  0xd8   : > { %337 = vst [vmem:[%s550_s27 + $0x8] sm:$0xff] %v259_v31  ;;  %353 = vst [vmem:[%s550_s27 + $0x88] sm:$0xff] %v299_v32 }
  0xd9   : > { %v261_v33 = vpop.f32.mrf.mxu0  ;;  %v301_v34 = vpop.f32.mrf.mxu1 }
  0xda   : > { %338 = vst [vmem:[%s550_s27 + $0x10] sm:$0xff] %v261_v33  ;;  %354 = vst [vmem:[%s550_s27 + $0x90] sm:$0xff] %v301_v34 }
  0xdb   : > { %v263_v35 = vpop.f32.mrf.mxu0  ;;  %v303_v36 = vpop.f32.mrf.mxu1 }
  0xdc   : > { %339 = vst [vmem:[%s550_s27 + $0x18] sm:$0xff] %v263_v35  ;;  %355 = vst [vmem:[%s550_s27 + $0x98] sm:$0xff] %v303_v36 }
  0xdd   : > { %v267_v37 = vpop.f32.mrf.mxu0  ;;  %v307_v38 = vpop.f32.mrf.mxu1 }
  0xde   : > { %340 = vst [vmem:[%s550_s27 + $0x20] sm:$0xff] %v267_v37  ;;  %356 = vst [vmem:[%s550_s27 + $0xa0] sm:$0xff] %v307_v38 }
  0xdf   : > { %v269_v39 = vpop.f32.mrf.mxu0  ;;  %v309_v40 = vpop.f32.mrf.mxu1 }
  0xe0   : > { %341 = vst [vmem:[%s550_s27 + $0x28] sm:$0xff] %v269_v39  ;;  %357 = vst [vmem:[%s550_s27 + $0xa8] sm:$0xff] %v309_v40 }
  0xe1   : > { %v271_v41 = vpop.f32.mrf.mxu0  ;;  %v311_v42 = vpop.f32.mrf.mxu1 }
  0xe2   : > { %342 = vst [vmem:[%s550_s27 + $0x30] sm:$0xff] %v271_v41  ;;  %358 = vst [vmem:[%s550_s27 + $0xb0] sm:$0xff] %v311_v42 }
  0xe3   : > { %v273_v43 = vpop.f32.mrf.mxu0  ;;  %v313_v44 = vpop.f32.mrf.mxu1 }
  0xe4   : > { %343 = vst [vmem:[%s550_s27 + $0x38] sm:$0xff] %v273_v43  ;;  %359 = vst [vmem:[%s550_s27 + $0xb8] sm:$0xff] %v313_v44 }
  0xe5   : > { %v277_v45 = vpop.f32.mrf.mxu0  ;;  %v317_v46 = vpop.f32.mrf.mxu1 }
  0xe6   : > { %344 = vst [vmem:[%s550_s27 + $0x40] sm:$0xff] %v277_v45  ;;  %360 = vst [vmem:[%s550_s27 + $0xc0] sm:$0xff] %v317_v46 }
  0xe7   : > { %v279_v47 = vpop.f32.mrf.mxu0  ;;  %v319_v48 = vpop.f32.mrf.mxu1 }
  0xe8   : > { %345 = vst [vmem:[%s550_s27 + $0x48] sm:$0xff] %v279_v47  ;;  %361 = vst [vmem:[%s550_s27 + $0xc8] sm:$0xff] %v319_v48 }
  0xe9   : > { %v281_v49 = vpop.f32.mrf.mxu0  ;;  %v321_v50 = vpop.f32.mrf.mxu1 }
  0xea   : > { %346 = vst [vmem:[%s550_s27 + $0x50] sm:$0xff] %v281_v49  ;;  %362 = vst [vmem:[%s550_s27 + $0xd0] sm:$0xff] %v321_v50 }
  0xeb   : > { %v283_v51 = vpop.f32.mrf.mxu0  ;;  %v323_v52 = vpop.f32.mrf.mxu1 }
  0xec   : > { %347 = vst [vmem:[%s550_s27 + $0x58] sm:$0xff] %v283_v51  ;;  %363 = vst [vmem:[%s550_s27 + $0xd8] sm:$0xff] %v323_v52 }
  0xed   : > { %v287_v53 = vpop.f32.mrf.mxu0  ;;  %v327_v54 = vpop.f32.mrf.mxu1 }
  0xee   : > { %348 = vst [vmem:[%s550_s27 + $0x60] sm:$0xff] %v287_v53  ;;  %364 = vst [vmem:[%s550_s27 + $0xe0] sm:$0xff] %v327_v54 }
  0xef   : > { %v289_v55 = vpop.f32.mrf.mxu0  ;;  %v329_v56 = vpop.f32.mrf.mxu1 }
  0xf0   : > { %349 = vst [vmem:[%s550_s27 + $0x68] sm:$0xff] %v289_v55  ;;  %365 = vst [vmem:[%s550_s27 + $0xe8] sm:$0xff] %v329_v56 }
  0xf1   : > { %v291_v57 = vpop.f32.mrf.mxu0  ;;  %v331_v58 = vpop.f32.mrf.mxu1 }
  0xf2   : > { %350 = vst [vmem:[%s550_s27 + $0x70] sm:$0xff] %v291_v57  ;;  %366 = vst [vmem:[%s550_s27 + $0xf0] sm:$0xff] %v331_v58 }
  0xf3   : > { %v293_v59 = vpop.f32.mrf.mxu0  ;;  %v333_v60 = vpop.f32.mrf.mxu1 }
  0xf4   : > { %351 = vst [vmem:[%s550_s27 + $0x78] sm:$0xff] %v293_v59  ;;  %367 = vst [vmem:[%s550_s27 + $0xf8] sm:$0xff] %v333_v60 }
  0xf5 PF: > { %s12_s9 = sadd.s32 1, %s476_s9  }
  0xf6   : > { %p9_p4 = scmp.ge.s32.totalorder %s12_s9, 4  }
  0xf8   :  { %11 = sbr.rel (!%p9_p4) target bundleno = 1 (0x1), region = 58 }

// kernel: vss_forward.8
= control target key start
LH: loop header
LB: loop body
LE: loop exit
PB: predicated region body
PF: predicated region fallthrough
CT: control target
= control target key end

     0   :  { %s1810_s24 = smov 0   ;;  %s1812_s25 = smov 0   ;;  %s2652_s0 = inlined_call_operand.vmem [shape: f32[4,64,128], index: 0, kind: input, shape index: {}]   ;;  %s2653_s1 = inlined_call_operand.vmem [shape: f32[4,64,128], index: 1, kind: input, shape index: {}]   ;;  %s2654_s2 = inlined_call_operand.vmem [shape: f32[16,128], index: 2, kind: input, shape index: {}]   ;;  %s2655_s3 = inlined_call_operand.vmem [shape: f32[4,64,16,4], index: 3, kind: input, shape index: {}]   ;;  %s2656_s4 = inlined_call_operand.vmem [shape: f32[4,64,16,4], index: 4, kind: input, shape index: {}]   ;;  %s2657_s5 = inlined_call_operand.vmem [shape: f32[1,128], index: 5, kind: input, shape index: {}]   ;;  %s2658_s6 = inlined_call_operand.vmem [shape: f32[1,128], index: 6, kind: input, shape index: {}]   ;;  %s2659_s7 = inlined_call_operand.vmem [shape: f32[4,64,128], index: 7, kind: output, shape index: {}]  }
   0x1   :  { %s1814_s26 = smov 0  }
   0x2 LB: > { %s29_s27 = sadd.s32 1, %s1748_s25  ;;  %p1588_p0 = scmp.ge.s32.totalorder %s1752_s26, 1  ;;  %s1752_s26 = sphi %s1814_s26, %s17_s26   ;;  %s1748_s25 = sphi %s1812_s25, %s2703_s25   ;;  %s1744_s24 = sphi %s1810_s24, %s2702_s24  }
   0x3   : > { %p31_p1 = scmp.ge.s32.totalorder %s29_s27, 4  ;;  %p311_p2 = scmp.lt.s32.totalorder %s1752_s26, 5 }
   0x5   : > { %s2705_s27 = smov (%p31_p1, %s29_s27), 0  ;;  %p312_p3 = pnand %p1588_p0, %p311_p2 }
   0x6   : > { %p381_p4 = scmp.lt.s32.totalorder (!%p312_p3), %s1744_s24, 3  ;;  %s1876_s10 = smov (!%p312_p3), 0  }
   0x7   : > { %315 = sbr.rel (%p312_p3) target bundleno = 450 (0x1c2), region = 48 }
   0xc   : > { %v1831_v0 = vld [vmem:[%s2654_s2] sm:$0xff]  ;;  %v1836_v1 = vld [vmem:[%s2654_s2 + $0x8] sm:$0xff]  ;;  %s2707_s24 = smov (!%p381_p4, %s1744_s24), 3  ;;  %v1872_v4 = vmov 0.0   ;;  %v1874_v5 = vmov 0.0  }
   0xd   : > { %v1841_v2 = vld [vmem:[%s2657_s5] ss:$0 sm:$0xff]  ;;  %s1848_s13 = sshll.u32 %s2707_s24, 6  ;;  %s1607_s14 = sshll.u32 %s2707_s24, 10 }
   0xe   : > { %2668 = vst [vmem:[#allocation3_spill] sm:$0xff] %v1841_v2  ;;  %v1846_v3 = vld [vmem:[%s2658_s6] ss:$0 sm:$0xff]  ;;  %s388_s17 = scalar_lea.vmem %s2652_s0, %s1848_s13  ;;  %s398_s20 = scalar_lea.vmem %s2653_s1, %s1848_s13 }
   0xf   : > { %2669 = vst [vmem:[#allocation4_spill] sm:$0xff] %v1846_v3  ;;  %s1861_s23 = scalar_lea.vmem %s2655_s3, %s1607_s14  ;;  %s1866_s30 = scalar_lea.vmem %s2656_s4, %s1607_s14 }
  0x10   : > { %s430_s9 = scalar_lea.vmem %s2659_s7, %s1848_s13 }
  0x11 LB: >> { %v1766_v6 = vmov 0   ;;  %s1610_s11 = sshll.u32 %s1764_s10, 7  ;;  %v1767_v24 = vmov 1   ;;  %v2660_v31 = vmov 2   ;;  %v2662_v35 = vmov 3   ;;  %s2164_s15 = sshll.u32 %s1764_s10, 3  ;;  %s1764_s10 = sphi %s1876_s10, %s449_s10   ;;  %v1760_v5 = vphi %v1874_v5, %v2701_v5   ;;  %v1756_v4 = vphi %v1872_v4, %v2700_v4  }
  0x12   : >> { %1665 = vset.pattern.permute.xlu1 %v1766_v6  ;;  %1664 = vset.pattern.permute.xlu0 %v1766_v6  ;;  %s481_s12 = scalar_lea.vmem %s1861_s23, %s1610_s11  ;;  %s1942_s14 = scalar_lea.vmem %s1866_s30, %s1610_s11  ;;  %vm787_vm0 = vcmask 261120   ;;  %vm804_vm1 = vcmask 523264   ;;  %vm821_vm2 = vcmask 785408   ;;  %vm1390_vm4 = vcmask 1040384  }
  0x13   : >> { %v1893_v7 = vld [vmem:[%s481_s12 + $0x10] sm:$0xff]  ;;  %v1895_v8 = vld [vmem:[%s481_s12] sm:$0xff]  ;;  %v1899_v9 = vld [vmem:[%s481_s12 + $0x18] sm:$0xff]  ;;  %s455_s19 = scalar_lea.vmem %s398_s20, %s2164_s15  ;;  %s453_s28 = scalar_lea.vmem %s388_s17, %s2164_s15  ;;  %vm1392_vm5 = vcmask 1041408   ;;  %vm1394_vm6 = vcmask 1042432   ;;  %vm1396_vm7 = vcmask 1043456  }
  0x14   : >> { %527 = vperm.xlu1 %1665, %v1893_v7   ;;  %517 = vperm.xlu0 %1664, %v1895_v8   ;;  %v1901_v10 = vld [vmem:[%s481_s12 + $0x8] sm:$0xff]  ;;  %v1907_v12 = vld [vmem:[%s481_s12 + $0x20] sm:$0xff]  ;;  %v1911_v13 = vld [vmem:[%s481_s12 + $0x38] sm:$0xff]  ;;  %vm1398_vm8 = vcmask 1044480   ;;  %vm1400_vm9 = vcmask 1045504   ;;  %vm1402_vm10 = vcmask 1046528   ;;  %s1412_s24 = scalar_lea.vmem %s430_s9, %s2164_s15 }
  0x15   : >> { %v1905_v11 = vld [vmem:[%s481_s12 + $0x28] sm:$0xff]  ;;  %v1913_v14 = vld [vmem:[%s481_s12 + $0x30] sm:$0xff]  ;;  %v1919_v16 = vld [vmem:[%s481_s12 + $0x40] sm:$0xff]  ;;  %s449_s10 = sadd.s32 1, %s1764_s10  }
  0x16   : >> { %v1917_v15 = vld [vmem:[%s481_s12 + $0x48] sm:$0xff]  ;;  %v1923_v17 = vld [vmem:[%s481_s12 + $0x58] sm:$0xff]  ;;  %v1925_v18 = vld [vmem:[%s481_s12 + $0x50] sm:$0xff]  ;;  %p446_p5 = scmp.ge.s32.totalorder %s449_s10, 8  }
  0x17   : >> { %v1929_v19 = vld [vmem:[%s481_s12 + $0x68] sm:$0xff]  ;;  %v1931_v20 = vld [vmem:[%s481_s12 + $0x60] sm:$0xff]  ;;  %v1935_v21 = vld [vmem:[%s481_s12 + $0x78] sm:$0xff] }
  0x18   : >> { %532 = vperm.xlu1 %1665, %v1899_v9   ;;  %522 = vperm.xlu0 %1664, %v1901_v10   ;;  %v1937_v22 = vld [vmem:[%s481_s12 + $0x70] sm:$0xff]  ;;  %v1947_v23 = vld [vmem:[%s1942_s14 + $0x8] sm:$0xff]  ;;  %v1953_v25 = vld [vmem:[%s1942_s14 + $0x20] sm:$0xff] }
  0x19   : >> { %v1958_v26 = vld [vmem:[%s1942_s14 + $0x30] sm:$0xff]  ;;  %v1963_v27 = vld [vmem:[%s1942_s14 + $0x40] sm:$0xff]  ;;  %v2006_v33 = vld [vmem:[%s1942_s14 + $0x18] sm:$0xff] }
  0x1a   : >> { %v1968_v28 = vld [vmem:[%s1942_s14 + $0x50] sm:$0xff]  ;;  %v1973_v29 = vld [vmem:[%s1942_s14 + $0x60] sm:$0xff]  ;;  %v2011_v34 = vld [vmem:[%s1942_s14 + $0x28] sm:$0xff] }
  0x1b   : >> { %v1978_v30 = vld [vmem:[%s1942_s14 + $0x70] sm:$0xff]  ;;  %v2001_v32 = vld [vmem:[%s1942_s14] sm:$0xff]  ;;  %v2016_v36 = vld [vmem:[%s1942_s14 + $0x38] sm:$0xff] }
  0x1c   : >> { %542 = vperm.xlu1 %1665, %v1905_v11   ;;  %537 = vperm.xlu0 %1664, %v1907_v12   ;;  %v2021_v37 = vld [vmem:[%s1942_s14 + $0x48] sm:$0xff]  ;;  %v2026_v38 = vld [vmem:[%s1942_s14 + $0x58] sm:$0xff]  ;;  %v2066_v49 = vld [vmem:[%s1942_s14 + $0x10] sm:$0xff] }
  0x1d   : >> { %v2031_v39 = vld [vmem:[%s1942_s14 + $0x68] sm:$0xff]  ;;  %v2036_v40 = vld [vmem:[%s1942_s14 + $0x78] sm:$0xff] }
  0x1e   : >> { %v2680_v3 = vld [vmem:[#allocation4_spill] sm:$0xff] }
  0x20   : >> { %552 = vperm.xlu1 %1665, %v1911_v13   ;;  %547 = vperm.xlu0 %1664, %v1913_v14  }
  0x24   : >> { %562 = vperm.xlu1 %1665, %v1917_v15   ;;  %557 = vperm.xlu0 %1664, %v1919_v16  }
  0x28   : >> { %572 = vperm.xlu1 %1665, %v1923_v17   ;;  %567 = vperm.xlu0 %1664, %v1925_v18  }
  0x2c   : >> { %582 = vperm.xlu1 %1665, %v1929_v19   ;;  %577 = vperm.xlu0 %1664, %v1931_v20  }
  0x30   : >> { %592 = vperm.xlu1 %1665, %v1935_v21   ;;  %587 = vperm.xlu0 %1664, %v1937_v22  }
  0x34   : >> { %1666 = vset.pattern.permute.xlu1 %v1767_v24  ;;  %845 = vperm.xlu0 %1664, %v1947_v23  }
  0x35   : >> { %600 = vperm.xlu1 %1666, %v1901_v10  }
  0x38   : >> { %860 = vperm.xlu0 %1664, %v1953_v25  }
  0x39   : >> { %604 = vperm.xlu1 %1666, %v1893_v7  }
  0x3c   : >> { %870 = vperm.xlu0 %1664, %v1958_v26  }
  0x3d   : >> { %612 = vperm.xlu1 %1666, %v1907_v12  }
  0x40   : >> { %880 = vperm.xlu0 %1664, %v1963_v27  }
  0x41   : >> { %620 = vperm.xlu1 %1666, %v1913_v14  }
  0x44   : >> { %890 = vperm.xlu0 %1664, %v1968_v28  }
  0x45   : >> { %628 = vperm.xlu1 %1666, %v1919_v16  }
  0x48   : >> { %900 = vperm.xlu0 %1664, %v1973_v29  }
  0x49   : >> { %636 = vperm.xlu1 %1666, %v1925_v18  }
  0x4c   : >> { %910 = vperm.xlu0 %1664, %v1978_v30  }
  0x4d   : >> { %644 = vperm.xlu1 %1666, %v1931_v20  }
  0x50   : >> { %1670 = vset.pattern.permute.xlu0 %v1767_v24 }
  0x51   : >> { %652 = vperm.xlu1 %1666, %v1937_v22   ;;  %596 = vperm.xlu0 %1670, %v1895_v8  }
  0x55   : >> { %1667 = vset.pattern.permute.xlu1 %v2660_v31  ;;  %608 = vperm.xlu0 %1670, %v1899_v9  }
  0x56   : >> { %660 = vperm.xlu1 %1667, %v1895_v8  }
  0x59   : >> { %616 = vperm.xlu0 %1670, %v1905_v11  }
  0x5a   : >> { %668 = vperm.xlu1 %1667, %v1893_v7  }
  0x5d   : >> { %624 = vperm.xlu0 %1670, %v1911_v13  }
  0x5e   : >> { %672 = vperm.xlu1 %1667, %v1899_v9  }
  0x61   : >> { %632 = vperm.xlu0 %1670, %v1917_v15  }
  0x62   : >> { %680 = vperm.xlu1 %1667, %v1905_v11  }
  0x65   : >> { %640 = vperm.xlu0 %1670, %v1923_v17  }
  0x66   : >> { %688 = vperm.xlu1 %1667, %v1911_v13  }
  0x69   : >> { %648 = vperm.xlu0 %1670, %v1929_v19  }
  0x6a   : >> { %696 = vperm.xlu1 %1667, %v1917_v15  }
  0x6d   : >> { %656 = vperm.xlu0 %1670, %v1935_v21  }
  0x6e   : >> { %704 = vperm.xlu1 %1667, %v1923_v17  }
  0x71   : >> { %919 = vperm.xlu0 %1670, %v2001_v32  }
  0x72   : >> { %712 = vperm.xlu1 %1667, %v1929_v19  }
  0x75   : >> { %931 = vperm.xlu0 %1670, %v2006_v33  }
  0x76   : >> { %720 = vperm.xlu1 %1667, %v1935_v21  }
  0x79   : >> { %939 = vperm.xlu0 %1670, %v2011_v34  }
  0x7a   : >> { %1668 = vset.pattern.permute.xlu1 %v2662_v35 }
  0x7b   : >> { %728 = vperm.xlu1 %1668, %v1901_v10  }
  0x7d   : >> { %947 = vperm.xlu0 %1670, %v2016_v36  }
  0x7f   : >> { %732 = vperm.xlu1 %1668, %v1893_v7  }
  0x81   : >> { %955 = vperm.xlu0 %1670, %v2021_v37  }
  0x83   : >> { %740 = vperm.xlu1 %1668, %v1907_v12  }
  0x85   : >> { %963 = vperm.xlu0 %1670, %v2026_v38  }
  0x87   : >> { %748 = vperm.xlu1 %1668, %v1913_v14  }
  0x89   : >> { %971 = vperm.xlu0 %1670, %v2031_v39  }
  0x8b   : >> { %756 = vperm.xlu1 %1668, %v1919_v16  }
  0x8d   : >> { %979 = vperm.xlu0 %1670, %v2036_v40  }
  0x8f   : >> { %v2040_v41 = vpop.permute.xlu1 %527  ;;  %764 = vperm.xlu1 %1668, %v1925_v18   ;;  %v2043_v42 = vpop.permute.xlu0 %517 }
  0x91   : >> { %1672 = vset.pattern.permute.xlu0 %v2660_v31 }
  0x92   : >> { %664 = vperm.xlu0 %1672, %v1901_v10  }
  0x93   : >> { %v2047_v43 = vpop.permute.xlu1 %532  ;;  %772 = vperm.xlu1 %1668, %v1931_v20   ;;  %v2050_v44 = vpop.permute.xlu0 %522 }
  0x96   : >> { %676 = vperm.xlu0 %1672, %v1907_v12  }
  0x97   : >> { %v2053_v45 = vpop.permute.xlu1 %542  ;;  %780 = vperm.xlu1 %1668, %v1937_v22   ;;  %v2056_v46 = vpop.permute.xlu0 %537 }
  0x98   : >> { %2670 = vst [vmem:[#allocation5_spill] sm:$0xff] %v2053_v45 }
  0x9a   : >> { %684 = vperm.xlu0 %1672, %v1913_v14  }
  0x9b   : >> { %v2059_v47 = vpop.permute.xlu1 %552  ;;  %1669 = vset.pattern.permute.xlu1 %v1766_v6  ;;  %v2062_v48 = vpop.permute.xlu0 %547 }
  0x9c   : >> { %840 = vperm.xlu1 %1669, %v2001_v32  }
  0x9e   : >> { %692 = vperm.xlu0 %1672, %v1919_v16  }
  0x9f   : >> { %v2069_v50 = vpop.permute.xlu1 %562  ;;  %v2071_v51 = vpop.permute.xlu0 %557 }
  0xa0   : >> { %850 = vperm.xlu1 %1669, %v2066_v49  }
  0xa2   : >> { %700 = vperm.xlu0 %1672, %v1925_v18  }
  0xa3   : >> { %v2075_v52 = vpop.permute.xlu1 %572  ;;  %v2077_v53 = vpop.permute.xlu0 %567 }
  0xa4   : >> { %855 = vperm.xlu1 %1669, %v2006_v33  }
  0xa6   : >> { %708 = vperm.xlu0 %1672, %v1931_v20  }
  0xa7   : >> { %v2081_v54 = vpop.permute.xlu1 %582  ;;  %v2083_v55 = vpop.permute.xlu0 %577 }
  0xa8   : >> { %865 = vperm.xlu1 %1669, %v2011_v34  }
  0xaa   : >> { %716 = vperm.xlu0 %1672, %v1937_v22  }
  0xab   : >> { %v2087_v56 = vpop.permute.xlu1 %592  ;;  %v2089_v57 = vpop.permute.xlu0 %587 }
  0xac   : >> { %875 = vperm.xlu1 %1669, %v2016_v36  }
  0xae   : >> { %987 = vperm.xlu0 %1672, %v1947_v23  }
  0xaf   : >> { %v2093_v58 = vpop.permute.xlu0 %845 }
  0xb0   : >> { %v2095_v59 = vpop.permute.xlu1 %600  ;;  %885 = vperm.xlu1 %1669, %v2021_v37  }
  0xb2   : >> { %999 = vperm.xlu0 %1672, %v1953_v25  }
  0xb3   : >> { %v2099_v60 = vpop.permute.xlu0 %860 }
  0xb4   : >> { %v2101_v61 = vpop.permute.xlu1 %604  ;;  %895 = vperm.xlu1 %1669, %v2026_v38  }
  0xb6   : >> { %1007 = vperm.xlu0 %1672, %v1958_v26  }
  0xb7   : >> { %v2105_v62 = vpop.permute.xlu0 %870 }
  0xb8   : >> { %v2107_v63 = vpop.permute.xlu1 %612  ;;  %905 = vperm.xlu1 %1669, %v2031_v39  }
  0xba   : >> { %1015 = vperm.xlu0 %1672, %v1963_v27  }
  0xbb   : >> { %v2111_v6 = vpop.permute.xlu0 %880 }
  0xbc   : >> { %2671 = vst [vmem:[#allocation6_spill] sm:$0xff] %v2111_v6  ;;  %v2113_v7 = vpop.permute.xlu1 %620  ;;  %915 = vperm.xlu1 %1669, %v2036_v40   ;;  %v2678_v6 = vmov 2  }
  0xbe   : >> { %1027 = vperm.xlu0 %1672, %v2026_v38  }
  0xbf   : >> { %v2117_v10 = vpop.permute.xlu0 %890 }
  0xc0   : >> { %2672 = vst [vmem:[#allocation7_spill] sm:$0xff] %v2117_v10  ;;  %v2119_v12 = vpop.permute.xlu1 %628  ;;  %1671 = vset.pattern.permute.xlu1 %v1767_v24 }
  0xc1   : >> { %923 = vperm.xlu1 %1671, %v1947_v23  }
  0xc2   : >> { %1031 = vperm.xlu0 %1672, %v1973_v29  }
  0xc3   : >> { %v2124_v14 = vpop.permute.xlu0 %900 }
  0xc4   : >> { %2673 = vst [vmem:[#allocation8_spill] sm:$0xff] %v2124_v14  ;;  %v2126_v16 = vpop.permute.xlu1 %636 }
  0xc5   : >> { %927 = vperm.xlu1 %1671, %v2066_v49  }
  0xc6   : >> { %1043 = vperm.xlu0 %1672, %v2036_v40  }
  0xc7   : >> { %v2130_v18 = vpop.permute.xlu0 %910 }
  0xc8   : >> { %2674 = vst [vmem:[#allocation9_spill] sm:$0xff] %v2130_v18  ;;  %v2132_v20 = vpop.permute.xlu1 %644 }
  0xc9   : >> { %935 = vperm.xlu1 %1671, %v1953_v25  }
  0xca   : >> { %1680 = vset.pattern.permute.xlu0 %v2662_v35 }
  0xcb   : >> { %724 = vperm.xlu0 %1680, %v1895_v8  }
  0xcc   : >> { %v2137_v22 = vpop.permute.xlu1 %652  ;;  %v2139_v24 = vpop.permute.xlu0 %596 }
  0xcd   : >> { %943 = vperm.xlu1 %1671, %v1958_v26  }
  0xcf   : >> { %736 = vperm.xlu0 %1680, %v1899_v9  }
  0xd0   : >> { %v2143_v31 = vpop.permute.xlu0 %608 }
  0xd1   : >> { %951 = vperm.xlu1 %1671, %v1963_v27   ;;  %v2146_v2 = vpop.permute.xlu1 %660 }
  0xd3   : >> { %744 = vperm.xlu0 %1680, %v1905_v11  }
  0xd4   : >> { %v2149_v35 = vpop.permute.xlu0 %616 }
  0xd5   : >> { %2675 = vst [vmem:[#allocation10_spill] sm:$0xff] %v2149_v35  ;;  %959 = vperm.xlu1 %1671, %v1968_v28   ;;  %v2152_v8 = vpop.permute.xlu1 %668 }
  0xd7   : >> { %752 = vperm.xlu0 %1680, %v1911_v13  }
  0xd8   : >> { %v625_v14 = vpop.permute.xlu0 %624 }
  0xd9   : >> { %967 = vperm.xlu1 %1671, %v1973_v29   ;;  %v2156_v9 = vpop.permute.xlu1 %672  ;;  %v795_v10 = vsel %vm787_vm0, %v2059_v47, %v625_v14  ;;  %v456_v14 = vld [vmem:[%s455_s19] sm:$0xff] }
  0xda   : >> { %2676 = vst [vmem:[#allocation11_spill] sm:$0xff] %v2156_v9 }
  0xdb   : >> { %760 = vperm.xlu0 %1680, %v1917_v15  }
  0xdc   : >> { %v633_v18 = vpop.permute.xlu0 %632 }
  0xdd   : >> { %975 = vperm.xlu1 %1671, %v1978_v30   ;;  %v2160_v11 = vpop.permute.xlu1 %680 }
  0xde   : >> { %2677 = vst [vmem:[#allocation12_spill] sm:$0xff] %v2160_v11  ;;  %v797_v11 = vsel %vm787_vm0, %v2069_v50, %v633_v18 }
  0xdf   : >> { %768 = vperm.xlu0 %1680, %v1923_v17  }
  0xe0   : >> { %v641_v13 = vpop.permute.xlu0 %640 }
  0xe1   : >> { %1673 = vset.pattern.permute.xlu1 %v2678_v6  ;;  %v689_v45 = vpop.permute.xlu1 %688 }
  0xe2   : >> { %v2170_v15 = vsel %vm804_vm1, %v795_v10, %v689_v45  ;;  %983 = vperm.xlu1 %1673, %v2001_v32   ;;  %v2188_v10 = vadd.f32 %v2680_v3, %v456_v14 }
  0xe3   : >> { %2679 = vst [vmem:[#allocation13_spill] sm:$0xff] %v2170_v15  ;;  %776 = vperm.xlu0 %1680, %v1929_v19   ;;  %v799_v19 = vsel %vm787_vm0, %v2075_v52, %v641_v13 }
  0xe4   : >> { %v649_v17 = vpop.permute.xlu0 %648  ;;  %v465_v18 = vand.u32 2147483647, %v2188_v10 }
  0xe5   : >> { %v697_v47 = vpop.permute.xlu1 %696 }
  0xe6   : >> { %v2183_v35 = vsel %vm804_vm1, %v797_v11, %v697_v47  ;;  %991 = vperm.xlu1 %1673, %v2066_v49   ;;  %v466_v13 = vsub.f32 0.0, %v465_v18 }
  0xe7   : >> { %784 = vperm.xlu0 %1680, %v1935_v21   ;;  %v801_v21 = vsel %vm787_vm0, %v2081_v54, %v649_v17 }
  0xe8   : >> { %v657_v45 = vpop.permute.xlu0 %656  ;;  %v467_v17 = vmul.f32 1.442695, %v466_v13 }
  0xe9   : >> { %v705_v15 = vpop.permute.xlu1 %704 }
  0xea   : >> { %v2193_v9 = vsel %vm804_vm1, %v799_v19, %v705_v15  ;;  %995 = vperm.xlu1 %1673, %v2006_v33   ;;  %1682 = vpow2.f32 %v467_v17 }
  0xeb   : >> { %1047 = vperm.xlu0 %1680, %v2001_v32   ;;  %v803_v32 = vsel %vm787_vm0, %v2087_v56, %v657_v45  ;;  %v2683_v56 = vmov 3  }
  0xec   : >> { %v2197_v50 = vpop.permute.xlu0 %919 }
  0xed   : >> { %v713_v11 = vpop.permute.xlu1 %712 }
  0xee   : >> { %v2203_v47 = vsel %vm804_vm1, %v801_v21, %v713_v11  ;;  %1003 = vperm.xlu1 %1673, %v2011_v34  }
  0xef   : >> { %2681 = vst [vmem:[#allocation14_spill] sm:$0xff] %v2203_v47  ;;  %1059 = vperm.xlu0 %1680, %v2006_v33  }
  0xf0   : >> { %v2207_v52 = vpop.permute.xlu0 %931 }
  0xf1   : >> { %v721_v15 = vpop.permute.xlu1 %720 }
  0xf2   : >> { %v2212_v14 = vsel %vm804_vm1, %v803_v32, %v721_v15  ;;  %1011 = vperm.xlu1 %1673, %v2016_v36  }
  0xf3   : >> { %2682 = vst [vmem:[#allocation15_spill] sm:$0xff] %v2212_v14  ;;  %1067 = vperm.xlu0 %1680, %v2011_v34  }
  0xf4   : >> { %v2216_v54 = vpop.permute.xlu0 %939 }
  0xf6   : >> { %1019 = vperm.xlu1 %1673, %v2021_v37   ;;  %v729_v33 = vpop.permute.xlu1 %728 }
  0xf7   : >> { %1075 = vperm.xlu0 %1680, %v2016_v36   ;;  %v1683_v13 = vpop.eup %1682 }
  0xf8   : >> { %v2220_v19 = vpop.permute.xlu0 %947 }
  0xfa   : >> { %1674 = vset.pattern.permute.xlu1 %v2683_v56  ;;  %v2223_v45 = vpop.permute.xlu1 %732 }
  0xfb   : >> { %1051 = vperm.xlu1 %1674, %v1947_v23   ;;  %1087 = vperm.xlu0 %1680, %v1968_v28   ;;  %v469_v23 = vadd.f32 1.0, %v1683_v13 }
  0xfc   : >> { %v2227_v34 = vpop.permute.xlu0 %955 }
  0xfd   : >> { %1684 = vlog2.f32 %v469_v23  ;;  %v792_v23 = vsel %vm787_vm0, %v2056_v46, %v2107_v63 }
  0xfe   : >> { %v741_v18 = vpop.permute.xlu1 %740 }
  0xff   : >> { %1055 = vperm.xlu1 %1674, %v2066_v49   ;;  %1103 = vperm.xlu0 %1680, %v1978_v30   ;;  %v789_v49 = vsel %vm787_vm0, %v2050_v44, %v2095_v59 }
 0x100   : >> { %v2231_v21 = vpop.permute.xlu0 %963 }
 0x102   : >> { %v749_v36 = vpop.permute.xlu1 %748 }
 0x103   : >> { %1063 = vperm.xlu1 %1674, %v1953_v25  }
 0x104   : >> { %v2234_v11 = vpop.permute.xlu0 %971 }
 0x106   : >> { %v757_v32 = vpop.permute.xlu1 %756 }
 0x107   : >> { %1071 = vperm.xlu1 %1674, %v1958_v26  }
 0x108   : >> { %v2237_v15 = vpop.permute.xlu0 %979 }
 0x10a   : >> { %v765_v17 = vpop.permute.xlu1 %764 }
 0x10b   : >> { %1675 = vset.pattern.permute.xlu1 %v2678_v6 }
 0x10c   : >> { %1023 = vperm.xlu1 %1675, %v1968_v28  }
 0x10d   : >> { %v665_v25 = vpop.permute.xlu0 %664 }
 0x10e   : >> { %v806_v3 = vsel %vm804_vm1, %v789_v49, %v665_v25  ;;  %v773_v14 = vpop.permute.xlu1 %772  ;;  %v472_v49 = vmul.f32 -0.5, %v1683_v13 }
 0x10f   : >> { %v2246_v26 = vsel %vm821_vm2, %v806_v3, %v729_v33  ;;  %v794_v3 = vsel %vm787_vm0, %v2062_v48, %v2113_v7  ;;  %v475_v48 = vand.u32 2147483647, %v1683_v13 }
 0x110   : >> { %1676 = vset.pattern.permute.xlu1 %v2683_v56  ;;  %v473_v63 = vadd.f32 1.0, %v472_v49 }
 0x111   : >> { %1079 = vperm.xlu1 %1676, %v1963_v27   ;;  %v677_v28 = vpop.permute.xlu0 %676  ;;  %vm476_vm3 = vcmp.lt.f32.partialorder %v475_v48, 0.0004427343 }
 0x112   : >> { %v809_v47 = vsel %vm804_vm1, %v792_v23, %v677_v28  ;;  %v781_v44 = vpop.permute.xlu1 %780 }
 0x113   : >> { %v2255_v59 = vsel %vm821_vm2, %v809_v47, %v741_v18  ;;  %v1685_v47 = vpop.eup %1684  ;;  %v796_v18 = vsel %vm787_vm0, %v2071_v51, %v2119_v12  ;;  %v798_v51 = vsel %vm787_vm0, %v2077_v53, %v2126_v16  ;;  %v800_v16 = vsel %vm787_vm0, %v2083_v55, %v2132_v20 }
 0x114   : >> { %v802_v55 = vsel %vm787_vm0, %v2089_v57, %v2137_v22 }
 0x115   : >> { %1083 = vperm.xlu1 %1676, %v2021_v37   ;;  %v685_v33 = vpop.permute.xlu0 %684 }
 0x116   : >> { %v811_v25 = vsel %vm804_vm1, %v794_v3, %v685_v33  ;;  %v474_v3 = vmul.f32 %v1683_v13, %v473_v63 }
 0x117   : >> { %v2263_v46 = vsel %vm821_vm2, %v811_v25, %v749_v36  ;;  %v841_v27 = vpop.permute.xlu1 %840  ;;  %v1158_v36 = vlaneseq }
 0x118   : >> { %v2267_v23 = vsel %vm787_vm0, %v841_v27, %v2197_v50  ;;  %v471_v50 = vmul.f32 0.6931472, %v1685_v47  ;;  %v464_v27 = vmax.f32 %v2188_v10, 0.0 }
 0x119   : >> { %1677 = vset.pattern.permute.xlu1 %v2678_v6  ;;  %v693_v37 = vpop.permute.xlu0 %692  ;;  %v2285_v25 = vshrl.u32 %v1158_v36, 7 }
 0x11a   : >> { %v813_v7 = vsel %vm804_vm1, %v796_v18, %v693_v37  ;;  %1035 = vperm.xlu1 %1677, %v2031_v39   ;;  %v477_v63 = vsel %vm476_vm3, %v474_v3, %v471_v50 }
 0x11b   : >> { %v2276_v28 = vsel %vm821_vm2, %v813_v7, %v757_v32  ;;  %v2278_v49 = vpop.permute.xlu1 %850  ;;  %v1160_v18 = vsub.s32 0, %v2285_v25  ;;  %v2301_v48 = vadd.f32 %v477_v63, %v464_v27  ;;  %v1189_v3 = vsub.s32 1, %v2285_v25 }
 0x11d   : >> { %v701_v12 = vpop.permute.xlu0 %700  ;;  %v1161_v37 = vrot.slane %v2301_v48, %v1160_v18 }
 0x11e   : >> { %v815_v33 = vsel %vm804_vm1, %v798_v51, %v701_v12  ;;  %1678 = vset.pattern.permute.xlu1 %v2683_v56  ;;  %v1218_v12 = vsub.s32 2, %v2285_v25 }
 0x11f   : >> { %v2289_v32 = vsel %vm821_vm2, %v815_v33, %v765_v17  ;;  %1091 = vperm.xlu1 %1678, %v2026_v38   ;;  %v856_v13 = vpop.permute.xlu1 %855  ;;  %v1163_v57 = vmul.f32 %v1161_v37, %v1836_v1  ;;  %v1162_v50 = vmul.f32 %v1161_v37, %v1831_v0 }
 0x120   : >> { %v2294_v53 = vsel %vm787_vm0, %v856_v13, %v2207_v52  ;;  %v1219_v13 = vrot.slane %v2301_v48, %v1218_v12 }
 0x121   : >> { %v709_v47 = vpop.permute.xlu0 %708 }
 0x122   : >> { %v817_v10 = vsel %vm804_vm1, %v800_v16, %v709_v47  ;;  %v1221_v37 = vmul.f32 %v1219_v13, %v1836_v1 }
 0x123   : >> { %v2304_v17 = vsel %vm821_vm2, %v817_v10, %v773_v14  ;;  %1679 = vset.pattern.permute.xlu1 %v2678_v6  ;;  %v866_v38 = vpop.permute.xlu1 %865 }
 0x124   : >> { %v2309_v52 = vsel %vm787_vm0, %v866_v38, %v2216_v54  ;;  %1039 = vperm.xlu1 %1679, %v1978_v30   ;;  %v1220_v38 = vmul.f32 %v1219_v13, %v1831_v0 }
 0x125   : >> { %v717_v20 = vpop.permute.xlu0 %716 }
 0x126   : >> { %v819_v14 = vsel %vm804_vm1, %v802_v55, %v717_v20 }
 0x127   : >> { %v2320_v6 = vsel %vm821_vm2, %v819_v14, %v781_v44  ;;  %v876_v7 = vpop.permute.xlu1 %875  ;;  %v2664_v14 = vsub.s32 4, %v2285_v25 }
 0x128   : >> { %v2324_v54 = vsel %vm787_vm0, %v876_v7, %v2220_v19  ;;  %1681 = vset.pattern.permute.xlu1 %v2683_v56  ;;  %v1166_v19 = vmul.f32 1.442695, %v1163_v57  ;;  %v2375_v57 = vld [vmem:[%s453_s28] sm:$0xff] }
 0x129   : >> { %1095 = vperm.xlu1 %1681, %v1973_v29   ;;  %v988_v30 = vpop.permute.xlu0 %987  ;;  %v1190_v29 = vrot.slane %v2301_v48, %v1189_v3 }
 0x12a   : >> { %1686 = vpow2.f32 %v1166_v19 }
 0x12b   : >> { %v886_v22 = vpop.permute.xlu1 %885  ;;  %v1191_v33 = vmul.f32 %v1190_v29, %v1831_v0  ;;  %v1192_v63 = vmul.f32 %v1190_v29, %v1836_v1 }
 0x12c   : >> { %v2331_v36 = vsel %vm787_vm0, %v886_v22, %v2227_v34  ;;  %v1277_v22 = vrot.slane %v2301_v48, %v2664_v14 }
 0x12d   : >> { %1099 = vperm.xlu1 %1681, %v2031_v39   ;;  %v2334_v44 = vpop.permute.xlu0 %999  ;;  %v1164_v39 = vmul.f32 1.442695, %v1162_v50  ;;  %v1193_v47 = vmul.f32 1.442695, %v1191_v33  ;;  %v1222_v50 = vmul.f32 1.442695, %v1220_v38  ;;  %v2385_v33 = vmul.f32 %v2301_v48, %v2375_v57 }
 0x12e   : >> { %v2667_v38 = vsub.s32 6, %v2285_v25 }
 0x12f   : >> { %v896_v56 = vpop.permute.xlu1 %895  ;;  %1688 = vpow2.f32 %v1164_v39  ;;  %v2665_v39 = vsub.s32 5, %v2285_v25 }
 0x130   : >> { %v2341_v51 = vsel %vm787_vm0, %v896_v56, %v2231_v21  ;;  %1690 = vpow2.f32 %v1193_v47  ;;  %v1278_v47 = vmul.f32 %v1277_v22, %v1831_v0 }
 0x131   : >> { %1107 = vperm.xlu1 %1681, %v2036_v40   ;;  %v2344_v34 = vpop.permute.xlu0 %1007  ;;  %v2666_v40 = vsub.s32 3, %v2285_v25 }
 0x133   : >> { %v906_v27 = vpop.permute.xlu1 %905  ;;  %v1248_v55 = vrot.slane %v2301_v48, %v2666_v40  ;;  %v1202_v40 = vrot.slane %v2385_v33, %v1189_v3  ;;  %v1363_v3 = vsub.s32 7, %v2285_v25 }
 0x134   : >> { %v2352_v16 = vsel %vm787_vm0, %v906_v27, %v2234_v11  ;;  %v1195_v11 = vmul.f32 1.442695, %v1192_v63 }
 0x135   : >> { %v2354_v21 = vpop.permute.xlu0 %1015  ;;  %v1249_v19 = vmul.f32 %v1248_v55, %v1831_v0  ;;  %v1250_v29 = vmul.f32 %v1248_v55, %v1836_v1 }
 0x136   : >> { %1692 = vpow2.f32 %v1195_v11 }
 0x137   : >> { %v916_v10 = vpop.permute.xlu1 %915  ;;  %v1687_v63 = vpop.eup %1686  ;;  %1694 = vpow2.f32 %v1222_v50  ;;  %v1251_v11 = vmul.f32 1.442695, %v1249_v19 }
 0x138   : >> { %v2369_v20 = vsel %vm787_vm0, %v916_v10, %v2237_v15  ;;  %v1224_v15 = vmul.f32 1.442695, %v1221_v37  ;;  %v1306_v10 = vrot.slane %v2301_v48, %v2665_v39  ;;  %v1279_v37 = vmul.f32 %v1277_v22, %v1836_v1 }
 0x139   : >> { %v2373_v7 = vpop.permute.xlu0 %1027  ;;  %v1335_v39 = vrot.slane %v2301_v48, %v2667_v38  ;;  %v1169_v22 = vmul.f32 %v1756_v4, %v1687_v63  ;;  %v788_v63 = vsel %vm787_vm0, %v2043_v42, %v2139_v24 }
 0x13a   : >> { %1696 = vpow2.f32 %v1224_v15  ;;  %v1307_v15 = vmul.f32 %v1306_v10, %v1831_v0  ;;  %v1308_v38 = vmul.f32 %v1306_v10, %v1836_v1  ;;  %v1364_v10 = vrot.slane %v2301_v48, %v1363_v3 }
 0x13b   : >> { %1698 = vpow2.f32 %v1251_v11  ;;  %v1337_v24 = vmul.f32 %v1335_v39, %v1836_v1 }
 0x13c   : >> { %v924_v56 = vpop.permute.xlu1 %923  ;;  %v1689_v19 = vpop.eup %1688 }
 0x13d   : >> { %v1111_v27 = vsel %vm787_vm0, %v2093_v58, %v924_v56  ;;  %v2389_v13 = vpop.permute.xlu0 %1031  ;;  %v1173_v58 = vrot.slane %v2385_v33, %v1160_v18  ;;  %v1253_v56 = vmul.f32 1.442695, %v1250_v29  ;;  %v1280_v18 = vmul.f32 1.442695, %v1278_v47 }
 0x13e   : >> { %v2397_v55 = vsel %vm804_vm1, %v1111_v27, %v988_v30  ;;  %v2415_v27 = vrot.slane %v2385_v33, %v1218_v12  ;;  %v1282_v29 = vmul.f32 1.442695, %v1279_v37  ;;  %v1336_v12 = vmul.f32 %v1335_v39, %v1831_v0 }
 0x13f   : >> { %v1175_v4 = vmul.f32 %v1173_v58, %v2246_v26  ;;  %1700 = vpow2.f32 %v1253_v56  ;;  %v1168_v11 = vmul.f32 %v1760_v5, %v1689_v19  ;;  %v1309_v26 = vmul.f32 1.442695, %v1307_v15  ;;  %v1691_v56 = vpop.eup %1690 }
 0x140   : >> { %v928_v14 = vpop.permute.xlu1 %927  ;;  %1702 = vpow2.f32 %v1280_v18 }
 0x141   : >> { %v2409_v30 = vsel %vm787_vm0, %v2278_v49, %v928_v14  ;;  %v2411_v50 = vpop.permute.xlu0 %1043  ;;  %v790_v49 = vsel %vm787_vm0, %v2040_v41, %v2101_v61  ;;  %v805_v41 = vsel %vm804_vm1, %v788_v63, %v2146_v2  ;;  %1704 = vpow2.f32 %v1282_v29  ;;  %v2684_v29 = vld [vmem:[#allocation11_spill] sm:$0xff] }
 0x142   : >> { %v807_v5 = vsel %vm804_vm1, %v790_v49, %v2152_v8  ;;  %v1338_v2 = vmul.f32 1.442695, %v1336_v12  ;;  %1706 = vpow2.f32 %v1309_v26  ;;  %v2686_v26 = vld [vmem:[#allocation5_spill] sm:$0xff] }
 0x143   : >> { %v1693_v18 = vpop.eup %1692  ;;  %v824_v15 = vsel %vm821_vm2, %v807_v5, %v2223_v45  ;;  %v1366_v45 = vmul.f32 %v1364_v10, %v1836_v1 }
 0x144   : >> { %v936_v14 = vpop.permute.xlu1 %935 }
 0x145   : >> { %v1114_v47 = vsel %vm787_vm0, %v2099_v60, %v936_v14  ;;  %v1311_v60 = vmul.f32 1.442695, %v1308_v38  ;;  %v2444_v14 = vadd.f32 %v1175_v4, %v1169_v22  ;;  %v1365_v38 = vmul.f32 %v1364_v10, %v1831_v0 }
 0x146   : >> { %v725_v61 = vpop.permute.xlu0 %724  ;;  %v2438_v37 = vsel %vm804_vm1, %v1114_v47, %v2334_v44  ;;  %v791_v44 = vsel %vm787_vm0, %v2047_v43, %v2143_v31  ;;  %v1340_v43 = vmul.f32 1.442695, %v1337_v24  ;;  %v1203_v4 = vmul.f32 %v1202_v40, %v824_v15  ;;  %v2688_v24 = vld [vmem:[#allocation12_spill] sm:$0xff] }
 0x147   : >> { %v822_v42 = vsel %vm821_vm2, %v805_v41, %v725_v61  ;;  %v808_v8 = vsel %vm804_vm1, %v791_v44, %v2684_v29  ;;  %1708 = vpow2.f32 %v1311_v60  ;;  %v1198_v47 = vmul.f32 %v1693_v18, %v2444_v14  ;;  %v2685_v61 = vld [vmem:[#allocation10_spill] sm:$0xff] }
 0x148   : >> { %v1174_v48 = vmul.f32 %v1173_v58, %v822_v42  ;;  %v944_v19 = vpop.permute.xlu1 %943  ;;  %v2687_v42 = vld [vmem:[#allocation6_spill] sm:$0xff]  ;;  %1710 = vpow2.f32 %v1338_v2  ;;  %v1367_v60 = vmul.f32 1.442695, %v1365_v38  ;;  %v2689_v44 = vsub.s32 3, %v2285_v25 }
 0x149   : >> { %v1116_v39 = vsel %vm787_vm0, %v2105_v62, %v944_v19  ;;  %v1695_v62 = vpop.eup %1694  ;;  %1712 = vpow2.f32 %v1340_v43  ;;  %v1369_v2 = vmul.f32 1.442695, %v1366_v45  ;;  %v2690_v45 = vld [vmem:[#allocation13_spill] sm:$0xff] }
 0x14a   : >> { %v737_v58 = vpop.permute.xlu0 %736  ;;  %v2456_v22 = vadd.f32 %v1174_v48, %v1168_v11  ;;  %v2460_v49 = vsel %vm804_vm1, %v1116_v39, %v2344_v34  ;;  %v1697_v11 = vpop.eup %1696  ;;  %v793_v34 = vsel %vm787_vm0, %v2686_v26, %v2685_v61  ;;  %v1260_v15 = vrot.slane %v2385_v33, %v2689_v44 }
 0x14b   : >> { %v825_v31 = vsel %vm821_vm2, %v808_v8, %v737_v58  ;;  %v810_v10 = vsel %vm804_vm1, %v793_v34, %v2688_v24  ;;  %v1699_v39 = vpop.eup %1698  ;;  %1714 = vpow2.f32 %v1367_v60 }
 0x14c   : >> { %v1204_v12 = vmul.f32 %v1202_v40, %v825_v31  ;;  %v952_v63 = vpop.permute.xlu1 %951  ;;  %v1197_v41 = vmul.f32 %v1691_v56, %v2456_v22  ;;  %v1701_v31 = vpop.eup %1700  ;;  %1716 = vpow2.f32 %v1369_v2  ;;  %v1261_v34 = vmul.f32 %v1260_v15, %v2263_v46 }
 0x14d   : >> { %v1118_v5 = vsel %vm787_vm0, %v2687_v42, %v952_v63  ;;  %v1703_v43 = vpop.eup %1702 }
 0x14e   : >> { %v745_v48 = vpop.permute.xlu0 %744  ;;  %v2473_v40 = vadd.f32 %v1204_v12, %v1198_v47  ;;  %v2475_v19 = vadd.f32 %v1203_v4, %v1197_v41  ;;  %v2479_v56 = vsel %vm804_vm1, %v1118_v5, %v2354_v21  ;;  %v1232_v21 = vmul.f32 %v2415_v27, %v2255_v59 }
 0x14f   : >> { %v827_v18 = vsel %vm821_vm2, %v810_v10, %v745_v48  ;;  %v2691_v41 = vsub.s32 4, %v2285_v25  ;;  %v2692_v48 = vsub.s32 5, %v2285_v25 }
 0x150   : >> { %v1233_v38 = vmul.f32 %v2415_v27, %v827_v18  ;;  %v2486_v29 = vpop.permute.xlu1 %959  ;;  %v1227_v8 = vmul.f32 %v1697_v11, %v2473_v40  ;;  %v1226_v58 = vmul.f32 %v1695_v62, %v2475_v19  ;;  %v1705_v62 = vpop.eup %1704 }
 0x151   : >> { %v1289_v11 = vrot.slane %v2385_v33, %v2691_v41  ;;  %v1707_v24 = vpop.eup %1706  ;;  %v1318_v18 = vrot.slane %v2385_v33, %v2692_v48 }
 0x152   : >> { %v753_v4 = vpop.permute.xlu0 %752  ;;  %v2492_v12 = vadd.f32 %v1233_v38, %v1227_v8  ;;  %v2494_v63 = vadd.f32 %v1232_v21, %v1226_v58 }
 0x153   : >> { %v829_v47 = vsel %vm821_vm2, %v2690_v45, %v753_v4  ;;  %v1290_v46 = vmul.f32 %v1289_v11, %v2276_v28  ;;  %v2693_v4 = vsub.s32 6, %v2285_v25 }
 0x154   : >> { %v1262_v61 = vmul.f32 %v1260_v15, %v829_v47  ;;  %v2501_v26 = vpop.permute.xlu1 %967  ;;  %v1256_v59 = vmul.f32 %v1701_v31, %v2492_v12  ;;  %v1255_v27 = vmul.f32 %v1699_v39, %v2494_v63  ;;  %v1709_v44 = vpop.eup %1708 }
 0x155   : >> { %v1711_v8 = vpop.eup %1710  ;;  %v1347_v45 = vrot.slane %v2385_v33, %v2693_v4 }
 0x156   : >> { %v761_v42 = vpop.permute.xlu0 %760  ;;  %v2506_v5 = vadd.f32 %v1262_v61, %v1256_v59  ;;  %v2508_v60 = vadd.f32 %v1261_v34, %v1255_v27  ;;  %v1713_v47 = vpop.eup %1712 }
 0x157   : >> { %v831_v10 = vsel %vm821_vm2, %v2183_v35, %v761_v42  ;;  %v2694_v42 = vld [vmem:[#allocation14_spill] sm:$0xff] }
 0x158   : >> { %v1291_v2 = vmul.f32 %v1289_v11, %v831_v10  ;;  %v2515_v38 = vpop.permute.xlu1 %975  ;;  %v1284_v39 = vmul.f32 %v1703_v43, %v2508_v60  ;;  %v1285_v15 = vmul.f32 %v1705_v62, %v2506_v5  ;;  %v1319_v43 = vmul.f32 %v1318_v18, %v2289_v32  ;;  %v1715_v34 = vpop.eup %1714 }
 0x159   : >> { %v1376_v32 = vrot.slane %v2385_v33, %v1363_v3 }
 0x15a   : >> { %v769_v58 = vpop.permute.xlu0 %768  ;;  %v2520_v21 = vadd.f32 %v1290_v46, %v1284_v39  ;;  %v2522_v31 = vadd.f32 %v1291_v2, %v1285_v15 }
 0x15b   : >> { %v833_v35 = vsel %vm821_vm2, %v2193_v9, %v769_v58  ;;  %v2695_v58 = vld [vmem:[#allocation15_spill] sm:$0xff]  ;;  %v1377_v25 = vmul.f32 %v1376_v32, %v2320_v6 }
 0x15c   : >> { %v1320_v41 = vmul.f32 %v1318_v18, %v833_v35  ;;  %v1313_v28 = vmul.f32 %v1707_v24, %v2520_v21  ;;  %v1314_v11 = vmul.f32 %v1709_v44, %v2522_v31  ;;  %v1717_v24 = vpop.eup %1716  ;;  %v1348_v44 = vmul.f32 %v1347_v45, %v2304_v17 }
 0x15d   : >> { %v984_v62 = vpop.permute.xlu1 %983 }
 0x15e   : >> { %v1126_v61 = vsel %vm804_vm1, %v2267_v23, %v984_v62  ;;  %v777_v59 = vpop.permute.xlu0 %776  ;;  %v2534_v27 = vadd.f32 %v1319_v43, %v1313_v28  ;;  %v2536_v9 = vadd.f32 %v1320_v41, %v1314_v11 }
 0x15f   : >> { %v835_v10 = vsel %vm821_vm2, %v2694_v42, %v777_v59 }
 0x160   : >> { %v1349_v48 = vmul.f32 %v1347_v45, %v835_v10  ;;  %v1342_v18 = vmul.f32 %v1711_v8, %v2534_v27  ;;  %v1343_v23 = vmul.f32 %v1713_v47, %v2536_v9 }
 0x161   : >> { %v992_v2 = vpop.permute.xlu1 %991 }
 0x162   : >> { %v785_v39 = vpop.permute.xlu0 %784  ;;  %v2546_v46 = vadd.f32 %v1348_v44, %v1342_v18  ;;  %v2548_v15 = vadd.f32 %v1349_v48, %v1343_v23  ;;  %v1128_v23 = vsel %vm804_vm1, %v2409_v30, %v992_v2 }
 0x163   : >> { %v837_v35 = vsel %vm821_vm2, %v2695_v58, %v785_v39 }
 0x164   : >> { %v1378_v33 = vmul.f32 %v1376_v32, %v837_v35  ;;  %v1371_v3 = vmul.f32 %v1715_v34, %v2546_v46  ;;  %v1372_v8 = vmul.f32 %v1717_v24, %v2548_v15 }
 0x165   : >> { %v996_v4 = vpop.permute.xlu1 %995 }
 0x166   : >> { %v1048_v17 = vpop.permute.xlu0 %1047  ;;  %v2555_v45 = vadd.f32 %v1377_v25, %v1371_v3   ;;  %v2557_v47 = vadd.f32 %v1378_v33, %v1372_v8   ;;  %v1129_v11 = vsel %vm804_vm1, %v2294_v53, %v996_v4 }
 0x167   : >> { %v1142_v43 = vsel %vm821_vm2, %v1126_v61, %v1048_v17 }
 0x168   : >> { %v1178_v41 = vmul.f32 %v2456_v22, %v1142_v43 }
 0x169   : >> { %v1004_v28 = vpop.permute.xlu1 %1003 }
 0x16a   : >> { %v1060_v6 = vpop.permute.xlu0 %1059  ;;  %v1131_v42 = vsel %vm804_vm1, %v2309_v52, %v1004_v28 }
 0x16b   : >> { %v1145_v62 = vsel %vm821_vm2, %v1129_v11, %v1060_v6 }
 0x16c   : >> { %v1208_v59 = vmul.f32 %v2473_v40, %v1145_v62 }
 0x16d   : >> { %v1012_v34 = vpop.permute.xlu1 %1011 }
 0x16e   : >> { %v1068_v10 = vpop.permute.xlu0 %1067  ;;  %v1133_v22 = vsel %vm804_vm1, %v2324_v54, %v1012_v34 }
 0x16f   : >> { %v1147_v32 = vsel %vm821_vm2, %v1131_v42, %v1068_v10 }
 0x170   : >> { %v1237_v61 = vmul.f32 %v2492_v12, %v1147_v32 }
 0x171   : >> { %v1020_v24 = vpop.permute.xlu1 %1019 }
 0x172   : >> { %v1076_v48 = vpop.permute.xlu0 %1075 }
 0x173   : >> { %v1149_v53 = vsel %vm821_vm2, %v1133_v22, %v1076_v48 }
 0x174   : >> { %v1266_v18 = vmul.f32 %v2506_v5, %v1149_v53 }
 0x176   : >> { %v1052_v44 = vpop.permute.xlu1 %1051  ;;  %v1088_v42 = vpop.permute.xlu0 %1087 }
 0x177   : >> { %v1143_v40 = vsel %vm821_vm2, %v2397_v55, %v1052_v44 }
 0x178   : >> { %v1179_v52 = vmul.f32 %v2444_v14, %v1143_v40 }
 0x17a   : >> { %v1180_v39 = vadd.f32 %v1179_v52, %v1178_v41  ;;  %v1056_v12 = vpop.permute.xlu1 %1055 }
 0x17b   : >> { %v1144_v58 = vsel %vm821_vm2, %v1128_v23, %v1056_v12 }
 0x17c   : >> { %v1181_v35 = vrot.slane %v1180_v39, 4  ;;  %v1207_v54 = vmul.f32 %v2475_v19, %v1144_v58 }
 0x17e   : >> { %v1182_v25 = vadd.f32 %v1181_v35, %v1180_v39  ;;  %v1209_v33 = vadd.f32 %v1208_v59, %v1207_v54  ;;  %v1064_v3 = vpop.permute.xlu1 %1063  ;;  %v1135_v54 = vsel %vm804_vm1, %v2331_v36, %v1020_v24 }
 0x17f   : >> { %v1146_v5 = vsel %vm821_vm2, %v2438_v37, %v1064_v3  ;;  %v2696_v37 = vld [vmem:[#allocation7_spill] sm:$0xff] }
 0x180   : >> { %v1183_v8 = vrot.slane %v1182_v25, 2  ;;  %v1210_v55 = vrot.slane %v1209_v33, 4  ;;  %v1236_v14 = vmul.f32 %v2494_v63, %v1146_v5  ;;  %v1120_v34 = vsel %vm787_vm0, %v2696_v37, %v2486_v29 }
 0x182   : >> { %v1184_v4 = vadd.f32 %v1183_v8, %v1182_v25  ;;  %v1211_v17 = vadd.f32 %v1210_v55, %v1209_v33  ;;  %v1238_v30 = vadd.f32 %v1237_v61, %v1236_v14  ;;  %v1072_v2 = vpop.permute.xlu1 %1071 }
 0x183   : >> { %v1148_v43 = vsel %vm821_vm2, %v2460_v49, %v1072_v2 }
 0x184   : >> { %v1212_v41 = vrot.slane %v1211_v17, 2  ;;  %v1239_v28 = vrot.slane %v1238_v30, 4  ;;  %v1265_v19 = vmul.f32 %v2508_v60, %v1148_v43  ;;  %v1185_v11 = vrot.slane %v1184_v4, 1 }
 0x186   : >> { %v1213_v6 = vadd.f32 %v1212_v41, %v1211_v17  ;;  %v1240_v62 = vadd.f32 %v1239_v28, %v1238_v30  ;;  %v1267_v59 = vadd.f32 %v1266_v18, %v1265_v19  ;;  %v1186_v49 = vadd.f32 %v1185_v11, %v1184_v4 }
 0x187   : >> { %v1024_v63 = vpop.permute.xlu1 %1023 }
 0x188   : >> { %v1214_v10 = vrot.slane %v1213_v6, 1  ;;  %v1241_v32 = vrot.slane %v1240_v62, 2  ;;  %v1268_v61 = vrot.slane %v1267_v59, 4  ;;  %v1136_v22 = vsel %vm804_vm1, %v1120_v34, %v1024_v63 }
 0x189   : >> { %v1152_v48 = vsel %vm821_vm2, %v1136_v22, %v1088_v42 }
 0x18a   : >> { %v1215_v60 = vadd.f32 %v1214_v10, %v1213_v6  ;;  %v1242_v53 = vadd.f32 %v1241_v32, %v1240_v62  ;;  %v1269_v44 = vadd.f32 %v1268_v61, %v1267_v59  ;;  %v1323_v18 = vmul.f32 %v2534_v27, %v1152_v48  ;;  %v1104_v6 = vpop.permute.xlu0 %1103 }
 0x18c   : >> { %v1391_v40 = vsel %vm1390_vm4, %v1186_v49, %v1215_v60  ;;  %v1243_v52 = vrot.slane %v1242_v53, 1  ;;  %v1270_v23 = vrot.slane %v1269_v44, 2  ;;  %v1080_v29 = vpop.permute.xlu1 %1079 }
 0x18d   : >> { %v1150_v39 = vsel %vm821_vm2, %v2479_v56, %v1080_v29 }
 0x18e   : >> { %v1244_v12 = vadd.f32 %v1243_v52, %v1242_v53  ;;  %v1271_v58 = vadd.f32 %v1270_v23, %v1269_v44  ;;  %v1294_v35 = vmul.f32 %v2520_v21, %v1150_v39  ;;  %v1137_v21 = vsel %vm804_vm1, %v2341_v51, %v2373_v7  ;;  %v2698_v7 = vld [vmem:[#allocation8_spill] sm:$0xff] }
 0x18f   : >> { %v1122_v37 = vsel %vm787_vm0, %v2698_v7, %v2501_v26 }
 0x190   : >> { %v1393_v25 = vsel %vm1392_vm5, %v1391_v40, %v1244_v12  ;;  %v1272_v33 = vrot.slane %v1271_v58, 1  ;;  %v1084_v3 = vpop.permute.xlu1 %1083 }
 0x191   : >> { %v1151_v27 = vsel %vm821_vm2, %v1135_v54, %v1084_v3 }
 0x192   : >> { %v1273_v5 = vadd.f32 %v1272_v33, %v1271_v58  ;;  %v1295_v8 = vmul.f32 %v2522_v31, %v1151_v27  ;;  %v2697_v31 = vld [vmem:[#allocation9_spill] sm:$0xff] }
 0x193   : >> { %v1124_v19 = vsel %vm787_vm0, %v2697_v31, %v2515_v38  ;;  %v1138_v38 = vsel %vm804_vm1, %v1122_v37, %v2389_v13  ;;  %v1141_v13 = vsel %vm804_vm1, %v2369_v20, %v2411_v50 }
 0x194   : >> { %v1395_v55 = vsel %vm1394_vm6, %v1393_v25, %v1273_v5  ;;  %v1296_v14 = vadd.f32 %v1295_v8, %v1294_v35  ;;  %v2699_v5 = vld [vmem:[#allocation3_spill] sm:$0xff] }
 0x195   : >> { %v1036_v4 = vpop.permute.xlu1 %1035  ;;  %v1410_v8 = vmul.f32 %v2699_v5, %v2375_v57  ;;  %v2701_v5 = vmov %v2555_v45 }
 0x196   : >> { %v1297_v56 = vrot.slane %v1296_v14, 4  ;;  %v1139_v48 = vsel %vm804_vm1, %v2352_v16, %v1036_v4 }
 0x198   : >> { %v1298_v17 = vadd.f32 %v1297_v56, %v1296_v14 }
 0x19a   : >> { %v1299_v30 = vrot.slane %v1298_v17, 2  ;;  %v1092_v36 = vpop.permute.xlu1 %1091 }
 0x19b   : >> { %v1153_v24 = vsel %vm821_vm2, %v1137_v21, %v1092_v36 }
 0x19c   : >> { %v1300_v2 = vadd.f32 %v1299_v30, %v1298_v17  ;;  %v1324_v43 = vmul.f32 %v2536_v9, %v1153_v24 }
 0x19e   : >> { %v1301_v41 = vrot.slane %v1300_v2, 1  ;;  %v1325_v28 = vadd.f32 %v1324_v43, %v1323_v18 }
 0x19f   : >> { %v1040_v11 = vpop.permute.xlu1 %1039 }
 0x1a0   : >> { %v1302_v62 = vadd.f32 %v1301_v41, %v1300_v2  ;;  %v1326_v59 = vrot.slane %v1325_v28, 4  ;;  %v1140_v51 = vsel %vm804_vm1, %v1124_v19, %v1040_v11 }
 0x1a1   : >> { %v1156_v34 = vsel %vm821_vm2, %v1140_v51, %v1104_v6 }
 0x1a2   : >> { %v1397_v9 = vsel %vm1396_vm7, %v1395_v55, %v1302_v62  ;;  %v1327_v63 = vadd.f32 %v1326_v59, %v1325_v28  ;;  %v1381_v42 = vmul.f32 %v2555_v45, %v1156_v34 }
 0x1a4   : >> { %v1328_v10 = vrot.slane %v1327_v63, 2  ;;  %v1096_v32 = vpop.permute.xlu1 %1095 }
 0x1a5   : >> { %v1154_v61 = vsel %vm821_vm2, %v1138_v38, %v1096_v32 }
 0x1a6   : >> { %v1329_v22 = vadd.f32 %v1328_v10, %v1327_v63  ;;  %v1352_v49 = vmul.f32 %v2546_v46, %v1154_v61 }
 0x1a8   : >> { %v1330_v26 = vrot.slane %v1329_v22, 1  ;;  %v1100_v60 = vpop.permute.xlu1 %1099 }
 0x1a9   : >> { %v1155_v53 = vsel %vm821_vm2, %v1139_v48, %v1100_v60 }
 0x1aa   : >> { %v1331_v44 = vadd.f32 %v1330_v26, %v1329_v22  ;;  %v1353_v18 = vmul.f32 %v2548_v15, %v1155_v53 }
 0x1ac   : >> { %v1399_v40 = vsel %vm1398_vm8, %v1397_v9, %v1331_v44  ;;  %v1354_v52 = vadd.f32 %v1353_v18, %v1352_v49  ;;  %v1108_v23 = vpop.permute.xlu1 %1107 }
 0x1ad   : >> { %v1157_v46 = vsel %vm821_vm2, %v1141_v13, %v1108_v23 }
 0x1ae   : >> { %v1355_v29 = vrot.slane %v1354_v52, 4  ;;  %v1382_v16 = vmul.f32 %v2557_v47, %v1157_v46 }
 0x1b0   : >> { %v1356_v39 = vadd.f32 %v1355_v29, %v1354_v52  ;;  %v1383_v12 = vadd.f32 %v1382_v16, %v1381_v42 }
 0x1b2   : >> { %v1357_v58 = vrot.slane %v1356_v39, 2  ;;  %v1384_v35 = vrot.slane %v1383_v12, 4 }
 0x1b4   : >> { %v1358_v54 = vadd.f32 %v1357_v58, %v1356_v39  ;;  %v1385_v15 = vadd.f32 %v1384_v35, %v1383_v12 }
 0x1b6   : >> { %v1359_v25 = vrot.slane %v1358_v54, 1  ;;  %v1386_v33 = vrot.slane %v1385_v15, 2 }
 0x1b8   : >> { %v1360_v20 = vadd.f32 %v1359_v25, %v1358_v54  ;;  %v1387_v50 = vadd.f32 %v1386_v33, %v1385_v15 }
 0x1ba   : >> { %v1401_v3 = vsel %vm1400_vm9, %v1399_v40, %v1360_v20  ;;  %v1388_v27 = vrot.slane %v1387_v50, 1 }
 0x1bc   : >> { %v1389_v55 = vadd.f32 %v1388_v27, %v1387_v50 }
 0x1bd   : > { %448 = sbr.rel (!%p446_p5) target bundleno = 17 (0x11), region = 103 }
 0x1be   : >> { %v1403_v14 = vsel %vm1402_vm10, %v1401_v3, %v1389_v55 }
 0x1bf   : >> { %v1411_v4 = vadd.f32 %v1410_v8, %v1403_v14 }
 0x1c1   : >> { %1413 = vst [vmem:[%s1412_s24] sm:$0xff] %v1411_v4  ;;  %v2700_v4 = vmov %v2557_v47 }
 0x1c2 PF: > { %s17_s26 = sadd.s32 1, %s1752_s26   ;;  %s2702_s24 = smov %s1748_s25 }
 0x1c3   : > { %p14_p6 = scmp.ge.s32.totalorder %s17_s26, 6   ;;  %s2703_s25 = smov %s2705_s27 }
 0x1c5   :  { %16 = sbr.rel (!%p14_p6) target bundleno = 2 (0x2), region = 114 }

// kernel: vss_forward.9
= control target key start
LH: loop header
LB: loop body
LE: loop exit
PB: predicated region body
PF: predicated region fallthrough
CT: control target
= control target key end

     0   :  { %s1120_s21 = smov 0   ;;  %s1512_s0 = inlined_call_operand.vmem [shape: f32[256,32], index: 0, kind: input, shape index: {}]   ;;  %s1513_s1 = inlined_call_operand.vmem [shape: f32[1,32], index: 1, kind: input, shape index: {}]   ;;  %s1514_s2 = inlined_call_operand.vmem [shape: f32[1,32], index: 2, kind: input, shape index: {}]   ;;  %s1515_s3 = inlined_call_operand.vmem [shape: f32[256,32], index: 3, kind: input, shape index: {}]   ;;  %s1516_s4 = inlined_call_operand.vmem [shape: bf16[32,16], index: 4, kind: input, shape index: {}]   ;;  %s1517_s5 = inlined_call_operand.vmem [shape: f32[256,16], index: 5, kind: input, shape index: {}, may-alias: {5,6}]   ;;  %s1518_s6 = inlined_call_operand.vmem [shape: f32[256,16], index: 6, kind: output, shape index: {}, may-alias: {5,6}]  }
   0x1 LB: > { %s942_s22 = sadd.s32 4294967295, %s1083_s21   ;;  %p946_p0 = scmp.ge.s32.totalorder %s1083_s21, 1  ;;  %s1083_s21 = sphi %s1120_s21, %s16_s21  }
   0x2   : > { %p235_p1 = scmp.lt.s32.totalorder %s1083_s21, 3 }
   0x4   : > { %p236_p2 = pnand %p946_p0, %p235_p1 }
   0x5   : > { %s947_s23 = sshll.u32 (!%p236_p2), %s942_s22, 4 }
   0x6   : > { %239 = sbr.rel (%p236_p2) target bundleno = 561 (0x231), region = 44  ;;  %p276_p3 = scmp.lt.s32.totalorder (!%p236_p2), %s947_s23, 31 }
   0xb   : > { %s1520_s23 = smov (!%p276_p3, %s947_s23), 31  ;;  %vm316_vm0 = vcmask 261120   ;;  %vm845_vm1 = vcmask 130048  }
   0xc   : > { %s1128_s24 = sshll.u32 %s1520_s23, 3 }
   0xd   : > { %s1134_s27 = scalar_lea.vmem %s1512_s0, %s1128_s24  ;;  %s1298_s10 = scalar_lea.vmem %s1515_s3, %s1128_s24 }
   0xe   : > { %v300_v0 = vld [vmem:[%s1134_s27] sm:$0xff]  ;;  %v301_v2 = vld [vmem:[%s1134_s27 + $0x8] sm:$0xff]  ;;  %v302_v8 = vld [vmem:[%s1134_s27 + $0x10] sm:$0xff]  ;;  %s291_s17 = scalar_lea.vmem %s1517_s5, %s1128_s24  ;;  %s1475_s20 = scalar_lea.vmem %s1518_s6, %s1128_s24 }
   0xf   : > { %v308_v1 = vld [vmem:[%s1134_s27 + $0x40] sm:$0xff]  ;;  %v317_v3 = vsel %vm316_vm0, %v300_v0, 0.0  ;;  %v309_v5 = vld [vmem:[%s1134_s27 + $0x48] sm:$0xff]  ;;  %v320_v6 = vsel %vm316_vm0, %v301_v2, 0.0  ;;  %v303_v9 = vld [vmem:[%s1134_s27 + $0x18] sm:$0xff]  ;;  %v323_v10 = vsel %vm316_vm0, %v302_v8, 0.0 }
  0x10   : > { %v341_v4 = vsel %vm316_vm0, %v308_v1, 0.0  ;;  %318 = vadd.xlane.f32.xlu0 %v317_v3  ;;  %v344_v7 = vsel %vm316_vm0, %v309_v5, 0.0  ;;  %v326_v11 = vsel %vm316_vm0, %v303_v9, 0.0  ;;  %v1149_v12 = vld [vmem:[%s1134_s27 + $0x50] sm:$0xff]  ;;  %v1152_v13 = vld [vmem:[%s1134_s27 + $0x58] sm:$0xff]  ;;  %v1159_v16 = vld [vmem:[%s1134_s27 + $0x20] sm:$0xff] }
  0x11   : > { %342 = vadd.xlane.f32.xlu1 %v341_v4  ;;  %v347_v14 = vsel %vm316_vm0, %v1149_v12, 0.0  ;;  %v350_v15 = vsel %vm316_vm0, %v1152_v13, 0.0  ;;  %v1162_v17 = vld [vmem:[%s1134_s27 + $0x28] sm:$0xff]  ;;  %v329_v18 = vsel %vm316_vm0, %v1159_v16, 0.0  ;;  %v1169_v20 = vld [vmem:[%s1134_s27 + $0x60] sm:$0xff]  ;;  %v1179_v24 = vld [vmem:[%s1134_s27 + $0x30] sm:$0xff] }
  0x12   : > { %v332_v19 = vsel %vm316_vm0, %v1162_v17, 0.0  ;;  %v1172_v21 = vld [vmem:[%s1134_s27 + $0x68] sm:$0xff]  ;;  %v353_v22 = vsel %vm316_vm0, %v1169_v20, 0.0  ;;  %v1182_v25 = vld [vmem:[%s1134_s27 + $0x38] sm:$0xff]  ;;  %v335_v26 = vsel %vm316_vm0, %v1179_v24, 0.0  ;;  %v1189_v28 = vld [vmem:[%s1134_s27 + $0x70] sm:$0xff] }
  0x13   : > { %v356_v23 = vsel %vm316_vm0, %v1172_v21, 0.0  ;;  %v338_v27 = vsel %vm316_vm0, %v1182_v25, 0.0  ;;  %v1192_v29 = vld [vmem:[%s1134_s27 + $0x78] sm:$0xff]  ;;  %v359_v30 = vsel %vm316_vm0, %v1189_v28, 0.0 }
  0x14   : > { %321 = vadd.xlane.f32.xlu0 %v320_v6  ;;  %v362_v31 = vsel %vm316_vm0, %v1192_v29, 0.0 }
  0x15   : > { %345 = vadd.xlane.f32.xlu1 %v344_v7 }
  0x18   : > { %324 = vadd.xlane.f32.xlu0 %v323_v10 }
  0x19   : > { %327 = vadd.xlane.f32.xlu1 %v326_v11 }
  0x1c   : > { %348 = vadd.xlane.f32.xlu0 %v347_v14 }
  0x1d   : > { %351 = vadd.xlane.f32.xlu1 %v350_v15 }
  0x20   : > { %330 = vadd.xlane.f32.xlu0 %v329_v18 }
  0x21   : > { %333 = vadd.xlane.f32.xlu1 %v332_v19 }
  0x24   : > { %354 = vadd.xlane.f32.xlu0 %v353_v22 }
  0x25   : > { %357 = vadd.xlane.f32.xlu1 %v356_v23 }
  0x28   : > { %336 = vadd.xlane.f32.xlu0 %v335_v26 }
  0x29   : > { %339 = vadd.xlane.f32.xlu1 %v338_v27 }
  0x2c   : > { %360 = vadd.xlane.f32.xlu0 %v359_v30 }
  0x2d   : > { %363 = vadd.xlane.f32.xlu1 %v362_v31 }
  0x99   : > { %v319_v32 = vpop.xlane.xlu0 %318 }
  0x9a   : > { %v343_v33 = vpop.xlane.xlu1 %342  ;;  %v366_v34 = vmul.f32 0.03125, %v319_v32 }
  0x9b   : > { %v374_v35 = vmul.f32 0.03125, %v343_v33 }
  0x9c   : > { %v1198_v36 = vsub.f32 %v300_v0, %v366_v34 }
  0x9d   : > { %v1200_v37 = vsub.f32 %v308_v1, %v374_v35  ;;  %v322_v38 = vpop.xlane.xlu0 %321 }
  0x9e   : > { %v346_v39 = vpop.xlane.xlu1 %345  ;;  %v367_v40 = vmul.f32 0.03125, %v322_v38  ;;  %v398_v42 = vmul.f32 %v1198_v36, %v1198_v36 }
  0x9f   : > { %v375_v41 = vmul.f32 0.03125, %v346_v39  ;;  %v406_v43 = vmul.f32 %v1200_v37, %v1200_v37 }
  0xa0   : > { %v1206_v44 = vsub.f32 %v301_v2, %v367_v40  ;;  %v414_v46 = vsel %vm316_vm0, %v398_v42, 0.0 }
  0xa1   : > { %v1208_v45 = vsub.f32 %v309_v5, %v375_v41  ;;  %415 = vadd.xlane.f32.xlu0 %v414_v46  ;;  %v325_v47 = vpop.xlane.xlu0 %324  ;;  %v438_v49 = vsel %vm316_vm0, %v406_v43, 0.0 }
  0xa2   : > { %v328_v48 = vpop.xlane.xlu1 %327  ;;  %v368_v50 = vmul.f32 0.03125, %v325_v47  ;;  %v399_v52 = vmul.f32 %v1206_v44, %v1206_v44 }
  0xa3   : > { %v369_v51 = vmul.f32 0.03125, %v328_v48  ;;  %v407_v53 = vmul.f32 %v1208_v45, %v1208_v45 }
  0xa4   : > { %v1216_v54 = vsub.f32 %v302_v8, %v368_v50  ;;  %v417_v56 = vsel %vm316_vm0, %v399_v52, 0.0 }
  0xa5   : > { %v1218_v55 = vsub.f32 %v303_v9, %v369_v51  ;;  %439 = vadd.xlane.f32.xlu0 %v438_v49  ;;  %418 = vadd.xlane.f32.xlu1 %v417_v56  ;;  %v349_v57 = vpop.xlane.xlu0 %348  ;;  %v441_v59 = vsel %vm316_vm0, %v407_v53, 0.0  ;;  %v1012_v53 = vld [vmem:[%s1516_s4] sm:$0xff]  }
  0xa6   : > { %v352_v58 = vpop.xlane.xlu1 %351  ;;  %v376_v60 = vmul.f32 0.03125, %v349_v57  ;;  %v400_v62 = vmul.f32 %v1216_v54, %v1216_v54  ;;  %v1301_v56 = vld [vmem:[%s1298_s10] sm:$0xff]  ;;  %v1304_v57 = vld [vmem:[%s1298_s10 + $0x8] sm:$0xff] }
  0xa7   : > { %v377_v61 = vmul.f32 0.03125, %v352_v58  ;;  %v401_v63 = vmul.f32 %v1218_v55, %v1218_v55  ;;  %v588_v58 = vmul.f32 0.5, %v1301_v56 }
  0xa8   : > { %v1227_v0 = vsub.f32 %v1149_v12, %v376_v60  ;;  %v420_v2 = vsel %vm316_vm0, %v400_v62, 0.0  ;;  %v589_v60 = vmul.f32 0.5, %v1304_v57 }
  0xa9   : > { %v1230_v1 = vsub.f32 %v1152_v13, %v377_v61  ;;  %442 = vadd.xlane.f32.xlu1 %v441_v59  ;;  %421 = vadd.xlane.f32.xlu0 %v420_v2  ;;  %v331_v3 = vpop.xlane.xlu0 %330  ;;  %v423_v5 = vsel %vm316_vm0, %v401_v63, 0.0  ;;  %v1308_v59 = vld [vmem:[%s1298_s10 + $0x40] sm:$0xff]  ;;  %v1312_v61 = vld [vmem:[%s1298_s10 + $0x48] sm:$0xff]  ;;  %1013 = vtanh.f32 %v588_v58  ;;  %v1316_v63 = vld [vmem:[%s1298_s10 + $0x10] sm:$0xff] }
  0xaa   : > { %v334_v4 = vpop.xlane.xlu1 %333  ;;  %v370_v6 = vmul.f32 0.03125, %v331_v3  ;;  %v408_v8 = vmul.f32 %v1227_v0, %v1227_v0  ;;  %v596_v62 = vmul.f32 0.5, %v1308_v59  ;;  %1015 = vtanh.f32 %v589_v60  ;;  %v1320_v3 = vld [vmem:[%s1298_s10 + $0x18] sm:$0xff] }
  0xab   : > { %v371_v7 = vmul.f32 0.03125, %v334_v4  ;;  %v409_v9 = vmul.f32 %v1230_v1, %v1230_v1  ;;  %v597_v2 = vmul.f32 0.5, %v1312_v61  ;;  %v590_v4 = vmul.f32 0.5, %v1316_v63 }
  0xac   : > { %v1239_v10 = vsub.f32 %v1159_v16, %v370_v6  ;;  %v444_v12 = vsel %vm316_vm0, %v408_v8, 0.0  ;;  %1017 = vtanh.f32 %v596_v62  ;;  %v591_v6 = vmul.f32 0.5, %v1320_v3 }
  0xad   : > { %v1242_v11 = vsub.f32 %v1162_v17, %v371_v7  ;;  %424 = vadd.xlane.f32.xlu1 %v423_v5  ;;  %445 = vadd.xlane.f32.xlu0 %v444_v12  ;;  %v355_v13 = vpop.xlane.xlu0 %354  ;;  %v447_v15 = vsel %vm316_vm0, %v409_v9, 0.0  ;;  %v1324_v5 = vld [vmem:[%s1298_s10 + $0x50] sm:$0xff]  ;;  %1019 = vtanh.f32 %v597_v2  ;;  %v1328_v7 = vld [vmem:[%s1298_s10 + $0x58] sm:$0xff] }
  0xae   : > { %v358_v14 = vpop.xlane.xlu1 %357  ;;  %v378_v18 = vmul.f32 0.03125, %v355_v13  ;;  %v402_v22 = vmul.f32 %v1239_v10, %v1239_v10  ;;  %1021 = vtanh.f32 %v590_v4  ;;  %v598_v8 = vmul.f32 0.5, %v1324_v5  ;;  %v1333_v13 = vld [vmem:[%s1298_s10 + $0x20] sm:$0xff] }
  0xaf   : > { %v379_v19 = vmul.f32 0.03125, %v358_v14  ;;  %v403_v16 = vmul.f32 %v1242_v11, %v1242_v11  ;;  %v599_v12 = vmul.f32 0.5, %v1328_v7  ;;  %1023 = vtanh.f32 %v591_v6  ;;  %v1352_v6 = vld [vmem:[%s1298_s10 + $0x38] sm:$0xff] }
  0xb0   : > { %v1251_v23 = vsub.f32 %v1169_v20, %v378_v18  ;;  %v426_v26 = vsel %vm316_vm0, %v402_v22, 0.0  ;;  %1025 = vtanh.f32 %v598_v8 }
  0xb1   : > { %v1254_v17 = vsub.f32 %v1172_v21, %v379_v19  ;;  %448 = vadd.xlane.f32.xlu1 %v447_v15  ;;  %427 = vadd.xlane.f32.xlu0 %v426_v26  ;;  %v337_v27 = vpop.xlane.xlu0 %336  ;;  %v429_v31 = vsel %vm316_vm0, %v403_v16, 0.0  ;;  %v592_v19 = vmul.f32 0.5, %v1333_v13  ;;  %1027 = vtanh.f32 %v599_v12  ;;  %v1337_v26 = vld [vmem:[%s1298_s10 + $0x28] sm:$0xff] }
  0xb2   : > { %v340_v30 = vpop.xlane.xlu1 %339  ;;  %v372_v32 = vmul.f32 0.03125, %v337_v27  ;;  %v410_v34 = vmul.f32 %v1251_v23, %v1251_v23 }
  0xb3   : > { %v373_v33 = vmul.f32 0.03125, %v340_v30  ;;  %v411_v20 = vmul.f32 %v1254_v17, %v1254_v17 }
  0xb4   : > { %v1263_v35 = vsub.f32 %v1179_v24, %v372_v32  ;;  %v450_v38 = vsel %vm316_vm0, %v410_v34, 0.0  ;;  %v1340_v32 = vld [vmem:[%s1298_s10 + $0x60] sm:$0xff] }
  0xb5   : > { %v1266_v21 = vsub.f32 %v1182_v25, %v373_v33  ;;  %430 = vadd.xlane.f32.xlu1 %v429_v31  ;;  %451 = vadd.xlane.f32.xlu0 %v450_v38  ;;  %v361_v39 = vpop.xlane.xlu0 %360  ;;  %v453_v41 = vsel %vm316_vm0, %v411_v20, 0.0 }
  0xb6   : > { %v364_v40 = vpop.xlane.xlu1 %363  ;;  %v380_v42 = vmul.f32 0.03125, %v361_v39  ;;  %v404_v46 = vmul.f32 %v1263_v35, %v1263_v35  ;;  %v1014_v15 = vpop.eup %1013  ;;  %v593_v39 = vmul.f32 0.5, %v1337_v26 }
  0xb7   : > { %v381_v43 = vmul.f32 0.03125, %v364_v40  ;;  %v405_v24 = vmul.f32 %v1266_v21, %v1266_v21  ;;  %v1016_v27 = vpop.eup %1015  ;;  %v620_v34 = vmul.f32 0.5, %v1014_v15  ;;  %v1356_v15 = vld [vmem:[%s1298_s10 + $0x70] sm:$0xff] }
  0xb8   : > { %v1275_v47 = vsub.f32 %v1189_v28, %v380_v42  ;;  %v432_v48 = vsel %vm316_vm0, %v404_v46, 0.0  ;;  %v621_v42 = vmul.f32 0.5, %v1016_v27  ;;  %v600_v46 = vmul.f32 0.5, %v1340_v32 }
  0xb9   : > { %v1278_v25 = vsub.f32 %v1192_v29, %v381_v43  ;;  %454 = vadd.xlane.f32.xlu1 %v453_v41  ;;  %433 = vadd.xlane.f32.xlu0 %v432_v48  ;;  %v435_v49 = vsel %vm316_vm0, %v405_v24, 0.0  ;;  %v1011_v29 = vld [vmem:[%s1516_s4 + $0x8] sm:$0xff]   ;;  %v1018_v33 = vpop.eup %1017 }
  0xba   : > { %v412_v50 = vmul.f32 %v1275_v47, %v1275_v47  ;;  %979 = vmatprep.subr.bf16.mxu0 %v1011_v29  ;;  %999 = vmatprep.subr.bf16.mxu1 %v1011_v29  ;;  %v1344_v43 = vld [vmem:[%s1298_s10 + $0x68] sm:$0xff]  ;;  %v1020_v24 = vpop.eup %1019  ;;  %v637_v2 = vadd.f32 0.5, %v621_v42 }
  0xbb   : > { %v413_v51 = vmul.f32 %v1278_v25, %v1278_v25  ;;  %980 = vmatpush3.bf16.msra.mxu0 %v1011_v29  ;;  %1001 = vmatpush3.bf16.msra.mxu1 %v1011_v29  ;;  %v601_v58 = vmul.f32 0.5, %v1344_v43  ;;  %v629_v4 = vmul.f32 0.5, %v1020_v24 }
  0xbc   : > { %v456_v52 = vsel %vm316_vm0, %v412_v50, 0.0  ;;  %981 = vmatprep.subr.bf16.mxu0 %v1012_v53  ;;  %1000 = vmatprep.subr.bf16.mxu1 %v1012_v53  ;;  %v628_v50 = vmul.f32 0.5, %v1018_v33 }
  0xbd   : > { %436 = vadd.xlane.f32.xlu1 %v435_v49  ;;  %457 = vadd.xlane.f32.xlu0 %v456_v52  ;;  %v459_v28 = vsel %vm316_vm0, %v413_v51, 0.0  ;;  %v1348_v51 = vld [vmem:[%s1298_s10 + $0x30] sm:$0xff]  ;;  %v636_v52 = vadd.f32 0.5, %v620_v34 }
  0xbe   : > { %v594_v8 = vmul.f32 0.5, %v1348_v51 }
  0xbf   : > { %982 = vmatpush3.bf16.msra.mxu0 %v1012_v53  ;;  %1002 = vmatpush3.bf16.msra.mxu1 %v1012_v53 }
  0xc1   : > { %460 = vadd.xlane.f32.xlu1 %v459_v28  ;;  %v1022_v28 = vpop.eup %1021 }
 0x12a   : > { %v416_v9 = vpop.xlane.xlu0 %415 }
 0x12b   : > { %v462_v14 = vmul.f32 0.03125, %v416_v9 }
 0x12d   : > { %v478_v18 = vadd.f32 1e-05, %v462_v14  ;;  %v644_v14 = vadd.f32 0.5, %v628_v50 }
 0x12e   : > { %v419_v22 = vpop.xlane.xlu1 %418  ;;  %v440_v16 = vpop.xlane.xlu0 %439 }
 0x12f   : > { %1029 = vrsqrt.f32 %v478_v18  ;;  %v463_v30 = vmul.f32 0.03125, %v419_v22  ;;  %v470_v31 = vmul.f32 0.03125, %v440_v16  ;;  %v1024_v18 = vpop.eup %1023  ;;  %v622_v22 = vmul.f32 0.5, %v1022_v28 }
 0x130   : > { %1031 = vtanh.f32 %v592_v19  ;;  %v1359_v19 = vmul.f32 %v636_v52, %v1301_v56  ;;  %v1026_v16 = vpop.eup %1025  ;;  %v1367_v42 = vmul.f32 %v644_v14, %v1308_v59 }
 0x131   : > { %v479_v20 = vadd.f32 1e-05, %v463_v30  ;;  %v486_v38 = vadd.f32 1e-05, %v470_v31  ;;  %v595_v31 = vmul.f32 0.5, %v1352_v6  ;;  %v630_v50 = vmul.f32 0.5, %v1026_v16 }
 0x132   : > { %v443_v40 = vpop.xlane.xlu1 %442  ;;  %v422_v41 = vpop.xlane.xlu0 %421 }
 0x133   : > { %1033 = vrsqrt.f32 %v479_v20  ;;  %v471_v48 = vmul.f32 0.03125, %v443_v40  ;;  %v464_v49 = vmul.f32 0.03125, %v422_v41  ;;  %v1363_v20 = vmul.f32 %v637_v2, %v1304_v57  ;;  %v1028_v40 = vpop.eup %1027  ;;  %v1375_v57 = vld [vmem:[%s1513_s1] ss:$0 sm:$0xff] }
 0x134   : > { %1035 = vrsqrt.f32 %v486_v38  ;;  %v645_v38 = vadd.f32 0.5, %v629_v4 }
 0x135   : > { %v487_v29 = vadd.f32 1e-05, %v471_v48  ;;  %v480_v53 = vadd.f32 1e-05, %v464_v49  ;;  %1037 = vtanh.f32 %v593_v39  ;;  %v602_v39 = vmul.f32 0.5, %v1356_v15 }
 0x136   : > { %v425_v60 = vpop.xlane.xlu1 %424  ;;  %v446_v62 = vpop.xlane.xlu0 %445  ;;  %1039 = vtanh.f32 %v600_v46  ;;  %v1370_v46 = vld [vmem:[%s1298_s10 + $0x78] sm:$0xff]  ;;  %v623_v48 = vmul.f32 0.5, %v1024_v18  ;;  %v638_v49 = vadd.f32 0.5, %v622_v22  ;;  %v646_v18 = vadd.f32 0.5, %v630_v50 }
 0x137   : > { %1041 = vrsqrt.f32 %v487_v29  ;;  %v465_v9 = vmul.f32 0.03125, %v425_v60  ;;  %v472_v12 = vmul.f32 0.03125, %v446_v62  ;;  %v1379_v60 = vmul.f32 %v645_v38, %v1312_v61 }
 0x138   : > { %1043 = vrsqrt.f32 %v480_v53  ;;  %v631_v62 = vmul.f32 0.5, %v1028_v40  ;;  %v603_v2 = vmul.f32 0.5, %v1370_v46  ;;  %v639_v14 = vadd.f32 0.5, %v623_v48 }
 0x139   : > { %v481_v27 = vadd.f32 1e-05, %v465_v9  ;;  %v488_v30 = vadd.f32 1e-05, %v472_v12  ;;  %1045 = vtanh.f32 %v601_v58  ;;  %v1389_v61 = vmul.f32 %v638_v49, %v1316_v63 }
 0x13a   : > { %v449_v33 = vpop.xlane.xlu1 %448  ;;  %v428_v34 = vpop.xlane.xlu0 %427  ;;  %1047 = vtanh.f32 %v594_v8  ;;  %v655_v50 = vmul.f32 %v639_v14, %v1320_v3 }
 0x13b   : > { %1049 = vrsqrt.f32 %v481_v27  ;;  %v473_v56 = vmul.f32 0.03125, %v449_v33  ;;  %v466_v41 = vmul.f32 0.03125, %v428_v34 }
 0x13c   : > { %v1030_v24 = vpop.eup %1029  ;;  %1051 = vrsqrt.f32 %v488_v30 }
 0x13d   : > { %v489_v52 = vadd.f32 1e-05, %v473_v56  ;;  %v482_v28 = vadd.f32 1e-05, %v466_v41  ;;  %v510_v29 = vmul.f32 %v1030_v24, %v1198_v36  ;;  %1053 = vtanh.f32 %v595_v31  ;;  %v1032_v53 = vpop.eup %1031  ;;  %v1386_v36 = vld [vmem:[%s1514_s2] ss:$0 sm:$0xff] }
 0x13e   : > { %v431_v59 = vpop.xlane.xlu1 %430  ;;  %v452_v58 = vpop.xlane.xlu0 %451  ;;  %1055 = vtanh.f32 %v602_v39  ;;  %v624_v31 = vmul.f32 0.5, %v1032_v53  ;;  %v647_v56 = vadd.f32 0.5, %v631_v62 }
 0x13f   : > { %1057 = vrsqrt.f32 %v489_v52  ;;  %v467_v4 = vmul.f32 0.03125, %v431_v59  ;;  %v474_v8 = vmul.f32 0.03125, %v452_v58  ;;  %v533_v9 = vmul.f32 %v1375_v57, %v510_v29 }
 0x140   : > { %v1034_v12 = vpop.eup %1033  ;;  %1059 = vrsqrt.f32 %v482_v28  ;;  %v1398_v52 = vmul.f32 %v646_v18, %v1324_v5  ;;  %v640_v3 = vadd.f32 0.5, %v624_v31 }
 0x141   : > { %v1036_v22 = vpop.eup %1035  ;;  %v483_v16 = vadd.f32 1e-05, %v467_v4  ;;  %v490_v27 = vadd.f32 1e-05, %v474_v8  ;;  %v511_v30 = vmul.f32 %v1034_v12, %v1206_v44  ;;  %v556_v39 = vadd.f32 %v1386_v36, %v533_v9 }
 0x142   : > { %v1038_v33 = vpop.eup %1037  ;;  %v455_v34 = vpop.xlane.xlu1 %454  ;;  %v518_v40 = vmul.f32 %v1036_v22, %v1200_v37  ;;  %1061 = vtanh.f32 %v603_v2  ;;  %v1405_v9 = vmul.f32 %v647_v56, %v1328_v7 }
 0x143   : > { %v434_v38 = vpop.xlane.xlu0 %433  ;;  %v1040_v41 = vpop.eup %1039  ;;  %1063 = vrsqrt.f32 %v483_v16  ;;  %v475_v63 = vmul.f32 0.03125, %v455_v34  ;;  %v534_v48 = vmul.f32 %v1375_v57, %v511_v30  ;;  %v668_v4 = vmul.f32 %v1359_v19, %v556_v39 }
 0x144   : > { %v468_v24 = vmul.f32 0.03125, %v434_v38  ;;  %v1042_v49 = vpop.eup %1041  ;;  %1065 = vrsqrt.f32 %v490_v27  ;;  %v541_v44 = vmul.f32 %v1375_v57, %v518_v40  ;;  %v625_v56 = vmul.f32 0.5, %v1038_v33 }
 0x145   : > { %v1044_v28 = vpop.eup %1043  ;;  %v491_v29 = vadd.f32 1e-05, %v475_v63  ;;  %v557_v53 = vadd.f32 %v1386_v36, %v534_v48  ;;  %v519_v59 = vmul.f32 %v1042_v49, %v1208_v45  ;;  %v632_v49 = vmul.f32 0.5, %v1040_v41 }
 0x146   : > { %v484_v37 = vadd.f32 1e-05, %v468_v24  ;;  %v1046_v58 = vpop.eup %1045  ;;  %v437_v62 = vpop.xlane.xlu1 %436  ;;  %v512_v8 = vmul.f32 %v1044_v28, %v1216_v54  ;;  %v564_v16 = vadd.f32 %v1386_v36, %v541_v44 }
 0x147   : > { %v458_v2 = vpop.xlane.xlu0 %457  ;;  %v1048_v5 = vpop.eup %1047  ;;  %1067 = vrsqrt.f32 %v491_v29  ;;  %v469_v12 = vmul.f32 0.03125, %v437_v62  ;;  %v669_v18 = vmul.f32 %v1363_v20, %v557_v53  ;;  %v542_v45 = vmul.f32 %v1375_v57, %v519_v59 }
 0x148   : > { %v476_v14 = vmul.f32 0.03125, %v458_v2  ;;  %v1050_v22 = vpop.eup %1049  ;;  %1069 = vrsqrt.f32 %v484_v37  ;;  %v535_v19 = vmul.f32 %v1375_v57, %v512_v8  ;;  %v633_v59 = vmul.f32 0.5, %v1046_v58 }
 0x149   : > { %v1052_v27 = vpop.eup %1051  ;;  %v485_v54 = vadd.f32 1e-05, %v469_v12  ;;  %v684_v7 = vpack.c.bf16 %v669_v18, %v668_v4  ;;  %v513_v31 = vmul.f32 %v1050_v22, %v1218_v55  ;;  %v565_v39 = vadd.f32 %v1386_v36, %v542_v45 }
 0x14a   : > { %v492_v30 = vadd.f32 1e-05, %v476_v14  ;;  %v1054_v34 = vpop.eup %1053  ;;  %v461_v38 = vpop.xlane.xlu1 %460  ;;  %v558_v20 = vadd.f32 %v1386_v36, %v535_v19  ;;  %v520_v40 = vmul.f32 %v1052_v27, %v1227_v0  ;;  %v676_v55 = vmul.f32 %v1367_v42, %v564_v16 }
 0x14b   : > { %v1056_v63 = vpop.eup %1055  ;;  %1071 = vrsqrt.f32 %v485_v54  ;;  %v477_v24 = vmul.f32 0.03125, %v461_v38  ;;  %983 = vmatprep.mubr.msk.bf16.mxu0 %vm316_vm0, %v684_v7  ;;  %v536_v48 = vmul.f32 %v1375_v57, %v513_v31  ;;  %v677_v28 = vmul.f32 %v1379_v60, %v565_v39 }
 0x14c   : > { %v1058_v44 = vpop.eup %1057  ;;  %1073 = vrsqrt.f32 %v492_v30  ;;  %v543_v29 = vmul.f32 %v1375_v57, %v520_v40  ;;  %v670_v2 = vmul.f32 %v1389_v61, %v558_v20  ;;  %v641_v4 = vadd.f32 0.5, %v625_v56 }
 0x14d   : > { %v1060_v37 = vpop.eup %1059  ;;  %v493_v53 = vadd.f32 1e-05, %v477_v24  ;;  %v559_v0 = vadd.f32 %v1386_v36, %v536_v48  ;;  %v521_v33 = vmul.f32 %v1058_v44, %v1230_v1  ;;  %v688_v62 = vpack.c.bf16 %v677_v28, %v676_v55 }
 0x14e   : > { %v514_v41 = vmul.f32 %v1060_v37, %v1239_v10  ;;  %v566_v12 = vadd.f32 %v1386_v36, %v543_v29  ;;  %v648_v1 = vadd.f32 0.5, %v632_v49  ;;  %v626_v58 = vmul.f32 0.5, %v1048_v5 }
 0x14f   : > { %v1062_v8 = vpop.eup %1061  ;;  %1075 = vrsqrt.f32 %v493_v53  ;;  %v671_v42 = vmul.f32 %v655_v50, %v559_v0  ;;  %v544_v60 = vmul.f32 %v1375_v57, %v521_v33  ;;  %991 = vmatprep.mubr.msk.bf16.mxu1 %vm316_vm0, %v688_v62  ;;  %v649_v16 = vadd.f32 0.5, %v633_v59 }
 0x150   : > { %v1064_v14 = vpop.eup %1063  ;;  %v537_v18 = vmul.f32 %v1375_v57, %v514_v41  ;;  %v656_v50 = vmul.f32 %v640_v3, %v1333_v13  ;;  %v657_v19 = vmul.f32 %v641_v4, %v1337_v26  ;;  %v627_v54 = vmul.f32 0.5, %v1054_v34 }
 0x151   : > { %v1066_v22 = vpop.eup %1065  ;;  %v685_v45 = vpack.c.bf16 %v671_v42, %v670_v2  ;;  %v567_v61 = vadd.f32 %v1386_v36, %v544_v60  ;;  %v515_v10 = vmul.f32 %v1064_v14, %v1242_v11  ;;  %v678_v30 = vmul.f32 %v1398_v52, %v566_v12 }
 0x152   : > { %v522_v27 = vmul.f32 %v1066_v22, %v1251_v23  ;;  %v560_v31 = vadd.f32 %v1386_v36, %v537_v18  ;;  %v664_v13 = vmul.f32 %v648_v1, %v1340_v32  ;;  %v642_v3 = vadd.f32 0.5, %v626_v58 }
 0x153   : > { %984 = vmatmul.mubr.msk.bf16.vlgmr.msra.gmra.mxu0 %vm316_vm0, %v685_v45  ;;  %v679_v5 = vmul.f32 %v1405_v9, %v567_v61  ;;  %v538_v7 = vmul.f32 %v1375_v57, %v515_v10  ;;  %v665_v52 = vmul.f32 %v649_v16, %v1344_v43  ;;  %v643_v20 = vadd.f32 0.5, %v627_v54  ;;  %v706_v45 = vld [vmem:[%s291_s17 + $0x50] sm:$0xff]  ;;  %v697_v61 = vld [vmem:[%s291_s17 + $0x8] sm:$0xff]  ;;  %v704_v10 = vld [vmem:[%s291_s17 + $0x40] sm:$0xff] }
 0x154   : > { %v1068_v38 = vpop.eup %1067  ;;  %v545_v11 = vmul.f32 %v1375_v57, %v522_v27  ;;  %v634_v40 = vmul.f32 0.5, %v1056_v63  ;;  %v635_v56 = vmul.f32 0.5, %v1062_v8  ;;  %v672_v24 = vmul.f32 %v656_v50, %v560_v31  ;;  %v707_v16 = vld [vmem:[%s291_s17 + $0x58] sm:$0xff]  ;;  %v702_v50 = vld [vmem:[%s291_s17 + $0x30] sm:$0xff] }
 0x155   : > { %v1070_v26 = vpop.eup %1069  ;;  %v689_v39 = vpack.c.bf16 %v679_v5, %v678_v30  ;;  %v561_v23 = vadd.f32 %v1386_v36, %v538_v7  ;;  %v523_v34 = vmul.f32 %v1068_v38, %v1254_v17  ;;  %v658_v63 = vmul.f32 %v642_v3, %v1348_v51  ;;  %v703_v27 = vld [vmem:[%s291_s17 + $0x38] sm:$0xff]  ;;  %v710_v54 = vld [vmem:[%s291_s17 + $0x70] sm:$0xff]  ;;  %v701_v30 = vld [vmem:[%s291_s17 + $0x28] sm:$0xff] }
 0x156   : > { %v516_v9 = vmul.f32 %v1070_v26, %v1263_v35  ;;  %v568_v49 = vadd.f32 %v1386_v36, %v545_v11  ;;  %v659_v37 = vmul.f32 %v643_v20, %v1352_v6  ;;  %v650_v53 = vadd.f32 0.5, %v634_v40  ;;  %v708_v7 = vld [vmem:[%s291_s17 + $0x60] sm:$0xff]  ;;  %v711_v31 = vld [vmem:[%s291_s17 + $0x78] sm:$0xff]  ;;  %v709_v38 = vld [vmem:[%s291_s17 + $0x68] sm:$0xff] }
 0x157   : > { %992 = vmatmul.mubr.msk.bf16.vlgmr.msra.gmra.mxu1 %vm316_vm0, %v689_v39  ;;  %v673_v48 = vmul.f32 %v657_v19, %v561_v23  ;;  %v546_v32 = vmul.f32 %v1375_v57, %v523_v34  ;;  %v651_v0 = vadd.f32 0.5, %v635_v56  ;;  %v700_v19 = vld [vmem:[%s291_s17 + $0x20] sm:$0xff] }
 0x158   : > { %v1072_v44 = vpop.eup %1071  ;;  %v539_v55 = vmul.f32 %v1375_v57, %v516_v9  ;;  %v680_v33 = vmul.f32 %v664_v13, %v568_v49  ;;  %v666_v6 = vmul.f32 %v650_v53, %v1356_v15  ;;  %v698_v15 = vld [vmem:[%s291_s17 + $0x10] sm:$0xff] }
 0x159   : > { %v1074_v28 = vpop.eup %1073  ;;  %v686_v17 = vpack.c.bf16 %v673_v48, %v672_v24  ;;  %v569_v43 = vadd.f32 %v1386_v36, %v546_v32  ;;  %v517_v35 = vmul.f32 %v1072_v44, %v1266_v21  ;;  %v667_v8 = vmul.f32 %v651_v0, %v1370_v46  ;;  %v696_v46 = vld [vmem:[%s291_s17] sm:$0xff] }
 0x15a   : > { %v524_v29 = vmul.f32 %v1074_v28, %v1275_v47  ;;  %v562_v2 = vadd.f32 %v1386_v36, %v539_v55 }
 0x15b   : > { %987 = vmatprep.mubr.msk.bf16.mxu0 %vm316_vm0, %v686_v17  ;;  %v681_v59 = vmul.f32 %v665_v52, %v569_v43  ;;  %v540_v62 = vmul.f32 %v1375_v57, %v517_v35 }
 0x15c   : > { %v1076_v41 = vpop.eup %1075  ;;  %v547_v4 = vmul.f32 %v1375_v57, %v524_v29  ;;  %v674_v42 = vmul.f32 %v658_v63, %v562_v2 }
 0x15d   : > { %v525_v21 = vmul.f32 %v1076_v41, %v1278_v25  ;;  %v690_v51 = vpack.c.bf16 %v681_v59, %v680_v33  ;;  %v563_v47 = vadd.f32 %v1386_v36, %v540_v62 }
 0x15e   : > { %v570_v14 = vadd.f32 %v1386_v36, %v547_v4 }
 0x15f   : > { %995 = vmatprep.mubr.msk.bf16.mxu1 %vm316_vm0, %v690_v51  ;;  %v675_v60 = vmul.f32 %v659_v37, %v563_v47  ;;  %v548_v12 = vmul.f32 %v1375_v57, %v525_v21  ;;  %v699_v57 = vld [vmem:[%s291_s17 + $0x18] sm:$0xff] }
 0x160   : > { %v682_v25 = vmul.f32 %v666_v6, %v570_v14 }
 0x161   : > { %v687_v18 = vpack.c.bf16 %v675_v60, %v674_v42  ;;  %v571_v1 = vadd.f32 %v1386_v36, %v548_v12  ;;  %v705_v36 = vld [vmem:[%s291_s17 + $0x48] sm:$0xff] }
 0x163   : > { %988 = vmatmul.mubr.msk.bf16.gmra.mxu0 %vm316_vm0, %v687_v18  ;;  %v683_v58 = vmul.f32 %v667_v8, %v571_v1 }
 0x165   : > { %v691_v22 = vpack.c.bf16 %v683_v58, %v682_v25 }
 0x167   : > { %996 = vmatmul.mubr.msk.bf16.gmra.mxu1 %vm316_vm0, %v691_v22 }
 0x213   : > { %v985_v5 = vpop.f32.mrf.mxu0 }
 0x214   : > { %v791_v11 = vadd.f32 %v985_v5, %v698_v15 }
 0x215   : > { %v782_v13 = vpop.f32.mrf.mxu0 }
 0x216   : > { %v783_v3 = vadd.f32 %v782_v13, %v696_v46  ;;  %848 = vst.msk [vmem:[%s1475_s20 + $0x10] sm:$0xff] %vm845_vm1, %v791_v11 }
 0x217   : > { %v986_v26 = vpop.f32.mrf.mxu0  ;;  %v993_v39 = vpop.f32.mrf.mxu1 }
 0x218   : > { %v794_v23 = vadd.f32 %v986_v26, %v699_v57  ;;  %v823_v34 = vadd.f32 %v993_v39, %v706_v45  ;;  %846 = vst.msk [vmem:[%s1475_s20] sm:$0xff] %vm845_vm1, %v783_v3 }
 0x219   : > { %v785_v52 = vpop.f32.mrf.mxu0  ;;  %v814_v9 = vpop.f32.mrf.mxu1 }
 0x21a   : > { %v786_v20 = vadd.f32 %v785_v52, %v697_v61  ;;  %v815_v40 = vadd.f32 %v814_v9, %v704_v10  ;;  %849 = vst.msk [vmem:[%s1475_s20 + $0x18] sm:$0xff] %vm845_vm1, %v794_v23  ;;  %856 = vst.msk [vmem:[%s1475_s20 + $0x50] sm:$0xff] %vm845_vm1, %v823_v34 }
 0x21b   : > { %v994_v56 = vpop.f32.mrf.mxu1 }
 0x21c   : > { %v826_v24 = vadd.f32 %v994_v56, %v707_v16  ;;  %847 = vst.msk [vmem:[%s1475_s20 + $0x8] sm:$0xff] %vm845_vm1, %v786_v20  ;;  %854 = vst.msk [vmem:[%s1475_s20 + $0x40] sm:$0xff] %vm845_vm1, %v815_v40 }
 0x21d   : > { %v817_v48 = vpop.f32.mrf.mxu1 }
 0x21e   : > { %v818_v32 = vadd.f32 %v817_v48, %v705_v36  ;;  %857 = vst.msk [vmem:[%s1475_s20 + $0x58] sm:$0xff] %vm845_vm1, %v826_v24 }
 0x220   : > { %855 = vst.msk [vmem:[%s1475_s20 + $0x48] sm:$0xff] %vm845_vm1, %v818_v32 }
 0x223   : > { %v989_v49 = vpop.f32.mrf.mxu0 }
 0x224   : > { %v807_v44 = vadd.f32 %v989_v49, %v702_v50 }
 0x225   : > { %v798_v55 = vpop.f32.mrf.mxu0 }
 0x226   : > { %v799_v28 = vadd.f32 %v798_v55, %v700_v19  ;;  %852 = vst.msk [vmem:[%s1475_s20 + $0x30] sm:$0xff] %vm845_vm1, %v807_v44 }
 0x227   : > { %v990_v17 = vpop.f32.mrf.mxu0  ;;  %v997_v43 = vpop.f32.mrf.mxu1 }
 0x228   : > { %v810_v35 = vadd.f32 %v990_v17, %v703_v27  ;;  %v839_v63 = vadd.f32 %v997_v43, %v710_v54  ;;  %850 = vst.msk [vmem:[%s1475_s20 + $0x20] sm:$0xff] %vm845_vm1, %v799_v28 }
 0x229   : > { %v801_v29 = vpop.f32.mrf.mxu0  ;;  %v830_v37 = vpop.f32.mrf.mxu1 }
 0x22a   : > { %v802_v53 = vadd.f32 %v801_v29, %v701_v30  ;;  %v831_v0 = vadd.f32 %v830_v37, %v708_v7  ;;  %853 = vst.msk [vmem:[%s1475_s20 + $0x38] sm:$0xff] %vm845_vm1, %v810_v35  ;;  %860 = vst.msk [vmem:[%s1475_s20 + $0x70] sm:$0xff] %vm845_vm1, %v839_v63 }
 0x22b   : > { %v998_v33 = vpop.f32.mrf.mxu1 }
 0x22c   : > { %v842_v59 = vadd.f32 %v998_v33, %v711_v31  ;;  %851 = vst.msk [vmem:[%s1475_s20 + $0x28] sm:$0xff] %vm845_vm1, %v802_v53  ;;  %858 = vst.msk [vmem:[%s1475_s20 + $0x60] sm:$0xff] %vm845_vm1, %v831_v0 }
 0x22d   : > { %v833_v62 = vpop.f32.mrf.mxu1 }
 0x22e   : > { %v834_v2 = vadd.f32 %v833_v62, %v709_v38  ;;  %861 = vst.msk [vmem:[%s1475_s20 + $0x78] sm:$0xff] %vm845_vm1, %v842_v59 }
 0x230   : > { %859 = vst.msk [vmem:[%s1475_s20 + $0x68] sm:$0xff] %vm845_vm1, %v834_v2 }
 0x231 PF: > { %s16_s21 = sadd.s32 1, %s1083_s21  }
 0x232   : > { %p13_p4 = scmp.ge.s32.totalorder %s16_s21, 4  }
 0x234   :  { %15 = sbr.rel (!%p13_p4) target bundleno = 1 (0x1), region = 80 }

// kernel: split.0
= control target key start
LH: loop header
LB: loop body
LE: loop exit
PB: predicated region body
PF: predicated region fallthrough
CT: control target
= control target key end

     0   :  { %s219_s0 = inlined_call_operand.vmem [shape: f32[4,8,8,16], index: 0, kind: input, shape index: {}]   ;;  %s220_s1 = inlined_call_operand.vmem [shape: f32[2,8,8,16], index: 1, kind: output, shape index: {}]  }
   0x1   :  { %v82_v0 = vld [vmem:[%s219_s0 + $0x80] sm:$0xff]  ;;  %v85_v2 = vld [vmem:[%s219_s0 + $0x88] sm:$0xff]  ;;  %v89_v4 = vld [vmem:[%s219_s0 + $0x90] sm:$0xff] }
   0x2   :  { %v83_v1 = vld [vmem:[%s219_s0 + $0xc0] sm:$0xff]  ;;  %6 = vst [vmem:[%s220_s1] sm:$0xff] %v82_v0  ;;  %86 = vst [vmem:[%s220_s1 + $0x8] sm:$0xff] %v85_v2  ;;  %v87_v3 = vld [vmem:[%s219_s0 + $0xc8] sm:$0xff] }
   0x3   :  { %84 = vst [vmem:[%s220_s1 + $0x40] sm:$0xff] %v83_v1  ;;  %v91_v5 = vld [vmem:[%s219_s0 + $0xd0] sm:$0xff]  ;;  %88 = vst [vmem:[%s220_s1 + $0x48] sm:$0xff] %v87_v3  ;;  %v93_v6 = vld [vmem:[%s219_s0 + $0x98] sm:$0xff] }
   0x4   :  { %90 = vst [vmem:[%s220_s1 + $0x10] sm:$0xff] %v89_v4  ;;  %92 = vst [vmem:[%s220_s1 + $0x50] sm:$0xff] %v91_v5  ;;  %v95_v7 = vld [vmem:[%s219_s0 + $0xd8] sm:$0xff]  ;;  %v97_v8 = vld [vmem:[%s219_s0 + $0xa0] sm:$0xff] }
   0x5   :  { %94 = vst [vmem:[%s220_s1 + $0x18] sm:$0xff] %v93_v6  ;;  %96 = vst [vmem:[%s220_s1 + $0x58] sm:$0xff] %v95_v7  ;;  %v99_v9 = vld [vmem:[%s219_s0 + $0xe0] sm:$0xff]  ;;  %v101_v10 = vld [vmem:[%s219_s0 + $0xa8] sm:$0xff] }
   0x6   :  { %98 = vst [vmem:[%s220_s1 + $0x20] sm:$0xff] %v97_v8  ;;  %v103_v11 = vld [vmem:[%s219_s0 + $0xe8] sm:$0xff]  ;;  %100 = vst [vmem:[%s220_s1 + $0x60] sm:$0xff] %v99_v9  ;;  %v105_v12 = vld [vmem:[%s219_s0 + $0xb0] sm:$0xff] }
   0x7   :  { %102 = vst [vmem:[%s220_s1 + $0x28] sm:$0xff] %v101_v10  ;;  %104 = vst [vmem:[%s220_s1 + $0x68] sm:$0xff] %v103_v11  ;;  %v107_v13 = vld [vmem:[%s219_s0 + $0xf0] sm:$0xff]  ;;  %v109_v14 = vld [vmem:[%s219_s0 + $0xb8] sm:$0xff] }
   0x8   :  { %106 = vst [vmem:[%s220_s1 + $0x30] sm:$0xff] %v105_v12  ;;  %108 = vst [vmem:[%s220_s1 + $0x70] sm:$0xff] %v107_v13  ;;  %v111_v15 = vld [vmem:[%s219_s0 + $0xf8] sm:$0xff] }
   0x9   :  { %110 = vst [vmem:[%s220_s1 + $0x38] sm:$0xff] %v109_v14  ;;  %112 = vst [vmem:[%s220_s1 + $0x78] sm:$0xff] %v111_v15 }

</bundles_post_ra>
